<compile_context>
chip_gen: v7x
topology: tpu7x:2x2x1
jax: 0.10.0
libtpu: 0.0.40
codegen_flags: <defaults>
</compile_context>

<pallas_src>
from functools import partial

import jax
import jax.numpy as jnp
from jax import lax
from jax.experimental import pallas as pl
from jax.experimental.pallas import tpu as pltpu

LN_EPS = 1e-12  # matches the reference LayerNorm default of this transformer spec


# ----------------------------- helpers --------------------------------------

def _pick_tile(dim, pref, align):
    """Largest tile <= pref that divides dim and is a multiple of `align`.

    Falls back to the full dim (always a legal block) if no aligned divisor exists.
    """
    if dim <= pref:
        return dim
    t = (min(pref, dim) // align) * align
    while t >= align:
        if dim % t == 0:
            return t
        t -= align
    # TODO(synk): pad to a tile multiple instead of one giant block for odd dims.
    return dim


def _vmem_limit(block_bytes):
    """Scoped-VMEM request sized from the per-step block footprint with headroom."""
    est = 2 * int(block_bytes) + (4 << 20)           # 2-deep pipelining + headroom
    return int(min(max(est, 16 << 20), 48 << 20))    # safe on v5e/v6e/v7x


# ------------------------- tiled matmul (+bias/act) --------------------------

def _matmul_bias_kernel(x_ref, w_ref, b_ref, o_ref, acc_ref, *, activation):
    @pl.when(pl.program_id(2) == 0)
    def _():
        acc_ref[...] = jnp.zeros_like(acc_ref)

    acc_ref[...] += jnp.dot(x_ref[...], w_ref[...],
                            preferred_element_type=jnp.float32)

    @pl.when(pl.program_id(2) == pl.num_programs(2) - 1)
    def _():
        acc = acc_ref[...] + b_ref[...].astype(jnp.float32)
        if activation == "relu":
            acc = jnp.maximum(acc, 0.0)
        o_ref[...] = acc.astype(o_ref.dtype)


def matmul_bias(x, w, b, activation=None, tm=256, tn=256, tk=256):
    """y = act(x @ w + b); x: [M, K] (bf16), w: [K, N] (bf16), b: [N] (f32)."""
    M, K = x.shape
    N = w.shape[1]
    tm = _pick_tile(M, tm, 8)
    tn = _pick_tile(N, tn, 128)
    tk = _pick_tile(K, tk, 128)
    grid = (M // tm, N // tn, K // tk)
    block_bytes = tm * tk * 2 + tk * tn * 2 + tn * 4 + tm * tn * 2 + tm * tn * 4
    return pl.pallas_call(
        partial(_matmul_bias_kernel, activation=activation),
        out_shape=jax.ShapeDtypeStruct((M, N), x.dtype),
        grid=grid,
        in_specs=[
            pl.BlockSpec((tm, tk), lambda i, j, k: (i, k)),
            pl.BlockSpec((tk, tn), lambda i, j, k: (k, j)),
            pl.BlockSpec((1, tn), lambda i, j, k: (0, j)),
        ],
        out_specs=pl.BlockSpec((tm, tn), lambda i, j, k: (i, j)),
        scratch_shapes=[pltpu.VMEM((tm, tn), jnp.float32)],
        compiler_params=pltpu.CompilerParams(
            dimension_semantics=("parallel", "parallel", "arbitrary"),
            vmem_limit_bytes=_vmem_limit(block_bytes)),
    )(x, w, b.reshape(1, N))


# ------------- matmul + bias + residual + LayerNorm fused epilogue -----------

def _matmul_res_ln_kernel(x_ref, w_ref, b_ref, r_ref, g_ref, be_ref,
                          o_ref, acc_ref, *, eps):
    @pl.when(pl.program_id(1) == 0)
    def _():
        acc_ref[...] = jnp.zeros_like(acc_ref)

    acc_ref[...] += jnp.dot(x_ref[...], w_ref[...],
                            preferred_element_type=jnp.float32)

    @pl.when(pl.program_id(1) == pl.num_programs(1) - 1)
    def _():
        y = (acc_ref[...] + b_ref[...].astype(jnp.float32)
             + r_ref[...].astype(jnp.float32))
        mean = jnp.mean(y, axis=-1, keepdims=True)
        var = jnp.mean((y - mean) ** 2, axis=-1, keepdims=True)   # unbiased=False
        yn = (y - mean) * lax.rsqrt(var + eps)
        o_ref[...] = (g_ref[...].astype(jnp.float32) * yn
                      + be_ref[...].astype(jnp.float32)).astype(o_ref.dtype)


def matmul_bias_res_ln(x, w, b, residual, gamma, beta, eps=LN_EPS, tm=128, tk=256):
    """LayerNorm(x @ w + b + residual) * gamma + beta (row-wise LN over full N)."""
    M, K = x.shape
    N = w.shape[1]
    tm = _pick_tile(M, tm, 8)
    tk = _pick_tile(K, tk, 128)
    grid = (M // tm, K // tk)
    block_bytes = (tm * tk * 2 + tk * N * 2 + 3 * N * 4
                   + 2 * tm * N * 2 + tm * N * 4)
    return pl.pallas_call(
        partial(_matmul_res_ln_kernel, eps=eps),
        out_shape=jax.ShapeDtypeStruct((M, N), x.dtype),
        grid=grid,
        in_specs=[
            pl.BlockSpec((tm, tk), lambda i, k: (i, k)),
            pl.BlockSpec((tk, N), lambda i, k: (k, 0)),
            pl.BlockSpec((1, N), lambda i, k: (0, 0)),
            pl.BlockSpec((tm, N), lambda i, k: (i, 0)),
            pl.BlockSpec((1, N), lambda i, k: (0, 0)),
            pl.BlockSpec((1, N), lambda i, k: (0, 0)),
        ],
        out_specs=pl.BlockSpec((tm, N), lambda i, k: (i, 0)),
        scratch_shapes=[pltpu.VMEM((tm, N), jnp.float32)],
        compiler_params=pltpu.CompilerParams(
            dimension_semantics=("parallel", "arbitrary"),
            vmem_limit_bytes=_vmem_limit(block_bytes)),
    )(x, w, b.reshape(1, N), residual, gamma.reshape(1, N), beta.reshape(1, N))


# ----- fused FFN, hidden-dim tiled: relu(x@w1+b1)@w2 + b2 + residual + LN -----

def _ffn_kernel(x_ref, w1_ref, b1_ref, w2_ref, b2_ref, r_ref, g_ref, be_ref,
                o_ref, acc_ref, *, eps):
    j = pl.program_id(1)

    @pl.when(j == 0)
    def _():
        acc_ref[...] = jnp.zeros_like(acc_ref)

    # per hidden-tile partial: h_j = relu(x @ w1[:, j] + b1[j]); acc += h_j @ w2[j, :]
    h = jnp.dot(x_ref[...], w1_ref[...], preferred_element_type=jnp.float32)
    h = jnp.maximum(h + b1_ref[...].astype(jnp.float32), 0.0)
    acc_ref[...] += jnp.dot(h.astype(w2_ref.dtype), w2_ref[...],
                            preferred_element_type=jnp.float32)

    @pl.when(j == pl.num_programs(1) - 1)
    def _():
        y = (acc_ref[...] + b2_ref[...].astype(jnp.float32)
             + r_ref[...].astype(jnp.float32))
        mean = jnp.mean(y, axis=-1, keepdims=True)
        var = jnp.mean((y - mean) ** 2, axis=-1, keepdims=True)
        yn = (y - mean) * lax.rsqrt(var + eps)
        o_ref[...] = (g_ref[...].astype(jnp.float32) * yn
                      + be_ref[...].astype(jnp.float32)).astype(o_ref.dtype)


def fused_ffn(x, w1, b1, w2, b2, residual, gamma, beta, eps=LN_EPS, tm=256, th=512):
    M, D = x.shape
    H = w1.shape[1]
    tm = _pick_tile(M, tm, 8)
    th = _pick_tile(H, th, 128)
    grid = (M // tm, H // th)
    block_bytes = (2 * tm * D * 2 + D * th * 2 + th * 4 + th * D * 2
                   + 3 * D * 4 + tm * D * 2 + tm * D * 4)
    return pl.pallas_call(
        partial(_ffn_kernel, eps=eps),
        out_shape=jax.ShapeDtypeStruct((M, D), x.dtype),
        grid=grid,
        in_specs=[
            pl.BlockSpec((tm, D), lambda i, j: (i, 0)),
            pl.BlockSpec((D, th), lambda i, j: (0, j)),
            pl.BlockSpec((1, th), lambda i, j: (0, j)),
            pl.BlockSpec((th, D), lambda i, j: (j, 0)),
            pl.BlockSpec((1, D), lambda i, j: (0, 0)),
            pl.BlockSpec((tm, D), lambda i, j: (i, 0)),
            pl.BlockSpec((1, D), lambda i, j: (0, 0)),
            pl.BlockSpec((1, D), lambda i, j: (0, 0)),
        ],
        out_specs=pl.BlockSpec((tm, D), lambda i, j: (i, 0)),
        scratch_shapes=[pltpu.VMEM((tm, D), jnp.float32)],
        compiler_params=pltpu.CompilerParams(
            dimension_semantics=("parallel", "arbitrary"),
            vmem_limit_bytes=_vmem_limit(block_bytes)),
    )(x, w1, b1.reshape(1, H), w2, b2.reshape(1, D),
      residual, gamma.reshape(1, D), beta.reshape(1, D))


# ----------------- flash-style multi-head attention over Sk tiles -------------

def _mha_kernel(*refs, n_head, d_head, scale, has_mask):
    if has_mask:
        q_ref, kv_ref, m_ref, o_ref, m_sc, l_sc, acc_sc = refs
    else:
        q_ref, kv_ref, o_ref, m_sc, l_sc, acc_sc = refs
        m_ref = None

    ki = pl.program_id(2)

    @pl.when(ki == 0)
    def _():
        m_sc[...] = jnp.full(m_sc.shape, -1e30, dtype=m_sc.dtype)
        l_sc[...] = jnp.zeros_like(l_sc)
        acc_sc[...] = jnp.zeros_like(acc_sc)

    q_all = q_ref[0]      # (tq, D)  bf16, lane-dense
    kv_all = kv_ref[0]    # (tk, 2D) bf16, lane-dense
    D = n_head * d_head
    tq = q_all.shape[0]
    tk = kv_all.shape[0]

    if has_mask:
        # hoisted out of the per-head loop (compare + broadcast emitted once)
        neg_mask = jnp.broadcast_to(m_ref[0] == 0, (tq, tk))

    for h in range(n_head):                    # static unroll over heads
        qh = q_all[:, h * d_head:(h + 1) * d_head]
        kh = kv_all[:, h * d_head:(h + 1) * d_head]
        vh = kv_all[:, D + h * d_head: D + (h + 1) * d_head]

        s = lax.dot_general(qh, kh, (((1,), (1,)), ((), ())),
                            preferred_element_type=jnp.float32) * scale
        if has_mask:
            s = jnp.where(neg_mask, jnp.float32(-1e9), s)

        m_prev = m_sc[h]                                           # (tq, 1)
        m_new = jnp.maximum(m_prev, jnp.max(s, axis=-1, keepdims=True))
        alpha = jnp.exp(m_prev - m_new)
        p = jnp.exp(s - m_new)
        l_sc[h] = alpha * l_sc[h] + jnp.sum(p, axis=-1, keepdims=True)
        acc_sc[h] = alpha * acc_sc[h] + jnp.dot(
            p.astype(kv_all.dtype), vh, preferred_element_type=jnp.float32)
        m_sc[h] = m_new

    @pl.when(ki == pl.num_programs(2) - 1)
    def _():
        # per-head stores (no concatenate -> no vreg pressure / lane packing)
        for h in range(n_head):
            inv = pl.reciprocal(l_sc[h], approx=True)          # EUP slot
            o_ref[0, :, h * d_head:(h + 1) * d_head] = (
                acc_sc[h] * inv).astype(o_ref.dtype)


def mha_attention(q, kv, mask, *, n_head, d_model, tq=256, tk=512):
    """q: [B,Sq,D], kv: [B,Sk,2D] (K then V).  Online softmax over Sk tiles."""
    B, Sq, D = q.shape
    _, Sk, Dkv = kv.shape
    d_head = d_model // n_head
    scale = 1.0 / float(d_head) ** 0.5
    tq = _pick_tile(Sq, tq, 8)
    tk = _pick_tile(Sk, tk, 128)
    grid = (B, Sq // tq, Sk // tk)

    in_specs = [
        pl.BlockSpec((1, tq, D), lambda b, qi, ki: (b, qi, 0)),
        pl.BlockSpec((1, tk, Dkv), lambda b, qi, ki: (b, ki, 0)),
    ]
    operands = [q, kv]
    has_mask = mask is not None
    mask_bytes = 0
    if has_mask:
        m = jnp.asarray(mask, jnp.float32)
        if m.ndim == 4:
            m = m[:, 0]              # drop the broadcast head dim
        elif m.ndim == 2:
            m = m[None]
        Bm, Sm, _ = m.shape          # (1|B, 1|Sq, Sk) — stays compact in HBM
        mq = tq if Sm == Sq else 1

        def mask_map(b, qi, ki, _Bm=Bm, _Sm=Sm, _Sq=Sq):
            return (b if _Bm > 1 else 0, qi if _Sm == _Sq else 0, ki)

        in_specs.append(pl.BlockSpec((1, mq, tk), mask_map))
        operands.append(m)
        mask_bytes = mq * tk * 4

    block_bytes = (2 * tq * D * 2 + tk * Dkv * 2 + mask_bytes
                   + n_head * tq * (d_head + 2) * 4)
    return pl.pallas_call(
        partial(_mha_kernel, n_head=n_head, d_head=d_head, scale=scale,
                has_mask=has_mask),
        out_shape=jax.ShapeDtypeStruct((B, Sq, d_model), q.dtype),
        grid=grid,
        in_specs=in_specs,
        out_specs=pl.BlockSpec((1, tq, d_model), lambda b, qi, ki: (b, qi, 0)),
        scratch_shapes=[
            pltpu.VMEM((n_head, tq, 1), jnp.float32),        # running max
            pltpu.VMEM((n_head, tq, 1), jnp.float32),        # running sum
            pltpu.VMEM((n_head, tq, d_head), jnp.float32),   # running output
        ],
        compiler_params=pltpu.CompilerParams(
            dimension_semantics=("parallel", "parallel", "arbitrary"),
            vmem_limit_bytes=_vmem_limit(block_bytes)),
    )(*operands)


# --------------------------- model building blocks ---------------------------

def decoder_layer(dec, enc, tgt_mask, src_mask, lp, n_head, eps=LN_EPS):
    B, S, D = dec.shape
    dec2d = dec.reshape(B * S, D)

    # self-attention: fused QKV projection, then split q / kv in the wrapper so the
    # attention kernel only DMAs the bytes it uses.
    qkv = matmul_bias(dec2d, lp["self_attn"]["wqkv"], lp["self_attn"]["bqkv"])
    q = qkv[:, :D].reshape(B, S, D)
    kv = qkv[:, D:].reshape(B, S, 2 * D)
    attn = mha_attention(q, kv, tgt_mask, n_head=n_head, d_model=D)
    # output proj fused with (dropout=id) + residual + LN1
    x2d = matmul_bias_res_ln(attn.reshape(B * S, D),
                             lp["self_attn"]["wo"], lp["self_attn"]["bo"],
                             dec2d, lp["ln1_g"], lp["ln1_b"], eps=eps)

    # encoder-decoder attention: Q proj + fused KV proj + attention
    if enc is not None:
        Sk = enc.shape[1]
        q = matmul_bias(x2d, lp["enc_dec_attn"]["wq"], lp["enc_dec_attn"]["bq"])
        kvx = matmul_bias(enc.reshape(B * Sk, D),
                          lp["enc_dec_attn"]["wkv"], lp["enc_dec_attn"]["bkv"])
        attn = mha_attention(q.reshape(B, S, D), kvx.reshape(B, Sk, 2 * D),
                             src_mask, n_head=n_head, d_model=D)
        x2d = matmul_bias_res_ln(attn.reshape(B * S, D),
                                 lp["enc_dec_attn"]["wo"], lp["enc_dec_attn"]["bo"],
                                 x2d, lp["ln2_g"], lp["ln2_b"], eps=eps)

    # FFN (linear1+relu+linear2) fused with residual + LN3 (dropout = identity)
    # TODO(synk): dropout is implemented as identity (eval-mode semantics only).
    y2d = fused_ffn(x2d, lp["ffn"]["w1"], lp["ffn"]["b1"],
                    lp["ffn"]["w2"], lp["ffn"]["b2"],
                    x2d, lp["ln3_g"], lp["ln3_b"], eps=eps)
    return y2d.reshape(B, S, D)


def decoder_forward(tgt, enc_src, tgt_mask, src_mask, params, n_head):
    # bf16 inter-kernel activations (halve HBM traffic); LN/softmax stats stay f32.
    x = tgt.astype(jnp.bfloat16)
    enc = None if enc_src is None else enc_src.astype(jnp.bfloat16)
    for lp in params:
        x = decoder_layer(x, enc, tgt_mask, src_mask, lp, n_head)
    return x.astype(tgt.dtype)


# ------------------------------- Param init ----------------------------------

def _attn_params(key, d_model):
    ks = jax.random.split(key, 4)

    def w(k):
        return (jax.random.normal(k, (d_model, d_model), jnp.float32)
                * 0.02).astype(jnp.bfloat16)

    z = jnp.zeros((d_model,), jnp.float32)
    wq, wk, wv, wo = w(ks[0]), w(ks[1]), w(ks[2]), w(ks[3])
    return {
        "wq": wq, "bq": z,
        "wkv": jnp.concatenate([wk, wv], axis=1),
        "bkv": jnp.zeros((2 * d_model,), jnp.float32),
        "wqkv": jnp.concatenate([wq, wk, wv], axis=1),
        "bqkv": jnp.zeros((3 * d_model,), jnp.float32),
        "wo": wo, "bo": z,
    }


def init_decoder_params(key, n_layer, d_model, ffn_hidden):
    params = []
    for _ in range(n_layer):
        key, k1, k2, k3, k4 = jax.random.split(key, 5)
        lp = {
            "self_attn": _attn_params(k1, d_model),
            "enc_dec_attn": _attn_params(k2, d_model),
            "ffn": {
                "w1": (jax.random.normal(k3, (d_model, ffn_hidden), jnp.float32)
                       * 0.02).astype(jnp.bfloat16),
                "b1": jnp.zeros((ffn_hidden,), jnp.float32),
                "w2": (jax.random.normal(k4, (ffn_hidden, d_model), jnp.float32)
                       * 0.02).astype(jnp.bfloat16),
                "b2": jnp.zeros((d_model,), jnp.float32),
            },
            "ln1_g": jnp.ones((d_model,), jnp.float32),
            "ln1_b": jnp.zeros((d_model,), jnp.float32),
            "ln2_g": jnp.ones((d_model,), jnp.float32),
            "ln2_b": jnp.zeros((d_model,), jnp.float32),
            "ln3_g": jnp.ones((d_model,), jnp.float32),
            "ln3_b": jnp.zeros((d_model,), jnp.float32),
        }
        params.append(lp)
    return params


# ---------------------------------- Main --------------------------------------

if __name__ == "__main__":
    B, S_tgt, S_src = 2, 8, 8
    d_model, ffn_hidden, n_head, n_layer = 32, 64, 4, 2

    key = jax.random.PRNGKey(0)
    k_tgt, k_enc, k_par = jax.random.split(key, 3)

    tgt = jax.random.normal(k_tgt, (B, S_tgt, d_model), jnp.float32)
    enc_src = jax.random.normal(k_enc, (B, S_src, d_model), jnp.float32)

    # causal target mask [1, 1, S_tgt, S_tgt]; full source mask [B, 1, 1, S_src]
    tgt_mask = jnp.tril(jnp.ones((S_tgt, S_tgt), jnp.float32))[None, None]
    src_mask = jnp.ones((B, 1, 1, S_src), jnp.float32)

    params = init_decoder_params(k_par, n_layer, d_model, ffn_hidden)

    fwd = jax.jit(decoder_forward, static_argnums=(5,))
    out = fwd(tgt, enc_src, tgt_mask, src_mask, params, n_head)
    out = jax.block_until_ready(out)
    assert out.shape == (B, S_tgt, d_model)
    print("KERNEL_OK")
</pallas_src>

<mosaic_0001>
module attributes {stable_mosaic.version = 11 : i64} {
  func.func @_matmul_bias_kernel(%arg0: i32, %arg1: i32, %arg2: i32, %arg3: memref<16x32xbf16, #tpu.memory_space<vmem>>, %arg4: memref<32x64xbf16, #tpu.memory_space<vmem>>, %arg5: memref<1x64xf32, #tpu.memory_space<vmem>>, %arg6: memref<16x64xbf16, #tpu.memory_space<vmem>>, %arg7: memref<16x64xf32, #tpu.memory_space<vmem>>) attributes {dimension_semantics = [#tpu.dimension_semantics<parallel>, #tpu.dimension_semantics<parallel>, #tpu.dimension_semantics<arbitrary>], iteration_bounds = array<i64: 1, 1, 1>, scalar_prefetch = 0 : i64, scratch_operands = 1 : i64, tpu.core_type = #tpu.core_type<tc>, window_params = [{transform_indices = @transform_0, window_bounds = array<i64: 16, 32>}, {transform_indices = @transform_1, window_bounds = array<i64: 32, 64>}, {transform_indices = @transform_2, window_bounds = array<i64: 1, 64>}, {transform_indices = @transform_3, window_bounds = array<i64: 16, 64>}]} {
    %c0_i32 = arith.constant 0 : i32
    %0 = arith.cmpi eq, %arg2, %c0_i32 : i32
    %1 = arith.extui %0 : i1 to i32
    %c0_i32_0 = arith.constant 0 : i32
    %2 = arith.cmpi ne, %1, %c0_i32_0 : i32
    scf.if %2 {
      %cst_10 = arith.constant 0.000000e+00 : f32
      %12 = vector.broadcast %cst_10 : f32 to vector<16x64xf32>
      %c0_11 = arith.constant 0 : index
      %c0_12 = arith.constant 0 : index
      %13 = vector.load %arg7[%c0_11, %c0_12] : memref<16x64xf32, #tpu.memory_space<vmem>>, vector<16x64xf32>
      tpu.vector_store %arg7[%c0_11, %c0_12], %12 {strides = array<i32>} : memref<16x64xf32, #tpu.memory_space<vmem>>, vector<16x64xf32>,
    } else {
    }
    %c0 = arith.constant 0 : index
    %c0_1 = arith.constant 0 : index
    %3 = vector.load %arg7[%c0, %c0_1] : memref<16x64xf32, #tpu.memory_space<vmem>>, vector<16x64xf32>
    %c0_2 = arith.constant 0 : index
    %c0_3 = arith.constant 0 : index
    %4 = vector.load %arg3[%c0_2, %c0_3] : memref<16x32xbf16, #tpu.memory_space<vmem>>, vector<16x32xbf16>
    %c0_4 = arith.constant 0 : index
    %c0_5 = arith.constant 0 : index
    %5 = vector.load %arg4[%c0_4, %c0_5] : memref<32x64xbf16, #tpu.memory_space<vmem>>, vector<32x64xbf16>
    %cst = arith.constant dense<0.000000e+00> : vector<16x64xf32>
    %6 = tpu.matmul %4, %5, %cst {dimension_numbers = #tpu.dot_dimension_numbers<[1], [0], [0], [1], [0, 0, 1, 1], [], []>} : vector<16x32xbf16>, vector<32x64xbf16>, vector<16x64xf32> -> vector<16x64xf32>
    %7 = arith.addf %3, %6 : vector<16x64xf32>
    %c0_6 = arith.constant 0 : index
    %c0_7 = arith.constant 0 : index
    %8 = vector.load %arg7[%c0_6, %c0_7] : memref<16x64xf32, #tpu.memory_space<vmem>>, vector<16x64xf32>
    tpu.vector_store %arg7[%c0_6, %c0_7], %7 {strides = array<i32>} : memref<16x64xf32, #tpu.memory_space<vmem>>, vector<16x64xf32>,
    %c0_i32_8 = arith.constant 0 : i32
    %9 = arith.cmpi eq, %arg2, %c0_i32_8 : i32
    %10 = arith.extui %9 : i1 to i32
    %c0_i32_9 = arith.constant 0 : i32
    %11 = arith.cmpi ne, %10, %c0_i32_9 : i32
    scf.if %11 {
      %c0_10 = arith.constant 0 : index
      %c0_11 = arith.constant 0 : index
      %12 = vector.load %arg7[%c0_10, %c0_11] : memref<16x64xf32, #tpu.memory_space<vmem>>, vector<16x64xf32>
      %c0_12 = arith.constant 0 : index
      %c0_13 = arith.constant 0 : index
      %13 = vector.load %arg5[%c0_12, %c0_13] : memref<1x64xf32, #tpu.memory_space<vmem>>, vector<1x64xf32>
      %14 = vector.broadcast %13 : vector<1x64xf32> to vector<16x64xf32>
      %15 = arith.addf %12, %14 : vector<16x64xf32>
      %16 = arith.truncf %15 : vector<16x64xf32> to vector<16x64xbf16>
      %c0_14 = arith.constant 0 : index
      %c0_15 = arith.constant 0 : index
      %17 = vector.load %arg6[%c0_14, %c0_15] : memref<16x64xbf16, #tpu.memory_space<vmem>>, vector<16x64xbf16>
      tpu.vector_store %arg6[%c0_14, %c0_15], %16 {strides = array<i32>} : memref<16x64xbf16, #tpu.memory_space<vmem>>, vector<16x64xbf16>,
    } else {
    }
    return
  }
  func.func @transform_0(%arg0: i32, %arg1: i32, %arg2: i32) -> (i32, i32) {
    %c0_i32 = arith.constant 0 : i32
    return %arg0, %arg2 : i32, i32
  }
  func.func @transform_1(%arg0: i32, %arg1: i32, %arg2: i32) -> (i32, i32) {
    %c0_i32 = arith.constant 0 : i32
    return %arg2, %arg1 : i32, i32
  }
  func.func @transform_2(%arg0: i32, %arg1: i32, %arg2: i32) -> (i32, i32) {
    %c0_i32 = arith.constant 0 : i32
    %c0_i32_0 = arith.constant 0 : i32
    return %c0_i32, %arg1 : i32, i32
  }
  func.func @transform_3(%arg0: i32, %arg1: i32, %arg2: i32) -> (i32, i32) {
    %c0_i32 = arith.constant 0 : i32
    return %arg0, %arg1 : i32, i32
  }
}

module attributes {stable_mosaic.version = 11 : i64} {
  func.func @_matmul_bias_kernel(%arg0: i32, %arg1: i32, %arg2: i32, %arg3: memref<16x32xbf16, #tpu.memory_space<vmem>>, %arg4: memref<32x96xbf16, #tpu.memory_space<vmem>>, %arg5: memref<1x96xf32, #tpu.memory_space<vmem>>, %arg6: memref<16x96xbf16, #tpu.memory_space<vmem>>, %arg7: memref<16x96xf32, #tpu.memory_space<vmem>>) attributes {dimension_semantics = [#tpu.dimension_semantics<parallel>, #tpu.dimension_semantics<parallel>, #tpu.dimension_semantics<arbitrary>], iteration_bounds = array<i64: 1, 1, 1>, scalar_prefetch = 0 : i64, scratch_operands = 1 : i64, tpu.core_type = #tpu.core_type<tc>, window_params = [{transform_indices = @transform_0, window_bounds = array<i64: 16, 32>}, {transform_indices = @transform_1, window_bounds = array<i64: 32, 96>}, {transform_indices = @transform_2, window_bounds = array<i64: 1, 96>}, {transform_indices = @transform_3, window_bounds = array<i64: 16, 96>}]} {
    %c0_i32 = arith.constant 0 : i32
    %0 = arith.cmpi eq, %arg2, %c0_i32 : i32
    %1 = arith.extui %0 : i1 to i32
    %c0_i32_0 = arith.constant 0 : i32
    %2 = arith.cmpi ne, %1, %c0_i32_0 : i32
    scf.if %2 {
      %cst_10 = arith.constant 0.000000e+00 : f32
      %12 = vector.broadcast %cst_10 : f32 to vector<16x96xf32>
      %c0_11 = arith.constant 0 : index
      %c0_12 = arith.constant 0 : index
      %13 = vector.load %arg7[%c0_11, %c0_12] : memref<16x96xf32, #tpu.memory_space<vmem>>, vector<16x96xf32>
      tpu.vector_store %arg7[%c0_11, %c0_12], %12 {strides = array<i32>} : memref<16x96xf32, #tpu.memory_space<vmem>>, vector<16x96xf32>,
    } else {
    }
    %c0 = arith.constant 0 : index
    %c0_1 = arith.constant 0 : index
    %3 = vector.load %arg7[%c0, %c0_1] : memref<16x96xf32, #tpu.memory_space<vmem>>, vector<16x96xf32>
    %c0_2 = arith.constant 0 : index
    %c0_3 = arith.constant 0 : index
    %4 = vector.load %arg3[%c0_2, %c0_3] : memref<16x32xbf16, #tpu.memory_space<vmem>>, vector<16x32xbf16>
    %c0_4 = arith.constant 0 : index
    %c0_5 = arith.constant 0 : index
    %5 = vector.load %arg4[%c0_4, %c0_5] : memref<32x96xbf16, #tpu.memory_space<vmem>>, vector<32x96xbf16>
    %cst = arith.constant dense<0.000000e+00> : vector<16x96xf32>
    %6 = tpu.matmul %4, %5, %cst {dimension_numbers = #tpu.dot_dimension_numbers<[1], [0], [0], [1], [0, 0, 1, 1], [], []>} : vector<16x32xbf16>, vector<32x96xbf16>, vector<16x96xf32> -> vector<16x96xf32>
    %7 = arith.addf %3, %6 : vector<16x96xf32>
    %c0_6 = arith.constant 0 : index
    %c0_7 = arith.constant 0 : index
    %8 = vector.load %arg7[%c0_6, %c0_7] : memref<16x96xf32, #tpu.memory_space<vmem>>, vector<16x96xf32>
    tpu.vector_store %arg7[%c0_6, %c0_7], %7 {strides = array<i32>} : memref<16x96xf32, #tpu.memory_space<vmem>>, vector<16x96xf32>,
    %c0_i32_8 = arith.constant 0 : i32
    %9 = arith.cmpi eq, %arg2, %c0_i32_8 : i32
    %10 = arith.extui %9 : i1 to i32
    %c0_i32_9 = arith.constant 0 : i32
    %11 = arith.cmpi ne, %10, %c0_i32_9 : i32
    scf.if %11 {
      %c0_10 = arith.constant 0 : index
      %c0_11 = arith.constant 0 : index
      %12 = vector.load %arg7[%c0_10, %c0_11] : memref<16x96xf32, #tpu.memory_space<vmem>>, vector<16x96xf32>
      %c0_12 = arith.constant 0 : index
      %c0_13 = arith.constant 0 : index
      %13 = vector.load %arg5[%c0_12, %c0_13] : memref<1x96xf32, #tpu.memory_space<vmem>>, vector<1x96xf32>
      %14 = vector.broadcast %13 : vector<1x96xf32> to vector<16x96xf32>
      %15 = arith.addf %12, %14 : vector<16x96xf32>
      %16 = arith.truncf %15 : vector<16x96xf32> to vector<16x96xbf16>
      %c0_14 = arith.constant 0 : index
      %c0_15 = arith.constant 0 : index
      %17 = vector.load %arg6[%c0_14, %c0_15] : memref<16x96xbf16, #tpu.memory_space<vmem>>, vector<16x96xbf16>
      tpu.vector_store %arg6[%c0_14, %c0_15], %16 {strides = array<i32>} : memref<16x96xbf16, #tpu.memory_space<vmem>>, vector<16x96xbf16>,
    } else {
    }
    return
  }
  func.func @transform_0(%arg0: i32, %arg1: i32, %arg2: i32) -> (i32, i32) {
    %c0_i32 = arith.constant 0 : i32
    return %arg0, %arg2 : i32, i32
  }
  func.func @transform_1(%arg0: i32, %arg1: i32, %arg2: i32) -> (i32, i32) {
    %c0_i32 = arith.constant 0 : i32
    return %arg2, %arg1 : i32, i32
  }
  func.func @transform_2(%arg0: i32, %arg1: i32, %arg2: i32) -> (i32, i32) {
    %c0_i32 = arith.constant 0 : i32
    %c0_i32_0 = arith.constant 0 : i32
    return %c0_i32, %arg1 : i32, i32
  }
  func.func @transform_3(%arg0: i32, %arg1: i32, %arg2: i32) -> (i32, i32) {
    %c0_i32 = arith.constant 0 : i32
    return %arg0, %arg1 : i32, i32
  }
}

module attributes {stable_mosaic.version = 11 : i64} {
  func.func @_matmul_res_ln_kernel(%arg0: i32, %arg1: i32, %arg2: memref<16x32xbf16, #tpu.memory_space<vmem>>, %arg3: memref<32x32xbf16, #tpu.memory_space<vmem>>, %arg4: memref<1x32xf32, #tpu.memory_space<vmem>>, %arg5: memref<16x32xbf16, #tpu.memory_space<vmem>>, %arg6: memref<1x32xf32, #tpu.memory_space<vmem>>, %arg7: memref<1x32xf32, #tpu.memory_space<vmem>>, %arg8: memref<16x32xbf16, #tpu.memory_space<vmem>>, %arg9: memref<16x32xf32, #tpu.memory_space<vmem>>) attributes {dimension_semantics = [#tpu.dimension_semantics<parallel>, #tpu.dimension_semantics<arbitrary>], iteration_bounds = array<i64: 1, 1>, scalar_prefetch = 0 : i64, scratch_operands = 1 : i64, tpu.core_type = #tpu.core_type<tc>, window_params = [{transform_indices = @transform_0, window_bounds = array<i64: 16, 32>}, {transform_indices = @transform_1, window_bounds = array<i64: 32, 32>}, {pipeline_mode = #tpu.pipeline_mode<synchronous>, transform_indices = @transform_2, window_bounds = array<i64: 1, 32>}, {transform_indices = @transform_3, window_bounds = array<i64: 16, 32>}, {pipeline_mode = #tpu.pipeline_mode<synchronous>, transform_indices = @transform_4, window_bounds = array<i64: 1, 32>}, {pipeline_mode = #tpu.pipeline_mode<synchronous>, transform_indices = @transform_5, window_bounds = array<i64: 1, 32>}, {transform_indices = @transform_6, window_bounds = array<i64: 16, 32>}]} {
    %c0_i32 = arith.constant 0 : i32
    %0 = arith.cmpi eq, %arg1, %c0_i32 : i32
    %1 = arith.extui %0 : i1 to i32
    %c0_i32_0 = arith.constant 0 : i32
    %2 = arith.cmpi ne, %1, %c0_i32_0 : i32
    scf.if %2 {
      %cst_10 = arith.constant 0.000000e+00 : f32
      %12 = vector.broadcast %cst_10 : f32 to vector<16x32xf32>
      %c0_11 = arith.constant 0 : index
      %c0_12 = arith.constant 0 : index
      %13 = vector.load %arg9[%c0_11, %c0_12] : memref<16x32xf32, #tpu.memory_space<vmem>>, vector<16x32xf32>
      tpu.vector_store %arg9[%c0_11, %c0_12], %12 {strides = array<i32>} : memref<16x32xf32, #tpu.memory_space<vmem>>, vector<16x32xf32>,
    } else {
    }
    %c0 = arith.constant 0 : index
    %c0_1 = arith.constant 0 : index
    %3 = vector.load %arg9[%c0, %c0_1] : memref<16x32xf32, #tpu.memory_space<vmem>>, vector<16x32xf32>
    %c0_2 = arith.constant 0 : index
    %c0_3 = arith.constant 0 : index
    %4 = vector.load %arg2[%c0_2, %c0_3] : memref<16x32xbf16, #tpu.memory_space<vmem>>, vector<16x32xbf16>
    %c0_4 = arith.constant 0 : index
    %c0_5 = arith.constant 0 : index
    %5 = vector.load %arg3[%c0_4, %c0_5] : memref<32x32xbf16, #tpu.memory_space<vmem>>, vector<32x32xbf16>
    %cst = arith.constant dense<0.000000e+00> : vector<16x32xf32>
    %6 = tpu.matmul %4, %5, %cst {dimension_numbers = #tpu.dot_dimension_numbers<[1], [0], [0], [1], [0, 0, 1, 1], [], []>} : vector<16x32xbf16>, vector<32x32xbf16>, vector<16x32xf32> -> vector<16x32xf32>
    %7 = arith.addf %3, %6 : vector<16x32xf32>
    %c0_6 = arith.constant 0 : index
    %c0_7 = arith.constant 0 : index
    %8 = vector.load %arg9[%c0_6, %c0_7] : memref<16x32xf32, #tpu.memory_space<vmem>>, vector<16x32xf32>
    tpu.vector_store %arg9[%c0_6, %c0_7], %7 {strides = array<i32>} : memref<16x32xf32, #tpu.memory_space<vmem>>, vector<16x32xf32>,
    %c0_i32_8 = arith.constant 0 : i32
    %9 = arith.cmpi eq, %arg1, %c0_i32_8 : i32
    %10 = arith.extui %9 : i1 to i32
    %c0_i32_9 = arith.constant 0 : i32
    %11 = arith.cmpi ne, %10, %c0_i32_9 : i32
    scf.if %11 {
      %c0_10 = arith.constant 0 : index
      %c0_11 = arith.constant 0 : index
      %12 = vector.load %arg9[%c0_10, %c0_11] : memref<16x32xf32, #tpu.memory_space<vmem>>, vector<16x32xf32>
      %c0_12 = arith.constant 0 : index
      %c0_13 = arith.constant 0 : index
      %13 = vector.load %arg4[%c0_12, %c0_13] : memref<1x32xf32, #tpu.memory_space<vmem>>, vector<1x32xf32>
      %14 = vector.broadcast %13 : vector<1x32xf32> to vector<16x32xf32>
      %15 = arith.addf %12, %14 : vector<16x32xf32>
      %c0_14 = arith.constant 0 : index
      %c0_15 = arith.constant 0 : index
      %16 = vector.load %arg5[%c0_14, %c0_15] : memref<16x32xbf16, #tpu.memory_space<vmem>>, vector<16x32xbf16>
      %17 = arith.extf %16 : vector<16x32xbf16> to vector<16x32xf32>
      %18 = arith.addf %15, %17 : vector<16x32xf32>
      %cst_16 = arith.constant dense<0.000000e+00> : vector<16xf32>
      %19 = vector.multi_reduction <add>, %18, %cst_16 [1] : vector<16x32xf32> to vector<16xf32>
      %20 = vector.shape_cast %19 : vector<16xf32> to vector<16x1xf32>
      %cst_17 = arith.constant 3.200000e+01 : f32
      %21 = vector.broadcast %cst_17 : f32 to vector<16x1xf32>
      %22 = arith.divf %20, %21 : vector<16x1xf32>
      %23 = vector.broadcast %22 : vector<16x1xf32> to vector<16x32xf32>
      %24 = arith.subf %18, %23 : vector<16x32xf32>
      %25 = arith.mulf %24, %24 : vector<16x32xf32>
      %cst_18 = arith.constant dense<0.000000e+00> : vector<16xf32>
      %26 = vector.multi_reduction <add>, %25, %cst_18 [1] : vector<16x32xf32> to vector<16xf32>
      %27 = vector.shape_cast %26 : vector<16xf32> to vector<16x1xf32>
      %cst_19 = arith.constant 3.200000e+01 : f32
      %28 = vector.broadcast %cst_19 : f32 to vector<16x1xf32>
      %29 = arith.divf %27, %28 : vector<16x1xf32>
      %30 = vector.broadcast %22 : vector<16x1xf32> to vector<16x32xf32>
      %31 = arith.subf %18, %30 : vector<16x32xf32>
      %cst_20 = arith.constant 9.99999996E-13 : f32
      %32 = vector.broadcast %cst_20 : f32 to vector<16x1xf32>
      %33 = arith.addf %29, %32 : vector<16x1xf32>
      %34 = math.rsqrt %33 : vector<16x1xf32>
      %35 = vector.broadcast %34 : vector<16x1xf32> to vector<16x32xf32>
      %36 = arith.mulf %31, %35 : vector<16x32xf32>
      %c0_21 = arith.constant 0 : index
      %c0_22 = arith.constant 0 : index
      %37 = vector.load %arg6[%c0_21, %c0_22] : memref<1x32xf32, #tpu.memory_space<vmem>>, vector<1x32xf32>
      %38 = vector.broadcast %37 : vector<1x32xf32> to vector<16x32xf32>
      %39 = arith.mulf %38, %36 : vector<16x32xf32>
      %c0_23 = arith.constant 0 : index
      %c0_24 = arith.constant 0 : index
      %40 = vector.load %arg7[%c0_23, %c0_24] : memref<1x32xf32, #tpu.memory_space<vmem>>, vector<1x32xf32>
      %41 = vector.broadcast %40 : vector<1x32xf32> to vector<16x32xf32>
      %42 = arith.addf %39, %41 : vector<16x32xf32>
      %43 = arith.truncf %42 : vector<16x32xf32> to vector<16x32xbf16>
      %c0_25 = arith.constant 0 : index
      %c0_26 = arith.constant 0 : index
      %44 = vector.load %arg8[%c0_25, %c0_26] : memref<16x32xbf16, #tpu.memory_space<vmem>>, vector<16x32xbf16>
      tpu.vector_store %arg8[%c0_25, %c0_26], %43 {strides = array<i32>} : memref<16x32xbf16, #tpu.memory_space<vmem>>, vector<16x32xbf16>,
    } else {
    }
    return
  }
  func.func @transform_0(%arg0: i32, %arg1: i32) -> (i32, i32) {
    %c0_i32 = arith.constant 0 : i32
    return %arg0, %arg1 : i32, i32
  }
  func.func @transform_1(%arg0: i32, %arg1: i32) -> (i32, i32) {
    %c0_i32 = arith.constant 0 : i32
    %c0_i32_0 = arith.constant 0 : i32
    return %arg1, %c0_i32 : i32, i32
  }
  func.func @transform_2(%arg0: i32, %arg1: i32) -> (i32, i32) {
    %c0_i32 = arith.constant 0 : i32
    %c0_i32_0 = arith.constant 0 : i32
    %c0_i32_1 = arith.constant 0 : i32
    return %c0_i32, %c0_i32_0 : i32, i32
  }
  func.func @transform_3(%arg0: i32, %arg1: i32) -> (i32, i32) {
    %c0_i32 = arith.constant 0 : i32
    %c0_i32_0 = arith.constant 0 : i32
    return %arg0, %c0_i32 : i32, i32
  }
  func.func @transform_4(%arg0: i32, %arg1: i32) -> (i32, i32) {
    %c0_i32 = arith.constant 0 : i32
    %c0_i32_0 = arith.constant 0 : i32
    %c0_i32_1 = arith.constant 0 : i32
    return %c0_i32, %c0_i32_0 : i32, i32
  }
  func.func @transform_5(%arg0: i32, %arg1: i32) -> (i32, i32) {
    %c0_i32 = arith.constant 0 : i32
    %c0_i32_0 = arith.constant 0 : i32
    %c0_i32_1 = arith.constant 0 : i32
    return %c0_i32, %c0_i32_0 : i32, i32
  }
  func.func @transform_6(%arg0: i32, %arg1: i32) -> (i32, i32) {
    %c0_i32 = arith.constant 0 : i32
    %c0_i32_0 = arith.constant 0 : i32
    return %arg0, %c0_i32 : i32, i32
  }
}

module attributes {stable_mosaic.version = 11 : i64} {
  func.func @_mha_kernel(%arg0: i32, %arg1: i32, %arg2: i32, %arg3: memref<1x8x32xbf16, #tpu.memory_space<vmem>>, %arg4: memref<1x8x64xbf16, #tpu.memory_space<vmem>>, %arg5: memref<1x8x8xf32, #tpu.memory_space<vmem>>, %arg6: memref<1x8x32xbf16, #tpu.memory_space<vmem>>, %arg7: memref<4x8x1xf32, #tpu.memory_space<vmem>>, %arg8: memref<4x8x1xf32, #tpu.memory_space<vmem>>, %arg9: memref<4x8x8xf32, #tpu.memory_space<vmem>>) attributes {dimension_semantics = [#tpu.dimension_semantics<parallel>, #tpu.dimension_semantics<parallel>, #tpu.dimension_semantics<arbitrary>], iteration_bounds = array<i64: 2, 1, 1>, scalar_prefetch = 0 : i64, scratch_operands = 3 : i64, tpu.core_type = #tpu.core_type<tc>, window_params = [{transform_indices = @transform_0, window_bounds = array<i64: 1, 8, 32>}, {transform_indices = @transform_1, window_bounds = array<i64: 1, 8, 64>}, {transform_indices = @transform_2, window_bounds = array<i64: 1, 8, 8>}, {transform_indices = @transform_3, window_bounds = array<i64: 1, 8, 32>}]} {
    %c0_i32 = arith.constant 0 : i32
    %0 = arith.cmpi eq, %arg2, %c0_i32 : i32
    %1 = arith.extui %0 : i1 to i32
    %c0_i32_0 = arith.constant 0 : i32
    %2 = arith.cmpi ne, %1, %c0_i32_0 : i32
    scf.if %2 {
      %cst_104 = arith.constant -1.000000e+30 : f32
      %174 = vector.broadcast %cst_104 : f32 to vector<4x8x1xf32>
      %c0_105 = arith.constant 0 : index
      %c0_106 = arith.constant 0 : index
      %c0_107 = arith.constant 0 : index
      %175 = vector.load %arg7[%c0_105, %c0_106, %c0_107] : memref<4x8x1xf32, #tpu.memory_space<vmem>>, vector<4x8x1xf32>
      tpu.vector_store %arg7[%c0_105, %c0_106, %c0_107], %174 {strides = array<i32>} : memref<4x8x1xf32, #tpu.memory_space<vmem>>, vector<4x8x1xf32>,
      %cst_108 = arith.constant 0.000000e+00 : f32
      %176 = vector.broadcast %cst_108 : f32 to vector<4x8x1xf32>
      %c0_109 = arith.constant 0 : index
      %c0_110 = arith.constant 0 : index
      %c0_111 = arith.constant 0 : index
      %177 = vector.load %arg8[%c0_109, %c0_110, %c0_111] : memref<4x8x1xf32, #tpu.memory_space<vmem>>, vector<4x8x1xf32>
      tpu.vector_store %arg8[%c0_109, %c0_110, %c0_111], %176 {strides = array<i32>} : memref<4x8x1xf32, #tpu.memory_space<vmem>>, vector<4x8x1xf32>,
      %cst_112 = arith.constant 0.000000e+00 : f32
      %178 = vector.broadcast %cst_112 : f32 to vector<4x8x8xf32>
      %c0_113 = arith.constant 0 : index
      %c0_114 = arith.constant 0 : index
      %c0_115 = arith.constant 0 : index
      %179 = vector.load %arg9[%c0_113, %c0_114, %c0_115] : memref<4x8x8xf32, #tpu.memory_space<vmem>>, vector<4x8x8xf32>
      tpu.vector_store %arg9[%c0_113, %c0_114, %c0_115], %178 {strides = array<i32>} : memref<4x8x8xf32, #tpu.memory_space<vmem>>, vector<4x8x8xf32>,
    } else {
    }
    %c0 = arith.constant 0 : index
    %c0_1 = arith.constant 0 : index
    %c0_2 = arith.constant 0 : index
    %3 = vector.load %arg3[%c0, %c0_1, %c0_2] : memref<1x8x32xbf16, #tpu.memory_space<vmem>>, vector<1x8x32xbf16>
    %4 = vector.shape_cast %3 : vector<1x8x32xbf16> to vector<8x32xbf16>
    %c0_3 = arith.constant 0 : index
    %c0_4 = arith.constant 0 : index
    %c0_5 = arith.constant 0 : index
    %5 = vector.load %arg4[%c0_3, %c0_4, %c0_5] : memref<1x8x64xbf16, #tpu.memory_space<vmem>>, vector<1x8x64xbf16>
    %6 = vector.shape_cast %5 : vector<1x8x64xbf16> to vector<8x64xbf16>
    %c0_6 = arith.constant 0 : index
    %c0_7 = arith.constant 0 : index
    %c0_8 = arith.constant 0 : index
    %7 = vector.load %arg5[%c0_6, %c0_7, %c0_8] : memref<1x8x8xf32, #tpu.memory_space<vmem>>, vector<1x8x8xf32>
    %8 = vector.shape_cast %7 : vector<1x8x8xf32> to vector<8x8xf32>
    %cst = arith.constant 0.000000e+00 : f32
    %9 = vector.broadcast %cst : f32 to vector<8x8xf32>
    %10 = arith.cmpf oeq, %8, %9 : vector<8x8xf32>
    %11 = vector.extract_strided_slice %4 {offsets = [0, 0], sizes = [8, 8], strides = [1, 1]} : vector<8x32xbf16> to vector<8x8xbf16>
    %12 = vector.extract_strided_slice %6 {offsets = [0, 0], sizes = [8, 8], strides = [1, 1]} : vector<8x64xbf16> to vector<8x8xbf16>
    %13 = vector.extract_strided_slice %6 {offsets = [0, 32], sizes = [8, 8], strides = [1, 1]} : vector<8x64xbf16> to vector<8x8xbf16>
    %cst_9 = arith.constant dense<0.000000e+00> : vector<8x8xf32>
    %14 = tpu.matmul %11, %12, %cst_9 {dimension_numbers = #tpu.dot_dimension_numbers<[1], [1], [0], [0], [0, 0, 1, 0], [], []>} : vector<8x8xbf16>, vector<8x8xbf16>, vector<8x8xf32> -> vector<8x8xf32>
    %cst_10 = arith.constant 0.353553385 : f32
    %15 = vector.broadcast %cst_10 : f32 to vector<8x8xf32>
    %16 = arith.mulf %14, %15 : vector<8x8xf32>
    %cst_11 = arith.constant -1.000000e+09 : f32
    %17 = vector.broadcast %cst_11 : f32 to vector<8x8xf32>
    %18 = arith.select %10, %17, %16 : vector<8x8xi1>, vector<8x8xf32>
    %c0_12 = arith.constant 0 : index
    %c0_13 = arith.constant 0 : index
    %c0_14 = arith.constant 0 : index
    %19 = vector.load %arg7[%c0_12, %c0_13, %c0_14] : memref<4x8x1xf32, #tpu.memory_space<vmem>>, vector<1x8x1xf32>
    %20 = vector.shape_cast %19 : vector<1x8x1xf32> to vector<8x1xf32>
    %cst_15 = arith.constant dense<0xFF800000> : vector<8xf32>
    %21 = vector.multi_reduction <maximumf>, %18, %cst_15 [1] : vector<8x8xf32> to vector<8xf32>
    %22 = vector.shape_cast %21 : vector<8xf32> to vector<8x1xf32>
    %23 = arith.maximumf %20, %22 : vector<8x1xf32>
    %24 = arith.subf %20, %23 : vector<8x1xf32>
    %25 = math.exp %24 : vector<8x1xf32>
    %26 = vector.broadcast %23 : vector<8x1xf32> to vector<8x8xf32>
    %27 = arith.subf %18, %26 : vector<8x8xf32>
    %28 = math.exp %27 : vector<8x8xf32>
    %c0_16 = arith.constant 0 : index
    %c0_17 = arith.constant 0 : index
    %c0_18 = arith.constant 0 : index
    %29 = vector.load %arg8[%c0_16, %c0_17, %c0_18] : memref<4x8x1xf32, #tpu.memory_space<vmem>>, vector<1x8x1xf32>
    %30 = vector.shape_cast %29 : vector<1x8x1xf32> to vector<8x1xf32>
    %31 = arith.mulf %25, %30 : vector<8x1xf32>
    %cst_19 = arith.constant dense<0.000000e+00> : vector<8xf32>
    %32 = vector.multi_reduction <add>, %28, %cst_19 [1] : vector<8x8xf32> to vector<8xf32>
    %33 = vector.shape_cast %32 : vector<8xf32> to vector<8x1xf32>
    %34 = arith.addf %31, %33 : vector<8x1xf32>
    %c0_20 = arith.constant 0 : index
    %c0_21 = arith.constant 0 : index
    %c0_22 = arith.constant 0 : index
    %35 = vector.load %arg8[%c0_20, %c0_21, %c0_22] : memref<4x8x1xf32, #tpu.memory_space<vmem>>, vector<1x8x1xf32>
    %36 = vector.shape_cast %35 : vector<1x8x1xf32> to vector<8x1xf32>
    %37 = vector.shape_cast %34 : vector<8x1xf32> to vector<1x8x1xf32>
    tpu.vector_store %arg8[%c0_20, %c0_21, %c0_22], %37 {strides = array<i32>} : memref<4x8x1xf32, #tpu.memory_space<vmem>>, vector<1x8x1xf32>,
    %c0_23 = arith.constant 0 : index
    %c0_24 = arith.constant 0 : index
    %c0_25 = arith.constant 0 : index
    %38 = vector.load %arg9[%c0_23, %c0_24, %c0_25] : memref<4x8x8xf32, #tpu.memory_space<vmem>>, vector<1x8x8xf32>
    %39 = vector.shape_cast %38 : vector<1x8x8xf32> to vector<8x8xf32>
    %40 = vector.broadcast %25 : vector<8x1xf32> to vector<8x8xf32>
    %41 = arith.mulf %40, %39 : vector<8x8xf32>
    %42 = arith.truncf %28 : vector<8x8xf32> to vector<8x8xbf16>
    %cst_26 = arith.constant dense<0.000000e+00> : vector<8x8xf32>
    %43 = tpu.matmul %42, %13, %cst_26 {dimension_numbers = #tpu.dot_dimension_numbers<[1], [0], [0], [1], [0, 0, 1, 1], [], []>} : vector<8x8xbf16>, vector<8x8xbf16>, vector<8x8xf32> -> vector<8x8xf32>
    %44 = arith.addf %41, %43 : vector<8x8xf32>
    %c0_27 = arith.constant 0 : index
    %c0_28 = arith.constant 0 : index
    %c0_29 = arith.constant 0 : index
    %45 = vector.load %arg9[%c0_27, %c0_28, %c0_29] : memref<4x8x8xf32, #tpu.memory_space<vmem>>, vector<1x8x8xf32>
    %46 = vector.shape_cast %45 : vector<1x8x8xf32> to vector<8x8xf32>
    %47 = vector.shape_cast %44 : vector<8x8xf32> to vector<1x8x8xf32>
    tpu.vector_store %arg9[%c0_27, %c0_28, %c0_29], %47 {strides = array<i32>} : memref<4x8x8xf32, #tpu.memory_space<vmem>>, vector<1x8x8xf32>,
    %c0_30 = arith.constant 0 : index
    %c0_31 = arith.constant 0 : index
    %c0_32 = arith.constant 0 : index
    %48 = vector.load %arg7[%c0_30, %c0_31, %c0_32] : memref<4x8x1xf32, #tpu.memory_space<vmem>>, vector<1x8x1xf32>
    %49 = vector.shape_cast %48 : vector<1x8x1xf32> to vector<8x1xf32>
    %50 = vector.shape_cast %23 : vector<8x1xf32> to vector<1x8x1xf32>
    tpu.vector_store %arg7[%c0_30, %c0_31, %c0_32], %50 {strides = array<i32>} : memref<4x8x1xf32, #tpu.memory_space<vmem>>, vector<1x8x1xf32>,
    %51 = vector.extract_strided_slice %4 {offsets = [0, 8], sizes = [8, 8], strides = [1, 1]} : vector<8x32xbf16> to vector<8x8xbf16>
    %52 = vector.extract_strided_slice %6 {offsets = [0, 8], sizes = [8, 8], strides = [1, 1]} : vector<8x64xbf16> to vector<8x8xbf16>
    %53 = vector.extract_strided_slice %6 {offsets = [0, 40], sizes = [8, 8], strides = [1, 1]} : vector<8x64xbf16> to vector<8x8xbf16>
    %cst_33 = arith.constant dense<0.000000e+00> : vector<8x8xf32>
    %54 = tpu.matmul %51, %52, %cst_33 {dimension_numbers = #tpu.dot_dimension_numbers<[1], [1], [0], [0], [0, 0, 1, 0], [], []>} : vector<8x8xbf16>, vector<8x8xbf16>, vector<8x8xf32> -> vector<8x8xf32>
    %cst_34 = arith.constant 0.353553385 : f32
    %55 = vector.broadcast %cst_34 : f32 to vector<8x8xf32>
    %56 = arith.mulf %54, %55 : vector<8x8xf32>
    %cst_35 = arith.constant -1.000000e+09 : f32
    %57 = vector.broadcast %cst_35 : f32 to vector<8x8xf32>
    %58 = arith.select %10, %57, %56 : vector<8x8xi1>, vector<8x8xf32>
    %c1 = arith.constant 1 : index
    %c0_36 = arith.constant 0 : index
    %c0_37 = arith.constant 0 : index
    %59 = vector.load %arg7[%c1, %c0_36, %c0_37] : memref<4x8x1xf32, #tpu.memory_space<vmem>>, vector<1x8x1xf32>
    %60 = vector.shape_cast %59 : vector<1x8x1xf32> to vector<8x1xf32>
    %cst_38 = arith.constant dense<0xFF800000> : vector<8xf32>
    %61 = vector.multi_reduction <maximumf>, %58, %cst_38 [1] : vector<8x8xf32> to vector<8xf32>
    %62 = vector.shape_cast %61 : vector<8xf32> to vector<8x1xf32>
    %63 = arith.maximumf %60, %62 : vector<8x1xf32>
    %64 = arith.subf %60, %63 : vector<8x1xf32>
    %65 = math.exp %64 : vector<8x1xf32>
    %66 = vector.broadcast %63 : vector<8x1xf32> to vector<8x8xf32>
    %67 = arith.subf %58, %66 : vector<8x8xf32>
    %68 = math.exp %67 : vector<8x8xf32>
    %c1_39 = arith.constant 1 : index
    %c0_40 = arith.constant 0 : index
    %c0_41 = arith.constant 0 : index
    %69 = vector.load %arg8[%c1_39, %c0_40, %c0_41] : memref<4x8x1xf32, #tpu.memory_space<vmem>>, vector<1x8x1xf32>
    %70 = vector.shape_cast %69 : vector<1x8x1xf32> to vector<8x1xf32>
    %71 = arith.mulf %65, %70 : vector<8x1xf32>
    %cst_42 = arith.constant dense<0.000000e+00> : vector<8xf32>
    %72 = vector.multi_reduction <add>, %68, %cst_42 [1] : vector<8x8xf32> to vector<8xf32>
    %73 = vector.shape_cast %72 : vector<8xf32> to vector<8x1xf32>
    %74 = arith.addf %71, %73 : vector<8x1xf32>
    %c1_43 = arith.constant 1 : index
    %c0_44 = arith.constant 0 : index
    %c0_45 = arith.constant 0 : index
    %75 = vector.load %arg8[%c1_43, %c0_44, %c0_45] : memref<4x8x1xf32, #tpu.memory_space<vmem>>, vector<1x8x1xf32>
    %76 = vector.shape_cast %75 : vector<1x8x1xf32> to vector<8x1xf32>
    %77 = vector.shape_cast %74 : vector<8x1xf32> to vector<1x8x1xf32>
    tpu.vector_store %arg8[%c1_43, %c0_44, %c0_45], %77 {strides = array<i32>} : memref<4x8x1xf32, #tpu.memory_space<vmem>>, vector<1x8x1xf32>,
    %c1_46 = arith.constant 1 : index
    %c0_47 = arith.constant 0 : index
    %c0_48 = arith.constant 0 : index
    %78 = vector.load %arg9[%c1_46, %c0_47, %c0_48] : memref<4x8x8xf32, #tpu.memory_space<vmem>>, vector<1x8x8xf32>
    %79 = vector.shape_cast %78 : vector<1x8x8xf32> to vector<8x8xf32>
    %80 = vector.broadcast %65 : vector<8x1xf32> to vector<8x8xf32>
    %81 = arith.mulf %80, %79 : vector<8x8xf32>
    %82 = arith.truncf %68 : vector<8x8xf32> to vector<8x8xbf16>
    %cst_49 = arith.constant dense<0.000000e+00> : vector<8x8xf32>
    %83 = tpu.matmul %82, %53, %cst_49 {dimension_numbers = #tpu.dot_dimension_numbers<[1], [0], [0], [1], [0, 0, 1, 1], [], []>} : vector<8x8xbf16>, vector<8x8xbf16>, vector<8x8xf32> -> vector<8x8xf32>
    %84 = arith.addf %81, %83 : vector<8x8xf32>
    %c1_50 = arith.constant 1 : index
    %c0_51 = arith.constant 0 : index
    %c0_52 = arith.constant 0 : index
    %85 = vector.load %arg9[%c1_50, %c0_51, %c0_52] : memref<4x8x8xf32, #tpu.memory_space<vmem>>, vector<1x8x8xf32>
    %86 = vector.shape_cast %85 : vector<1x8x8xf32> to vector<8x8xf32>
    %87 = vector.shape_cast %84 : vector<8x8xf32> to vector<1x8x8xf32>
    tpu.vector_store %arg9[%c1_50, %c0_51, %c0_52], %87 {strides = array<i32>} : memref<4x8x8xf32, #tpu.memory_space<vmem>>, vector<1x8x8xf32>,
    %c1_53 = arith.constant 1 : index
    %c0_54 = arith.constant 0 : index
    %c0_55 = arith.constant 0 : index
    %88 = vector.load %arg7[%c1_53, %c0_54, %c0_55] : memref<4x8x1xf32, #tpu.memory_space<vmem>>, vector<1x8x1xf32>
    %89 = vector.shape_cast %88 : vector<1x8x1xf32> to vector<8x1xf32>
    %90 = vector.shape_cast %63 : vector<8x1xf32> to vector<1x8x1xf32>
    tpu.vector_store %arg7[%c1_53, %c0_54, %c0_55], %90 {strides = array<i32>} : memref<4x8x1xf32, #tpu.memory_space<vmem>>, vector<1x8x1xf32>,
    %91 = vector.extract_strided_slice %4 {offsets = [0, 16], sizes = [8, 8], strides = [1, 1]} : vector<8x32xbf16> to vector<8x8xbf16>
    %92 = vector.extract_strided_slice %6 {offsets = [0, 16], sizes = [8, 8], strides = [1, 1]} : vector<8x64xbf16> to vector<8x8xbf16>
    %93 = vector.extract_strided_slice %6 {offsets = [0, 48], sizes = [8, 8], strides = [1, 1]} : vector<8x64xbf16> to vector<8x8xbf16>
    %cst_56 = arith.constant dense<0.000000e+00> : vector<8x8xf32>
    %94 = tpu.matmul %91, %92, %cst_56 {dimension_numbers = #tpu.dot_dimension_numbers<[1], [1], [0], [0], [0, 0, 1, 0], [], []>} : vector<8x8xbf16>, vector<8x8xbf16>, vector<8x8xf32> -> vector<8x8xf32>
    %cst_57 = arith.constant 0.353553385 : f32
    %95 = vector.broadcast %cst_57 : f32 to vector<8x8xf32>
    %96 = arith.mulf %94, %95 : vector<8x8xf32>
    %cst_58 = arith.constant -1.000000e+09 : f32
    %97 = vector.broadcast %cst_58 : f32 to vector<8x8xf32>
    %98 = arith.select %10, %97, %96 : vector<8x8xi1>, vector<8x8xf32>
    %c2 = arith.constant 2 : index
    %c0_59 = arith.constant 0 : index
    %c0_60 = arith.constant 0 : index
    %99 = vector.load %arg7[%c2, %c0_59, %c0_60] : memref<4x8x1xf32, #tpu.memory_space<vmem>>, vector<1x8x1xf32>
    %100 = vector.shape_cast %99 : vector<1x8x1xf32> to vector<8x1xf32>
    %cst_61 = arith.constant dense<0xFF800000> : vector<8xf32>
    %101 = vector.multi_reduction <maximumf>, %98, %cst_61 [1] : vector<8x8xf32> to vector<8xf32>
    %102 = vector.shape_cast %101 : vector<8xf32> to vector<8x1xf32>
    %103 = arith.maximumf %100, %102 : vector<8x1xf32>
    %104 = arith.subf %100, %103 : vector<8x1xf32>
    %105 = math.exp %104 : vector<8x1xf32>
    %106 = vector.broadcast %103 : vector<8x1xf32> to vector<8x8xf32>
    %107 = arith.subf %98, %106 : vector<8x8xf32>
    %108 = math.exp %107 : vector<8x8xf32>
    %c2_62 = arith.constant 2 : index
    %c0_63 = arith.constant 0 : index
    %c0_64 = arith.constant 0 : index
    %109 = vector.load %arg8[%c2_62, %c0_63, %c0_64] : memref<4x8x1xf32, #tpu.memory_space<vmem>>, vector<1x8x1xf32>
    %110 = vector.shape_cast %109 : vector<1x8x1xf32> to vector<8x1xf32>
    %111 = arith.mulf %105, %110 : vector<8x1xf32>
    %cst_65 = arith.constant dense<0.000000e+00> : vector<8xf32>
    %112 = vector.multi_reduction <add>, %108, %cst_65 [1] : vector<8x8xf32> to vector<8xf32>
    %113 = vector.shape_cast %112 : vector<8xf32> to vector<8x1xf32>
    %114 = arith.addf %111, %113 : vector<8x1xf32>
    %c2_66 = arith.constant 2 : index
    %c0_67 = arith.constant 0 : index
    %c0_68 = arith.constant 0 : index
    %115 = vector.load %arg8[%c2_66, %c0_67, %c0_68] : memref<4x8x1xf32, #tpu.memory_space<vmem>>, vector<1x8x1xf32>
    %116 = vector.shape_cast %115 : vector<1x8x1xf32> to vector<8x1xf32>
    %117 = vector.shape_cast %114 : vector<8x1xf32> to vector<1x8x1xf32>
    tpu.vector_store %arg8[%c2_66, %c0_67, %c0_68], %117 {strides = array<i32>} : memref<4x8x1xf32, #tpu.memory_space<vmem>>, vector<1x8x1xf32>,
    %c2_69 = arith.constant 2 : index
    %c0_70 = arith.constant 0 : index
    %c0_71 = arith.constant 0 : index
    %118 = vector.load %arg9[%c2_69, %c0_70, %c0_71] : memref<4x8x8xf32, #tpu.memory_space<vmem>>, vector<1x8x8xf32>
    %119 = vector.shape_cast %118 : vector<1x8x8xf32> to vector<8x8xf32>
    %120 = vector.broadcast %105 : vector<8x1xf32> to vector<8x8xf32>
    %121 = arith.mulf %120, %119 : vector<8x8xf32>
    %122 = arith.truncf %108 : vector<8x8xf32> to vector<8x8xbf16>
    %cst_72 = arith.constant dense<0.000000e+00> : vector<8x8xf32>
    %123 = tpu.matmul %122, %93, %cst_72 {dimension_numbers = #tpu.dot_dimension_numbers<[1], [0], [0], [1], [0, 0, 1, 1], [], []>} : vector<8x8xbf16>, vector<8x8xbf16>, vector<8x8xf32> -> vector<8x8xf32>
    %124 = arith.addf %121, %123 : vector<8x8xf32>
    %c2_73 = arith.constant 2 : index
    %c0_74 = arith.constant 0 : index
    %c0_75 = arith.constant 0 : index
    %125 = vector.load %arg9[%c2_73, %c0_74, %c0_75] : memref<4x8x8xf32, #tpu.memory_space<vmem>>, vector<1x8x8xf32>
    %126 = vector.shape_cast %125 : vector<1x8x8xf32> to vector<8x8xf32>
    %127 = vector.shape_cast %124 : vector<8x8xf32> to vector<1x8x8xf32>
    tpu.vector_store %arg9[%c2_73, %c0_74, %c0_75], %127 {strides = array<i32>} : memref<4x8x8xf32, #tpu.memory_space<vmem>>, vector<1x8x8xf32>,
    %c2_76 = arith.constant 2 : index
    %c0_77 = arith.constant 0 : index
    %c0_78 = arith.constant 0 : index
    %128 = vector.load %arg7[%c2_76, %c0_77, %c0_78] : memref<4x8x1xf32, #tpu.memory_space<vmem>>, vector<1x8x1xf32>
    %129 = vector.shape_cast %128 : vector<1x8x1xf32> to vector<8x1xf32>
    %130 = vector.shape_cast %103 : vector<8x1xf32> to vector<1x8x1xf32>
    tpu.vector_store %arg7[%c2_76, %c0_77, %c0_78], %130 {strides = array<i32>} : memref<4x8x1xf32, #tpu.memory_space<vmem>>, vector<1x8x1xf32>,
    %131 = vector.extract_strided_slice %4 {offsets = [0, 24], sizes = [8, 8], strides = [1, 1]} : vector<8x32xbf16> to vector<8x8xbf16>
    %132 = vector.extract_strided_slice %6 {offsets = [0, 24], sizes = [8, 8], strides = [1, 1]} : vector<8x64xbf16> to vector<8x8xbf16>
    %133 = vector.extract_strided_slice %6 {offsets = [0, 56], sizes = [8, 8], strides = [1, 1]} : vector<8x64xbf16> to vector<8x8xbf16>
    %cst_79 = arith.constant dense<0.000000e+00> : vector<8x8xf32>
    %134 = tpu.matmul %131, %132, %cst_79 {dimension_numbers = #tpu.dot_dimension_numbers<[1], [1], [0], [0], [0, 0, 1, 0], [], []>} : vector<8x8xbf16>, vector<8x8xbf16>, vector<8x8xf32> -> vector<8x8xf32>
    %cst_80 = arith.constant 0.353553385 : f32
    %135 = vector.broadcast %cst_80 : f32 to vector<8x8xf32>
    %136 = arith.mulf %134, %135 : vector<8x8xf32>
    %cst_81 = arith.constant -1.000000e+09 : f32
    %137 = vector.broadcast %cst_81 : f32 to vector<8x8xf32>
    %138 = arith.select %10, %137, %136 : vector<8x8xi1>, vector<8x8xf32>
    %c3 = arith.constant 3 : index
    %c0_82 = arith.constant 0 : index
    %c0_83 = arith.constant 0 : index
    %139 = vector.load %arg7[%c3, %c0_82, %c0_83] : memref<4x8x1xf32, #tpu.memory_space<vmem>>, vector<1x8x1xf32>
    %140 = vector.shape_cast %139 : vector<1x8x1xf32> to vector<8x1xf32>
    %cst_84 = arith.constant dense<0xFF800000> : vector<8xf32>
    %141 = vector.multi_reduction <maximumf>, %138, %cst_84 [1] : vector<8x8xf32> to vector<8xf32>
    %142 = vector.shape_cast %141 : vector<8xf32> to vector<8x1xf32>
    %143 = arith.maximumf %140, %142 : vector<8x1xf32>
    %144 = arith.subf %140, %143 : vector<8x1xf32>
    %145 = math.exp %144 : vector<8x1xf32>
    %146 = vector.broadcast %143 : vector<8x1xf32> to vector<8x8xf32>
    %147 = arith.subf %138, %146 : vector<8x8xf32>
    %148 = math.exp %147 : vector<8x8xf32>
    %c3_85 = arith.constant 3 : index
    %c0_86 = arith.constant 0 : index
    %c0_87 = arith.constant 0 : index
    %149 = vector.load %arg8[%c3_85, %c0_86, %c0_87] : memref<4x8x1xf32, #tpu.memory_space<vmem>>, vector<1x8x1xf32>
    %150 = vector.shape_cast %149 : vector<1x8x1xf32> to vector<8x1xf32>
    %151 = arith.mulf %145, %150 : vector<8x1xf32>
    %cst_88 = arith.constant dense<0.000000e+00> : vector<8xf32>
    %152 = vector.multi_reduction <add>, %148, %cst_88 [1] : vector<8x8xf32> to vector<8xf32>
    %153 = vector.shape_cast %152 : vector<8xf32> to vector<8x1xf32>
    %154 = arith.addf %151, %153 : vector<8x1xf32>
    %c3_89 = arith.constant 3 : index
    %c0_90 = arith.constant 0 : index
    %c0_91 = arith.constant 0 : index
    %155 = vector.load %arg8[%c3_89, %c0_90, %c0_91] : memref<4x8x1xf32, #tpu.memory_space<vmem>>, vector<1x8x1xf32>
    %156 = vector.shape_cast %155 : vector<1x8x1xf32> to vector<8x1xf32>
    %157 = vector.shape_cast %154 : vector<8x1xf32> to vector<1x8x1xf32>
    tpu.vector_store %arg8[%c3_89, %c0_90, %c0_91], %157 {strides = array<i32>} : memref<4x8x1xf32, #tpu.memory_space<vmem>>, vector<1x8x1xf32>,
    %c3_92 = arith.constant 3 : index
    %c0_93 = arith.constant 0 : index
    %c0_94 = arith.constant 0 : index
    %158 = vector.load %arg9[%c3_92, %c0_93, %c0_94] : memref<4x8x8xf32, #tpu.memory_space<vmem>>, vector<1x8x8xf32>
    %159 = vector.shape_cast %158 : vector<1x8x8xf32> to vector<8x8xf32>
    %160 = vector.broadcast %145 : vector<8x1xf32> to vector<8x8xf32>
    %161 = arith.mulf %160, %159 : vector<8x8xf32>
    %162 = arith.truncf %148 : vector<8x8xf32> to vector<8x8xbf16>
    %cst_95 = arith.constant dense<0.000000e+00> : vector<8x8xf32>
    %163 = tpu.matmul %162, %133, %cst_95 {dimension_numbers = #tpu.dot_dimension_numbers<[1], [0], [0], [1], [0, 0, 1, 1], [], []>} : vector<8x8xbf16>, vector<8x8xbf16>, vector<8x8xf32> -> vector<8x8xf32>
    %164 = arith.addf %161, %163 : vector<8x8xf32>
    %c3_96 = arith.constant 3 : index
    %c0_97 = arith.constant 0 : index
    %c0_98 = arith.constant 0 : index
    %165 = vector.load %arg9[%c3_96, %c0_97, %c0_98] : memref<4x8x8xf32, #tpu.memory_space<vmem>>, vector<1x8x8xf32>
    %166 = vector.shape_cast %165 : vector<1x8x8xf32> to vector<8x8xf32>
    %167 = vector.shape_cast %164 : vector<8x8xf32> to vector<1x8x8xf32>
    tpu.vector_store %arg9[%c3_96, %c0_97, %c0_98], %167 {strides = array<i32>} : memref<4x8x8xf32, #tpu.memory_space<vmem>>, vector<1x8x8xf32>,
    %c3_99 = arith.constant 3 : index
    %c0_100 = arith.constant 0 : index
    %c0_101 = arith.constant 0 : index
    %168 = vector.load %arg7[%c3_99, %c0_100, %c0_101] : memref<4x8x1xf32, #tpu.memory_space<vmem>>, vector<1x8x1xf32>
    %169 = vector.shape_cast %168 : vector<1x8x1xf32> to vector<8x1xf32>
    %170 = vector.shape_cast %143 : vector<8x1xf32> to vector<1x8x1xf32>
    tpu.vector_store %arg7[%c3_99, %c0_100, %c0_101], %170 {strides = array<i32>} : memref<4x8x1xf32, #tpu.memory_space<vmem>>, vector<1x8x1xf32>,
    %c0_i32_102 = arith.constant 0 : i32
    %171 = arith.cmpi eq, %arg2, %c0_i32_102 : i32
    %172 = arith.extui %171 : i1 to i32
    %c0_i32_103 = arith.constant 0 : i32
    %173 = arith.cmpi ne, %172, %c0_i32_103 : i32
    scf.if %173 {
      %c0_104 = arith.constant 0 : index
      %c0_105 = arith.constant 0 : index
      %c0_106 = arith.constant 0 : index
      %174 = vector.load %arg8[%c0_104, %c0_105, %c0_106] : memref<4x8x1xf32, #tpu.memory_space<vmem>>, vector<1x8x1xf32>
      %175 = vector.shape_cast %174 : vector<1x8x1xf32> to vector<8x1xf32>
      %176 = tpu.reciprocal %175 {approx = true} : vector<8x1xf32> -> vector<8x1xf32>
      %c0_107 = arith.constant 0 : index
      %c0_108 = arith.constant 0 : index
      %c0_109 = arith.constant 0 : index
      %177 = vector.load %arg9[%c0_107, %c0_108, %c0_109] : memref<4x8x8xf32, #tpu.memory_space<vmem>>, vector<1x8x8xf32>
      %178 = vector.shape_cast %177 : vector<1x8x8xf32> to vector<8x8xf32>
      %179 = vector.broadcast %176 : vector<8x1xf32> to vector<8x8xf32>
      %180 = arith.mulf %178, %179 : vector<8x8xf32>
      %181 = arith.truncf %180 : vector<8x8xf32> to vector<8x8xbf16>
      %c0_110 = arith.constant 0 : index
      %c0_111 = arith.constant 0 : index
      %c0_112 = arith.constant 0 : index
      %182 = vector.load %arg6[%c0_110, %c0_111, %c0_112] : memref<1x8x32xbf16, #tpu.memory_space<vmem>>, vector<1x8x8xbf16>
      %183 = vector.shape_cast %182 : vector<1x8x8xbf16> to vector<8x8xbf16>
      %184 = vector.shape_cast %181 : vector<8x8xbf16> to vector<1x8x8xbf16>
      tpu.vector_store %arg6[%c0_110, %c0_111, %c0_112], %184 {strides = array<i32>} : memref<1x8x32xbf16, #tpu.memory_space<vmem>>, vector<1x8x8xbf16>,
      %c1_113 = arith.constant 1 : index
      %c0_114 = arith.constant 0 : index
      %c0_115 = arith.constant 0 : index
      %185 = vector.load %arg8[%c1_113, %c0_114, %c0_115] : memref<4x8x1xf32, #tpu.memory_space<vmem>>, vector<1x8x1xf32>
      %186 = vector.shape_cast %185 : vector<1x8x1xf32> to vector<8x1xf32>
      %187 = tpu.reciprocal %186 {approx = true} : vector<8x1xf32> -> vector<8x1xf32>
      %c1_116 = arith.constant 1 : index
      %c0_117 = arith.constant 0 : index
      %c0_118 = arith.constant 0 : index
      %188 = vector.load %arg9[%c1_116, %c0_117, %c0_118] : memref<4x8x8xf32, #tpu.memory_space<vmem>>, vector<1x8x8xf32>
      %189 = vector.shape_cast %188 : vector<1x8x8xf32> to vector<8x8xf32>
      %190 = vector.broadcast %187 : vector<8x1xf32> to vector<8x8xf32>
      %191 = arith.mulf %189, %190 : vector<8x8xf32>
      %192 = arith.truncf %191 : vector<8x8xf32> to vector<8x8xbf16>
      %c0_119 = arith.constant 0 : index
      %c0_120 = arith.constant 0 : index
      %c8 = arith.constant 8 : index
      %193 = vector.load %arg6[%c0_119, %c0_120, %c8] : memref<1x8x32xbf16, #tpu.memory_space<vmem>>, vector<1x8x8xbf16>
      %194 = vector.shape_cast %193 : vector<1x8x8xbf16> to vector<8x8xbf16>
      %195 = vector.shape_cast %192 : vector<8x8xbf16> to vector<1x8x8xbf16>
      tpu.vector_store %arg6[%c0_119, %c0_120, %c8], %195 {strides = array<i32>} : memref<1x8x32xbf16, #tpu.memory_space<vmem>>, vector<1x8x8xbf16>,
      %c2_121 = arith.constant 2 : index
      %c0_122 = arith.constant 0 : index
      %c0_123 = arith.constant 0 : index
      %196 = vector.load %arg8[%c2_121, %c0_122, %c0_123] : memref<4x8x1xf32, #tpu.memory_space<vmem>>, vector<1x8x1xf32>
      %197 = vector.shape_cast %196 : vector<1x8x1xf32> to vector<8x1xf32>
      %198 = tpu.reciprocal %197 {approx = true} : vector<8x1xf32> -> vector<8x1xf32>
      %c2_124 = arith.constant 2 : index
      %c0_125 = arith.constant 0 : index
      %c0_126 = arith.constant 0 : index
      %199 = vector.load %arg9[%c2_124, %c0_125, %c0_126] : memref<4x8x8xf32, #tpu.memory_space<vmem>>, vector<1x8x8xf32>
      %200 = vector.shape_cast %199 : vector<1x8x8xf32> to vector<8x8xf32>
      %201 = vector.broadcast %198 : vector<8x1xf32> to vector<8x8xf32>
      %202 = arith.mulf %200, %201 : vector<8x8xf32>
      %203 = arith.truncf %202 : vector<8x8xf32> to vector<8x8xbf16>
      %c0_127 = arith.constant 0 : index
      %c0_128 = arith.constant 0 : index
      %c16 = arith.constant 16 : index
      %204 = vector.load %arg6[%c0_127, %c0_128, %c16] : memref<1x8x32xbf16, #tpu.memory_space<vmem>>, vector<1x8x8xbf16>
      %205 = vector.shape_cast %204 : vector<1x8x8xbf16> to vector<8x8xbf16>
      %206 = vector.shape_cast %203 : vector<8x8xbf16> to vector<1x8x8xbf16>
      tpu.vector_store %arg6[%c0_127, %c0_128, %c16], %206 {strides = array<i32>} : memref<1x8x32xbf16, #tpu.memory_space<vmem>>, vector<1x8x8xbf16>,
      %c3_129 = arith.constant 3 : index
      %c0_130 = arith.constant 0 : index
      %c0_131 = arith.constant 0 : index
      %207 = vector.load %arg8[%c3_129, %c0_130, %c0_131] : memref<4x8x1xf32, #tpu.memory_space<vmem>>, vector<1x8x1xf32>
      %208 = vector.shape_cast %207 : vector<1x8x1xf32> to vector<8x1xf32>
      %209 = tpu.reciprocal %208 {approx = true} : vector<8x1xf32> -> vector<8x1xf32>
      %c3_132 = arith.constant 3 : index
      %c0_133 = arith.constant 0 : index
      %c0_134 = arith.constant 0 : index
      %210 = vector.load %arg9[%c3_132, %c0_133, %c0_134] : memref<4x8x8xf32, #tpu.memory_space<vmem>>, vector<1x8x8xf32>
      %211 = vector.shape_cast %210 : vector<1x8x8xf32> to vector<8x8xf32>
      %212 = vector.broadcast %209 : vector<8x1xf32> to vector<8x8xf32>
      %213 = arith.mulf %211, %212 : vector<8x8xf32>
      %214 = arith.truncf %213 : vector<8x8xf32> to vector<8x8xbf16>
      %c0_135 = arith.constant 0 : index
      %c0_136 = arith.constant 0 : index
      %c24 = arith.constant 24 : index
      %215 = vector.load %arg6[%c0_135, %c0_136, %c24] : memref<1x8x32xbf16, #tpu.memory_space<vmem>>, vector<1x8x8xbf16>
      %216 = vector.shape_cast %215 : vector<1x8x8xbf16> to vector<8x8xbf16>
      %217 = vector.shape_cast %214 : vector<8x8xbf16> to vector<1x8x8xbf16>
      tpu.vector_store %arg6[%c0_135, %c0_136, %c24], %217 {strides = array<i32>} : memref<1x8x32xbf16, #tpu.memory_space<vmem>>, vector<1x8x8xbf16>,
    } else {
    }
    return
  }
  func.func @transform_0(%arg0: i32, %arg1: i32, %arg2: i32) -> (i32, i32, i32) {
    %c0_i32 = arith.constant 0 : i32
    %c0_i32_0 = arith.constant 0 : i32
    return %arg0, %arg1, %c0_i32 : i32, i32, i32
  }
  func.func @transform_1(%arg0: i32, %arg1: i32, %arg2: i32) -> (i32, i32, i32) {
    %c0_i32 = arith.constant 0 : i32
    %c0_i32_0 = arith.constant 0 : i32
    return %arg0, %arg2, %c0_i32 : i32, i32, i32
  }
  func.func @transform_2(%arg0: i32, %arg1: i32, %arg2: i32) -> (i32, i32, i32) {
    %c0_i32 = arith.constant 0 : i32
    %c0_i32_0 = arith.constant 0 : i32
    return %c0_i32, %arg1, %arg2 : i32, i32, i32
  }
  func.func @transform_3(%arg0: i32, %arg1: i32, %arg2: i32) -> (i32, i32, i32) {
    %c0_i32 = arith.constant 0 : i32
    %c0_i32_0 = arith.constant 0 : i32
    return %arg0, %arg1, %c0_i32 : i32, i32, i32
  }
}

module attributes {stable_mosaic.version = 11 : i64} {
  func.func @_matmul_bias_kernel(%arg0: i32, %arg1: i32, %arg2: i32, %arg3: memref<16x32xbf16, #tpu.memory_space<vmem>>, %arg4: memref<32x32xbf16, #tpu.memory_space<vmem>>, %arg5: memref<1x32xf32, #tpu.memory_space<vmem>>, %arg6: memref<16x32xbf16, #tpu.memory_space<vmem>>, %arg7: memref<16x32xf32, #tpu.memory_space<vmem>>) attributes {dimension_semantics = [#tpu.dimension_semantics<parallel>, #tpu.dimension_semantics<parallel>, #tpu.dimension_semantics<arbitrary>], iteration_bounds = array<i64: 1, 1, 1>, scalar_prefetch = 0 : i64, scratch_operands = 1 : i64, tpu.core_type = #tpu.core_type<tc>, window_params = [{transform_indices = @transform_0, window_bounds = array<i64: 16, 32>}, {transform_indices = @transform_1, window_bounds = array<i64: 32, 32>}, {transform_indices = @transform_2, window_bounds = array<i64: 1, 32>}, {transform_indices = @transform_3, window_bounds = array<i64: 16, 32>}]} {
    %c0_i32 = arith.constant 0 : i32
    %0 = arith.cmpi eq, %arg2, %c0_i32 : i32
    %1 = arith.extui %0 : i1 to i32
    %c0_i32_0 = arith.constant 0 : i32
    %2 = arith.cmpi ne, %1, %c0_i32_0 : i32
    scf.if %2 {
      %cst_10 = arith.constant 0.000000e+00 : f32
      %12 = vector.broadcast %cst_10 : f32 to vector<16x32xf32>
      %c0_11 = arith.constant 0 : index
      %c0_12 = arith.constant 0 : index
      %13 = vector.load %arg7[%c0_11, %c0_12] : memref<16x32xf32, #tpu.memory_space<vmem>>, vector<16x32xf32>
      tpu.vector_store %arg7[%c0_11, %c0_12], %12 {strides = array<i32>} : memref<16x32xf32, #tpu.memory_space<vmem>>, vector<16x32xf32>,
    } else {
    }
    %c0 = arith.constant 0 : index
    %c0_1 = arith.constant 0 : index
    %3 = vector.load %arg7[%c0, %c0_1] : memref<16x32xf32, #tpu.memory_space<vmem>>, vector<16x32xf32>
    %c0_2 = arith.constant 0 : index
    %c0_3 = arith.constant 0 : index
    %4 = vector.load %arg3[%c0_2, %c0_3] : memref<16x32xbf16, #tpu.memory_space<vmem>>, vector<16x32xbf16>
    %c0_4 = arith.constant 0 : index
    %c0_5 = arith.constant 0 : index
    %5 = vector.load %arg4[%c0_4, %c0_5] : memref<32x32xbf16, #tpu.memory_space<vmem>>, vector<32x32xbf16>
    %cst = arith.constant dense<0.000000e+00> : vector<16x32xf32>
    %6 = tpu.matmul %4, %5, %cst {dimension_numbers = #tpu.dot_dimension_numbers<[1], [0], [0], [1], [0, 0, 1, 1], [], []>} : vector<16x32xbf16>, vector<32x32xbf16>, vector<16x32xf32> -> vector<16x32xf32>
    %7 = arith.addf %3, %6 : vector<16x32xf32>
    %c0_6 = arith.constant 0 : index
    %c0_7 = arith.constant 0 : index
    %8 = vector.load %arg7[%c0_6, %c0_7] : memref<16x32xf32, #tpu.memory_space<vmem>>, vector<16x32xf32>
    tpu.vector_store %arg7[%c0_6, %c0_7], %7 {strides = array<i32>} : memref<16x32xf32, #tpu.memory_space<vmem>>, vector<16x32xf32>,
    %c0_i32_8 = arith.constant 0 : i32
    %9 = arith.cmpi eq, %arg2, %c0_i32_8 : i32
    %10 = arith.extui %9 : i1 to i32
    %c0_i32_9 = arith.constant 0 : i32
    %11 = arith.cmpi ne, %10, %c0_i32_9 : i32
    scf.if %11 {
      %c0_10 = arith.constant 0 : index
      %c0_11 = arith.constant 0 : index
      %12 = vector.load %arg7[%c0_10, %c0_11] : memref<16x32xf32, #tpu.memory_space<vmem>>, vector<16x32xf32>
      %c0_12 = arith.constant 0 : index
      %c0_13 = arith.constant 0 : index
      %13 = vector.load %arg5[%c0_12, %c0_13] : memref<1x32xf32, #tpu.memory_space<vmem>>, vector<1x32xf32>
      %14 = vector.broadcast %13 : vector<1x32xf32> to vector<16x32xf32>
      %15 = arith.addf %12, %14 : vector<16x32xf32>
      %16 = arith.truncf %15 : vector<16x32xf32> to vector<16x32xbf16>
      %c0_14 = arith.constant 0 : index
      %c0_15 = arith.constant 0 : index
      %17 = vector.load %arg6[%c0_14, %c0_15] : memref<16x32xbf16, #tpu.memory_space<vmem>>, vector<16x32xbf16>
      tpu.vector_store %arg6[%c0_14, %c0_15], %16 {strides = array<i32>} : memref<16x32xbf16, #tpu.memory_space<vmem>>, vector<16x32xbf16>,
    } else {
    }
    return
  }
  func.func @transform_0(%arg0: i32, %arg1: i32, %arg2: i32) -> (i32, i32) {
    %c0_i32 = arith.constant 0 : i32
    return %arg0, %arg2 : i32, i32
  }
  func.func @transform_1(%arg0: i32, %arg1: i32, %arg2: i32) -> (i32, i32) {
    %c0_i32 = arith.constant 0 : i32
    return %arg2, %arg1 : i32, i32
  }
  func.func @transform_2(%arg0: i32, %arg1: i32, %arg2: i32) -> (i32, i32) {
    %c0_i32 = arith.constant 0 : i32
    %c0_i32_0 = arith.constant 0 : i32
    return %c0_i32, %arg1 : i32, i32
  }
  func.func @transform_3(%arg0: i32, %arg1: i32, %arg2: i32) -> (i32, i32) {
    %c0_i32 = arith.constant 0 : i32
    return %arg0, %arg1 : i32, i32
  }
}

module attributes {stable_mosaic.version = 11 : i64} {
  func.func @_mha_kernel(%arg0: i32, %arg1: i32, %arg2: i32, %arg3: memref<1x8x32xbf16, #tpu.memory_space<vmem>>, %arg4: memref<1x8x64xbf16, #tpu.memory_space<vmem>>, %arg5: memref<1x1x8xf32, #tpu.memory_space<vmem>>, %arg6: memref<1x8x32xbf16, #tpu.memory_space<vmem>>, %arg7: memref<4x8x1xf32, #tpu.memory_space<vmem>>, %arg8: memref<4x8x1xf32, #tpu.memory_space<vmem>>, %arg9: memref<4x8x8xf32, #tpu.memory_space<vmem>>) attributes {dimension_semantics = [#tpu.dimension_semantics<parallel>, #tpu.dimension_semantics<parallel>, #tpu.dimension_semantics<arbitrary>], iteration_bounds = array<i64: 2, 1, 1>, scalar_prefetch = 0 : i64, scratch_operands = 3 : i64, tpu.core_type = #tpu.core_type<tc>, window_params = [{transform_indices = @transform_0, window_bounds = array<i64: 1, 8, 32>}, {transform_indices = @transform_1, window_bounds = array<i64: 1, 8, 64>}, {transform_indices = @transform_2, window_bounds = array<i64: 1, 1, 8>}, {transform_indices = @transform_3, window_bounds = array<i64: 1, 8, 32>}]} {
    %c0_i32 = arith.constant 0 : i32
    %0 = arith.cmpi eq, %arg2, %c0_i32 : i32
    %1 = arith.extui %0 : i1 to i32
    %c0_i32_0 = arith.constant 0 : i32
    %2 = arith.cmpi ne, %1, %c0_i32_0 : i32
    scf.if %2 {
      %cst_104 = arith.constant -1.000000e+30 : f32
      %176 = vector.broadcast %cst_104 : f32 to vector<4x8x1xf32>
      %c0_105 = arith.constant 0 : index
      %c0_106 = arith.constant 0 : index
      %c0_107 = arith.constant 0 : index
      %177 = vector.load %arg7[%c0_105, %c0_106, %c0_107] : memref<4x8x1xf32, #tpu.memory_space<vmem>>, vector<4x8x1xf32>
      tpu.vector_store %arg7[%c0_105, %c0_106, %c0_107], %176 {strides = array<i32>} : memref<4x8x1xf32, #tpu.memory_space<vmem>>, vector<4x8x1xf32>,
      %cst_108 = arith.constant 0.000000e+00 : f32
      %178 = vector.broadcast %cst_108 : f32 to vector<4x8x1xf32>
      %c0_109 = arith.constant 0 : index
      %c0_110 = arith.constant 0 : index
      %c0_111 = arith.constant 0 : index
      %179 = vector.load %arg8[%c0_109, %c0_110, %c0_111] : memref<4x8x1xf32, #tpu.memory_space<vmem>>, vector<4x8x1xf32>
      tpu.vector_store %arg8[%c0_109, %c0_110, %c0_111], %178 {strides = array<i32>} : memref<4x8x1xf32, #tpu.memory_space<vmem>>, vector<4x8x1xf32>,
      %cst_112 = arith.constant 0.000000e+00 : f32
      %180 = vector.broadcast %cst_112 : f32 to vector<4x8x8xf32>
      %c0_113 = arith.constant 0 : index
      %c0_114 = arith.constant 0 : index
      %c0_115 = arith.constant 0 : index
      %181 = vector.load %arg9[%c0_113, %c0_114, %c0_115] : memref<4x8x8xf32, #tpu.memory_space<vmem>>, vector<4x8x8xf32>
      tpu.vector_store %arg9[%c0_113, %c0_114, %c0_115], %180 {strides = array<i32>} : memref<4x8x8xf32, #tpu.memory_space<vmem>>, vector<4x8x8xf32>,
    } else {
    }
    %c0 = arith.constant 0 : index
    %c0_1 = arith.constant 0 : index
    %c0_2 = arith.constant 0 : index
    %3 = vector.load %arg3[%c0, %c0_1, %c0_2] : memref<1x8x32xbf16, #tpu.memory_space<vmem>>, vector<1x8x32xbf16>
    %4 = vector.shape_cast %3 : vector<1x8x32xbf16> to vector<8x32xbf16>
    %c0_3 = arith.constant 0 : index
    %c0_4 = arith.constant 0 : index
    %c0_5 = arith.constant 0 : index
    %5 = vector.load %arg4[%c0_3, %c0_4, %c0_5] : memref<1x8x64xbf16, #tpu.memory_space<vmem>>, vector<1x8x64xbf16>
    %6 = vector.shape_cast %5 : vector<1x8x64xbf16> to vector<8x64xbf16>
    %c0_6 = arith.constant 0 : index
    %c0_7 = arith.constant 0 : index
    %c0_8 = arith.constant 0 : index
    %7 = vector.load %arg5[%c0_6, %c0_7, %c0_8] : memref<1x1x8xf32, #tpu.memory_space<vmem>>, vector<1x1x8xf32>
    %8 = vector.shape_cast %7 : vector<1x1x8xf32> to vector<1x8xf32>
    %cst = arith.constant 0.000000e+00 : f32
    %9 = vector.broadcast %cst : f32 to vector<1x8xf32>
    %10 = arith.cmpf oeq, %8, %9 : vector<1x8xf32>
    %11 = vector.shape_cast %10 : vector<1x8xi1> to vector<1x8xi1>
    %12 = vector.broadcast %11 : vector<1x8xi1> to vector<8x8xi1>
    %13 = vector.extract_strided_slice %4 {offsets = [0, 0], sizes = [8, 8], strides = [1, 1]} : vector<8x32xbf16> to vector<8x8xbf16>
    %14 = vector.extract_strided_slice %6 {offsets = [0, 0], sizes = [8, 8], strides = [1, 1]} : vector<8x64xbf16> to vector<8x8xbf16>
    %15 = vector.extract_strided_slice %6 {offsets = [0, 32], sizes = [8, 8], strides = [1, 1]} : vector<8x64xbf16> to vector<8x8xbf16>
    %cst_9 = arith.constant dense<0.000000e+00> : vector<8x8xf32>
    %16 = tpu.matmul %13, %14, %cst_9 {dimension_numbers = #tpu.dot_dimension_numbers<[1], [1], [0], [0], [0, 0, 1, 0], [], []>} : vector<8x8xbf16>, vector<8x8xbf16>, vector<8x8xf32> -> vector<8x8xf32>
    %cst_10 = arith.constant 0.353553385 : f32
    %17 = vector.broadcast %cst_10 : f32 to vector<8x8xf32>
    %18 = arith.mulf %16, %17 : vector<8x8xf32>
    %cst_11 = arith.constant -1.000000e+09 : f32
    %19 = vector.broadcast %cst_11 : f32 to vector<8x8xf32>
    %20 = arith.select %12, %19, %18 : vector<8x8xi1>, vector<8x8xf32>
    %c0_12 = arith.constant 0 : index
    %c0_13 = arith.constant 0 : index
    %c0_14 = arith.constant 0 : index
    %21 = vector.load %arg7[%c0_12, %c0_13, %c0_14] : memref<4x8x1xf32, #tpu.memory_space<vmem>>, vector<1x8x1xf32>
    %22 = vector.shape_cast %21 : vector<1x8x1xf32> to vector<8x1xf32>
    %cst_15 = arith.constant dense<0xFF800000> : vector<8xf32>
    %23 = vector.multi_reduction <maximumf>, %20, %cst_15 [1] : vector<8x8xf32> to vector<8xf32>
    %24 = vector.shape_cast %23 : vector<8xf32> to vector<8x1xf32>
    %25 = arith.maximumf %22, %24 : vector<8x1xf32>
    %26 = arith.subf %22, %25 : vector<8x1xf32>
    %27 = math.exp %26 : vector<8x1xf32>
    %28 = vector.broadcast %25 : vector<8x1xf32> to vector<8x8xf32>
    %29 = arith.subf %20, %28 : vector<8x8xf32>
    %30 = math.exp %29 : vector<8x8xf32>
    %c0_16 = arith.constant 0 : index
    %c0_17 = arith.constant 0 : index
    %c0_18 = arith.constant 0 : index
    %31 = vector.load %arg8[%c0_16, %c0_17, %c0_18] : memref<4x8x1xf32, #tpu.memory_space<vmem>>, vector<1x8x1xf32>
    %32 = vector.shape_cast %31 : vector<1x8x1xf32> to vector<8x1xf32>
    %33 = arith.mulf %27, %32 : vector<8x1xf32>
    %cst_19 = arith.constant dense<0.000000e+00> : vector<8xf32>
    %34 = vector.multi_reduction <add>, %30, %cst_19 [1] : vector<8x8xf32> to vector<8xf32>
    %35 = vector.shape_cast %34 : vector<8xf32> to vector<8x1xf32>
    %36 = arith.addf %33, %35 : vector<8x1xf32>
    %c0_20 = arith.constant 0 : index
    %c0_21 = arith.constant 0 : index
    %c0_22 = arith.constant 0 : index
    %37 = vector.load %arg8[%c0_20, %c0_21, %c0_22] : memref<4x8x1xf32, #tpu.memory_space<vmem>>, vector<1x8x1xf32>
    %38 = vector.shape_cast %37 : vector<1x8x1xf32> to vector<8x1xf32>
    %39 = vector.shape_cast %36 : vector<8x1xf32> to vector<1x8x1xf32>
    tpu.vector_store %arg8[%c0_20, %c0_21, %c0_22], %39 {strides = array<i32>} : memref<4x8x1xf32, #tpu.memory_space<vmem>>, vector<1x8x1xf32>,
    %c0_23 = arith.constant 0 : index
    %c0_24 = arith.constant 0 : index
    %c0_25 = arith.constant 0 : index
    %40 = vector.load %arg9[%c0_23, %c0_24, %c0_25] : memref<4x8x8xf32, #tpu.memory_space<vmem>>, vector<1x8x8xf32>
    %41 = vector.shape_cast %40 : vector<1x8x8xf32> to vector<8x8xf32>
    %42 = vector.broadcast %27 : vector<8x1xf32> to vector<8x8xf32>
    %43 = arith.mulf %42, %41 : vector<8x8xf32>
    %44 = arith.truncf %30 : vector<8x8xf32> to vector<8x8xbf16>
    %cst_26 = arith.constant dense<0.000000e+00> : vector<8x8xf32>
    %45 = tpu.matmul %44, %15, %cst_26 {dimension_numbers = #tpu.dot_dimension_numbers<[1], [0], [0], [1], [0, 0, 1, 1], [], []>} : vector<8x8xbf16>, vector<8x8xbf16>, vector<8x8xf32> -> vector<8x8xf32>
    %46 = arith.addf %43, %45 : vector<8x8xf32>
    %c0_27 = arith.constant 0 : index
    %c0_28 = arith.constant 0 : index
    %c0_29 = arith.constant 0 : index
    %47 = vector.load %arg9[%c0_27, %c0_28, %c0_29] : memref<4x8x8xf32, #tpu.memory_space<vmem>>, vector<1x8x8xf32>
    %48 = vector.shape_cast %47 : vector<1x8x8xf32> to vector<8x8xf32>
    %49 = vector.shape_cast %46 : vector<8x8xf32> to vector<1x8x8xf32>
    tpu.vector_store %arg9[%c0_27, %c0_28, %c0_29], %49 {strides = array<i32>} : memref<4x8x8xf32, #tpu.memory_space<vmem>>, vector<1x8x8xf32>,
    %c0_30 = arith.constant 0 : index
    %c0_31 = arith.constant 0 : index
    %c0_32 = arith.constant 0 : index
    %50 = vector.load %arg7[%c0_30, %c0_31, %c0_32] : memref<4x8x1xf32, #tpu.memory_space<vmem>>, vector<1x8x1xf32>
    %51 = vector.shape_cast %50 : vector<1x8x1xf32> to vector<8x1xf32>
    %52 = vector.shape_cast %25 : vector<8x1xf32> to vector<1x8x1xf32>
    tpu.vector_store %arg7[%c0_30, %c0_31, %c0_32], %52 {strides = array<i32>} : memref<4x8x1xf32, #tpu.memory_space<vmem>>, vector<1x8x1xf32>,
    %53 = vector.extract_strided_slice %4 {offsets = [0, 8], sizes = [8, 8], strides = [1, 1]} : vector<8x32xbf16> to vector<8x8xbf16>
    %54 = vector.extract_strided_slice %6 {offsets = [0, 8], sizes = [8, 8], strides = [1, 1]} : vector<8x64xbf16> to vector<8x8xbf16>
    %55 = vector.extract_strided_slice %6 {offsets = [0, 40], sizes = [8, 8], strides = [1, 1]} : vector<8x64xbf16> to vector<8x8xbf16>
    %cst_33 = arith.constant dense<0.000000e+00> : vector<8x8xf32>
    %56 = tpu.matmul %53, %54, %cst_33 {dimension_numbers = #tpu.dot_dimension_numbers<[1], [1], [0], [0], [0, 0, 1, 0], [], []>} : vector<8x8xbf16>, vector<8x8xbf16>, vector<8x8xf32> -> vector<8x8xf32>
    %cst_34 = arith.constant 0.353553385 : f32
    %57 = vector.broadcast %cst_34 : f32 to vector<8x8xf32>
    %58 = arith.mulf %56, %57 : vector<8x8xf32>
    %cst_35 = arith.constant -1.000000e+09 : f32
    %59 = vector.broadcast %cst_35 : f32 to vector<8x8xf32>
    %60 = arith.select %12, %59, %58 : vector<8x8xi1>, vector<8x8xf32>
    %c1 = arith.constant 1 : index
    %c0_36 = arith.constant 0 : index
    %c0_37 = arith.constant 0 : index
    %61 = vector.load %arg7[%c1, %c0_36, %c0_37] : memref<4x8x1xf32, #tpu.memory_space<vmem>>, vector<1x8x1xf32>
    %62 = vector.shape_cast %61 : vector<1x8x1xf32> to vector<8x1xf32>
    %cst_38 = arith.constant dense<0xFF800000> : vector<8xf32>
    %63 = vector.multi_reduction <maximumf>, %60, %cst_38 [1] : vector<8x8xf32> to vector<8xf32>
    %64 = vector.shape_cast %63 : vector<8xf32> to vector<8x1xf32>
    %65 = arith.maximumf %62, %64 : vector<8x1xf32>
    %66 = arith.subf %62, %65 : vector<8x1xf32>
    %67 = math.exp %66 : vector<8x1xf32>
    %68 = vector.broadcast %65 : vector<8x1xf32> to vector<8x8xf32>
    %69 = arith.subf %60, %68 : vector<8x8xf32>
    %70 = math.exp %69 : vector<8x8xf32>
    %c1_39 = arith.constant 1 : index
    %c0_40 = arith.constant 0 : index
    %c0_41 = arith.constant 0 : index
    %71 = vector.load %arg8[%c1_39, %c0_40, %c0_41] : memref<4x8x1xf32, #tpu.memory_space<vmem>>, vector<1x8x1xf32>
    %72 = vector.shape_cast %71 : vector<1x8x1xf32> to vector<8x1xf32>
    %73 = arith.mulf %67, %72 : vector<8x1xf32>
    %cst_42 = arith.constant dense<0.000000e+00> : vector<8xf32>
    %74 = vector.multi_reduction <add>, %70, %cst_42 [1] : vector<8x8xf32> to vector<8xf32>
    %75 = vector.shape_cast %74 : vector<8xf32> to vector<8x1xf32>
    %76 = arith.addf %73, %75 : vector<8x1xf32>
    %c1_43 = arith.constant 1 : index
    %c0_44 = arith.constant 0 : index
    %c0_45 = arith.constant 0 : index
    %77 = vector.load %arg8[%c1_43, %c0_44, %c0_45] : memref<4x8x1xf32, #tpu.memory_space<vmem>>, vector<1x8x1xf32>
    %78 = vector.shape_cast %77 : vector<1x8x1xf32> to vector<8x1xf32>
    %79 = vector.shape_cast %76 : vector<8x1xf32> to vector<1x8x1xf32>
    tpu.vector_store %arg8[%c1_43, %c0_44, %c0_45], %79 {strides = array<i32>} : memref<4x8x1xf32, #tpu.memory_space<vmem>>, vector<1x8x1xf32>,
    %c1_46 = arith.constant 1 : index
    %c0_47 = arith.constant 0 : index
    %c0_48 = arith.constant 0 : index
    %80 = vector.load %arg9[%c1_46, %c0_47, %c0_48] : memref<4x8x8xf32, #tpu.memory_space<vmem>>, vector<1x8x8xf32>
    %81 = vector.shape_cast %80 : vector<1x8x8xf32> to vector<8x8xf32>
    %82 = vector.broadcast %67 : vector<8x1xf32> to vector<8x8xf32>
    %83 = arith.mulf %82, %81 : vector<8x8xf32>
    %84 = arith.truncf %70 : vector<8x8xf32> to vector<8x8xbf16>
    %cst_49 = arith.constant dense<0.000000e+00> : vector<8x8xf32>
    %85 = tpu.matmul %84, %55, %cst_49 {dimension_numbers = #tpu.dot_dimension_numbers<[1], [0], [0], [1], [0, 0, 1, 1], [], []>} : vector<8x8xbf16>, vector<8x8xbf16>, vector<8x8xf32> -> vector<8x8xf32>
    %86 = arith.addf %83, %85 : vector<8x8xf32>
    %c1_50 = arith.constant 1 : index
    %c0_51 = arith.constant 0 : index
    %c0_52 = arith.constant 0 : index
    %87 = vector.load %arg9[%c1_50, %c0_51, %c0_52] : memref<4x8x8xf32, #tpu.memory_space<vmem>>, vector<1x8x8xf32>
    %88 = vector.shape_cast %87 : vector<1x8x8xf32> to vector<8x8xf32>
    %89 = vector.shape_cast %86 : vector<8x8xf32> to vector<1x8x8xf32>
    tpu.vector_store %arg9[%c1_50, %c0_51, %c0_52], %89 {strides = array<i32>} : memref<4x8x8xf32, #tpu.memory_space<vmem>>, vector<1x8x8xf32>,
    %c1_53 = arith.constant 1 : index
    %c0_54 = arith.constant 0 : index
    %c0_55 = arith.constant 0 : index
    %90 = vector.load %arg7[%c1_53, %c0_54, %c0_55] : memref<4x8x1xf32, #tpu.memory_space<vmem>>, vector<1x8x1xf32>
    %91 = vector.shape_cast %90 : vector<1x8x1xf32> to vector<8x1xf32>
    %92 = vector.shape_cast %65 : vector<8x1xf32> to vector<1x8x1xf32>
    tpu.vector_store %arg7[%c1_53, %c0_54, %c0_55], %92 {strides = array<i32>} : memref<4x8x1xf32, #tpu.memory_space<vmem>>, vector<1x8x1xf32>,
    %93 = vector.extract_strided_slice %4 {offsets = [0, 16], sizes = [8, 8], strides = [1, 1]} : vector<8x32xbf16> to vector<8x8xbf16>
    %94 = vector.extract_strided_slice %6 {offsets = [0, 16], sizes = [8, 8], strides = [1, 1]} : vector<8x64xbf16> to vector<8x8xbf16>
    %95 = vector.extract_strided_slice %6 {offsets = [0, 48], sizes = [8, 8], strides = [1, 1]} : vector<8x64xbf16> to vector<8x8xbf16>
    %cst_56 = arith.constant dense<0.000000e+00> : vector<8x8xf32>
    %96 = tpu.matmul %93, %94, %cst_56 {dimension_numbers = #tpu.dot_dimension_numbers<[1], [1], [0], [0], [0, 0, 1, 0], [], []>} : vector<8x8xbf16>, vector<8x8xbf16>, vector<8x8xf32> -> vector<8x8xf32>
    %cst_57 = arith.constant 0.353553385 : f32
    %97 = vector.broadcast %cst_57 : f32 to vector<8x8xf32>
    %98 = arith.mulf %96, %97 : vector<8x8xf32>
    %cst_58 = arith.constant -1.000000e+09 : f32
    %99 = vector.broadcast %cst_58 : f32 to vector<8x8xf32>
    %100 = arith.select %12, %99, %98 : vector<8x8xi1>, vector<8x8xf32>
    %c2 = arith.constant 2 : index
    %c0_59 = arith.constant 0 : index
    %c0_60 = arith.constant 0 : index
    %101 = vector.load %arg7[%c2, %c0_59, %c0_60] : memref<4x8x1xf32, #tpu.memory_space<vmem>>, vector<1x8x1xf32>
    %102 = vector.shape_cast %101 : vector<1x8x1xf32> to vector<8x1xf32>
    %cst_61 = arith.constant dense<0xFF800000> : vector<8xf32>
    %103 = vector.multi_reduction <maximumf>, %100, %cst_61 [1] : vector<8x8xf32> to vector<8xf32>
    %104 = vector.shape_cast %103 : vector<8xf32> to vector<8x1xf32>
    %105 = arith.maximumf %102, %104 : vector<8x1xf32>
    %106 = arith.subf %102, %105 : vector<8x1xf32>
    %107 = math.exp %106 : vector<8x1xf32>
    %108 = vector.broadcast %105 : vector<8x1xf32> to vector<8x8xf32>
    %109 = arith.subf %100, %108 : vector<8x8xf32>
    %110 = math.exp %109 : vector<8x8xf32>
    %c2_62 = arith.constant 2 : index
    %c0_63 = arith.constant 0 : index
    %c0_64 = arith.constant 0 : index
    %111 = vector.load %arg8[%c2_62, %c0_63, %c0_64] : memref<4x8x1xf32, #tpu.memory_space<vmem>>, vector<1x8x1xf32>
    %112 = vector.shape_cast %111 : vector<1x8x1xf32> to vector<8x1xf32>
    %113 = arith.mulf %107, %112 : vector<8x1xf32>
    %cst_65 = arith.constant dense<0.000000e+00> : vector<8xf32>
    %114 = vector.multi_reduction <add>, %110, %cst_65 [1] : vector<8x8xf32> to vector<8xf32>
    %115 = vector.shape_cast %114 : vector<8xf32> to vector<8x1xf32>
    %116 = arith.addf %113, %115 : vector<8x1xf32>
    %c2_66 = arith.constant 2 : index
    %c0_67 = arith.constant 0 : index
    %c0_68 = arith.constant 0 : index
    %117 = vector.load %arg8[%c2_66, %c0_67, %c0_68] : memref<4x8x1xf32, #tpu.memory_space<vmem>>, vector<1x8x1xf32>
    %118 = vector.shape_cast %117 : vector<1x8x1xf32> to vector<8x1xf32>
    %119 = vector.shape_cast %116 : vector<8x1xf32> to vector<1x8x1xf32>
    tpu.vector_store %arg8[%c2_66, %c0_67, %c0_68], %119 {strides = array<i32>} : memref<4x8x1xf32, #tpu.memory_space<vmem>>, vector<1x8x1xf32>,
    %c2_69 = arith.constant 2 : index
    %c0_70 = arith.constant 0 : index
    %c0_71 = arith.constant 0 : index
    %120 = vector.load %arg9[%c2_69, %c0_70, %c0_71] : memref<4x8x8xf32, #tpu.memory_space<vmem>>, vector<1x8x8xf32>
    %121 = vector.shape_cast %120 : vector<1x8x8xf32> to vector<8x8xf32>
    %122 = vector.broadcast %107 : vector<8x1xf32> to vector<8x8xf32>
    %123 = arith.mulf %122, %121 : vector<8x8xf32>
    %124 = arith.truncf %110 : vector<8x8xf32> to vector<8x8xbf16>
    %cst_72 = arith.constant dense<0.000000e+00> : vector<8x8xf32>
    %125 = tpu.matmul %124, %95, %cst_72 {dimension_numbers = #tpu.dot_dimension_numbers<[1], [0], [0], [1], [0, 0, 1, 1], [], []>} : vector<8x8xbf16>, vector<8x8xbf16>, vector<8x8xf32> -> vector<8x8xf32>
    %126 = arith.addf %123, %125 : vector<8x8xf32>
    %c2_73 = arith.constant 2 : index
    %c0_74 = arith.constant 0 : index
    %c0_75 = arith.constant 0 : index
    %127 = vector.load %arg9[%c2_73, %c0_74, %c0_75] : memref<4x8x8xf32, #tpu.memory_space<vmem>>, vector<1x8x8xf32>
    %128 = vector.shape_cast %127 : vector<1x8x8xf32> to vector<8x8xf32>
    %129 = vector.shape_cast %126 : vector<8x8xf32> to vector<1x8x8xf32>
    tpu.vector_store %arg9[%c2_73, %c0_74, %c0_75], %129 {strides = array<i32>} : memref<4x8x8xf32, #tpu.memory_space<vmem>>, vector<1x8x8xf32>,
    %c2_76 = arith.constant 2 : index
    %c0_77 = arith.constant 0 : index
    %c0_78 = arith.constant 0 : index
    %130 = vector.load %arg7[%c2_76, %c0_77, %c0_78] : memref<4x8x1xf32, #tpu.memory_space<vmem>>, vector<1x8x1xf32>
    %131 = vector.shape_cast %130 : vector<1x8x1xf32> to vector<8x1xf32>
    %132 = vector.shape_cast %105 : vector<8x1xf32> to vector<1x8x1xf32>
    tpu.vector_store %arg7[%c2_76, %c0_77, %c0_78], %132 {strides = array<i32>} : memref<4x8x1xf32, #tpu.memory_space<vmem>>, vector<1x8x1xf32>,
    %133 = vector.extract_strided_slice %4 {offsets = [0, 24], sizes = [8, 8], strides = [1, 1]} : vector<8x32xbf16> to vector<8x8xbf16>
    %134 = vector.extract_strided_slice %6 {offsets = [0, 24], sizes = [8, 8], strides = [1, 1]} : vector<8x64xbf16> to vector<8x8xbf16>
    %135 = vector.extract_strided_slice %6 {offsets = [0, 56], sizes = [8, 8], strides = [1, 1]} : vector<8x64xbf16> to vector<8x8xbf16>
    %cst_79 = arith.constant dense<0.000000e+00> : vector<8x8xf32>
    %136 = tpu.matmul %133, %134, %cst_79 {dimension_numbers = #tpu.dot_dimension_numbers<[1], [1], [0], [0], [0, 0, 1, 0], [], []>} : vector<8x8xbf16>, vector<8x8xbf16>, vector<8x8xf32> -> vector<8x8xf32>
    %cst_80 = arith.constant 0.353553385 : f32
    %137 = vector.broadcast %cst_80 : f32 to vector<8x8xf32>
    %138 = arith.mulf %136, %137 : vector<8x8xf32>
    %cst_81 = arith.constant -1.000000e+09 : f32
    %139 = vector.broadcast %cst_81 : f32 to vector<8x8xf32>
    %140 = arith.select %12, %139, %138 : vector<8x8xi1>, vector<8x8xf32>
    %c3 = arith.constant 3 : index
    %c0_82 = arith.constant 0 : index
    %c0_83 = arith.constant 0 : index
    %141 = vector.load %arg7[%c3, %c0_82, %c0_83] : memref<4x8x1xf32, #tpu.memory_space<vmem>>, vector<1x8x1xf32>
    %142 = vector.shape_cast %141 : vector<1x8x1xf32> to vector<8x1xf32>
    %cst_84 = arith.constant dense<0xFF800000> : vector<8xf32>
    %143 = vector.multi_reduction <maximumf>, %140, %cst_84 [1] : vector<8x8xf32> to vector<8xf32>
    %144 = vector.shape_cast %143 : vector<8xf32> to vector<8x1xf32>
    %145 = arith.maximumf %142, %144 : vector<8x1xf32>
    %146 = arith.subf %142, %145 : vector<8x1xf32>
    %147 = math.exp %146 : vector<8x1xf32>
    %148 = vector.broadcast %145 : vector<8x1xf32> to vector<8x8xf32>
    %149 = arith.subf %140, %148 : vector<8x8xf32>
    %150 = math.exp %149 : vector<8x8xf32>
    %c3_85 = arith.constant 3 : index
    %c0_86 = arith.constant 0 : index
    %c0_87 = arith.constant 0 : index
    %151 = vector.load %arg8[%c3_85, %c0_86, %c0_87] : memref<4x8x1xf32, #tpu.memory_space<vmem>>, vector<1x8x1xf32>
    %152 = vector.shape_cast %151 : vector<1x8x1xf32> to vector<8x1xf32>
    %153 = arith.mulf %147, %152 : vector<8x1xf32>
    %cst_88 = arith.constant dense<0.000000e+00> : vector<8xf32>
    %154 = vector.multi_reduction <add>, %150, %cst_88 [1] : vector<8x8xf32> to vector<8xf32>
    %155 = vector.shape_cast %154 : vector<8xf32> to vector<8x1xf32>
    %156 = arith.addf %153, %155 : vector<8x1xf32>
    %c3_89 = arith.constant 3 : index
    %c0_90 = arith.constant 0 : index
    %c0_91 = arith.constant 0 : index
    %157 = vector.load %arg8[%c3_89, %c0_90, %c0_91] : memref<4x8x1xf32, #tpu.memory_space<vmem>>, vector<1x8x1xf32>
    %158 = vector.shape_cast %157 : vector<1x8x1xf32> to vector<8x1xf32>
    %159 = vector.shape_cast %156 : vector<8x1xf32> to vector<1x8x1xf32>
    tpu.vector_store %arg8[%c3_89, %c0_90, %c0_91], %159 {strides = array<i32>} : memref<4x8x1xf32, #tpu.memory_space<vmem>>, vector<1x8x1xf32>,
    %c3_92 = arith.constant 3 : index
    %c0_93 = arith.constant 0 : index
    %c0_94 = arith.constant 0 : index
    %160 = vector.load %arg9[%c3_92, %c0_93, %c0_94] : memref<4x8x8xf32, #tpu.memory_space<vmem>>, vector<1x8x8xf32>
    %161 = vector.shape_cast %160 : vector<1x8x8xf32> to vector<8x8xf32>
    %162 = vector.broadcast %147 : vector<8x1xf32> to vector<8x8xf32>
    %163 = arith.mulf %162, %161 : vector<8x8xf32>
    %164 = arith.truncf %150 : vector<8x8xf32> to vector<8x8xbf16>
    %cst_95 = arith.constant dense<0.000000e+00> : vector<8x8xf32>
    %165 = tpu.matmul %164, %135, %cst_95 {dimension_numbers = #tpu.dot_dimension_numbers<[1], [0], [0], [1], [0, 0, 1, 1], [], []>} : vector<8x8xbf16>, vector<8x8xbf16>, vector<8x8xf32> -> vector<8x8xf32>
    %166 = arith.addf %163, %165 : vector<8x8xf32>
    %c3_96 = arith.constant 3 : index
    %c0_97 = arith.constant 0 : index
    %c0_98 = arith.constant 0 : index
    %167 = vector.load %arg9[%c3_96, %c0_97, %c0_98] : memref<4x8x8xf32, #tpu.memory_space<vmem>>, vector<1x8x8xf32>
    %168 = vector.shape_cast %167 : vector<1x8x8xf32> to vector<8x8xf32>
    %169 = vector.shape_cast %166 : vector<8x8xf32> to vector<1x8x8xf32>
    tpu.vector_store %arg9[%c3_96, %c0_97, %c0_98], %169 {strides = array<i32>} : memref<4x8x8xf32, #tpu.memory_space<vmem>>, vector<1x8x8xf32>,
    %c3_99 = arith.constant 3 : index
    %c0_100 = arith.constant 0 : index
    %c0_101 = arith.constant 0 : index
    %170 = vector.load %arg7[%c3_99, %c0_100, %c0_101] : memref<4x8x1xf32, #tpu.memory_space<vmem>>, vector<1x8x1xf32>
    %171 = vector.shape_cast %170 : vector<1x8x1xf32> to vector<8x1xf32>
    %172 = vector.shape_cast %145 : vector<8x1xf32> to vector<1x8x1xf32>
    tpu.vector_store %arg7[%c3_99, %c0_100, %c0_101], %172 {strides = array<i32>} : memref<4x8x1xf32, #tpu.memory_space<vmem>>, vector<1x8x1xf32>,
    %c0_i32_102 = arith.constant 0 : i32
    %173 = arith.cmpi eq, %arg2, %c0_i32_102 : i32
    %174 = arith.extui %173 : i1 to i32
    %c0_i32_103 = arith.constant 0 : i32
    %175 = arith.cmpi ne, %174, %c0_i32_103 : i32
    scf.if %175 {
      %c0_104 = arith.constant 0 : index
      %c0_105 = arith.constant 0 : index
      %c0_106 = arith.constant 0 : index
      %176 = vector.load %arg8[%c0_104, %c0_105, %c0_106] : memref<4x8x1xf32, #tpu.memory_space<vmem>>, vector<1x8x1xf32>
      %177 = vector.shape_cast %176 : vector<1x8x1xf32> to vector<8x1xf32>
      %178 = tpu.reciprocal %177 {approx = true} : vector<8x1xf32> -> vector<8x1xf32>
      %c0_107 = arith.constant 0 : index
      %c0_108 = arith.constant 0 : index
      %c0_109 = arith.constant 0 : index
      %179 = vector.load %arg9[%c0_107, %c0_108, %c0_109] : memref<4x8x8xf32, #tpu.memory_space<vmem>>, vector<1x8x8xf32>
      %180 = vector.shape_cast %179 : vector<1x8x8xf32> to vector<8x8xf32>
      %181 = vector.broadcast %178 : vector<8x1xf32> to vector<8x8xf32>
      %182 = arith.mulf %180, %181 : vector<8x8xf32>
      %183 = arith.truncf %182 : vector<8x8xf32> to vector<8x8xbf16>
      %c0_110 = arith.constant 0 : index
      %c0_111 = arith.constant 0 : index
      %c0_112 = arith.constant 0 : index
      %184 = vector.load %arg6[%c0_110, %c0_111, %c0_112] : memref<1x8x32xbf16, #tpu.memory_space<vmem>>, vector<1x8x8xbf16>
      %185 = vector.shape_cast %184 : vector<1x8x8xbf16> to vector<8x8xbf16>
      %186 = vector.shape_cast %183 : vector<8x8xbf16> to vector<1x8x8xbf16>
      tpu.vector_store %arg6[%c0_110, %c0_111, %c0_112], %186 {strides = array<i32>} : memref<1x8x32xbf16, #tpu.memory_space<vmem>>, vector<1x8x8xbf16>,
      %c1_113 = arith.constant 1 : index
      %c0_114 = arith.constant 0 : index
      %c0_115 = arith.constant 0 : index
      %187 = vector.load %arg8[%c1_113, %c0_114, %c0_115] : memref<4x8x1xf32, #tpu.memory_space<vmem>>, vector<1x8x1xf32>
      %188 = vector.shape_cast %187 : vector<1x8x1xf32> to vector<8x1xf32>
      %189 = tpu.reciprocal %188 {approx = true} : vector<8x1xf32> -> vector<8x1xf32>
      %c1_116 = arith.constant 1 : index
      %c0_117 = arith.constant 0 : index
      %c0_118 = arith.constant 0 : index
      %190 = vector.load %arg9[%c1_116, %c0_117, %c0_118] : memref<4x8x8xf32, #tpu.memory_space<vmem>>, vector<1x8x8xf32>
      %191 = vector.shape_cast %190 : vector<1x8x8xf32> to vector<8x8xf32>
      %192 = vector.broadcast %189 : vector<8x1xf32> to vector<8x8xf32>
      %193 = arith.mulf %191, %192 : vector<8x8xf32>
      %194 = arith.truncf %193 : vector<8x8xf32> to vector<8x8xbf16>
      %c0_119 = arith.constant 0 : index
      %c0_120 = arith.constant 0 : index
      %c8 = arith.constant 8 : index
      %195 = vector.load %arg6[%c0_119, %c0_120, %c8] : memref<1x8x32xbf16, #tpu.memory_space<vmem>>, vector<1x8x8xbf16>
      %196 = vector.shape_cast %195 : vector<1x8x8xbf16> to vector<8x8xbf16>
      %197 = vector.shape_cast %194 : vector<8x8xbf16> to vector<1x8x8xbf16>
      tpu.vector_store %arg6[%c0_119, %c0_120, %c8], %197 {strides = array<i32>} : memref<1x8x32xbf16, #tpu.memory_space<vmem>>, vector<1x8x8xbf16>,
      %c2_121 = arith.constant 2 : index
      %c0_122 = arith.constant 0 : index
      %c0_123 = arith.constant 0 : index
      %198 = vector.load %arg8[%c2_121, %c0_122, %c0_123] : memref<4x8x1xf32, #tpu.memory_space<vmem>>, vector<1x8x1xf32>
      %199 = vector.shape_cast %198 : vector<1x8x1xf32> to vector<8x1xf32>
      %200 = tpu.reciprocal %199 {approx = true} : vector<8x1xf32> -> vector<8x1xf32>
      %c2_124 = arith.constant 2 : index
      %c0_125 = arith.constant 0 : index
      %c0_126 = arith.constant 0 : index
      %201 = vector.load %arg9[%c2_124, %c0_125, %c0_126] : memref<4x8x8xf32, #tpu.memory_space<vmem>>, vector<1x8x8xf32>
      %202 = vector.shape_cast %201 : vector<1x8x8xf32> to vector<8x8xf32>
      %203 = vector.broadcast %200 : vector<8x1xf32> to vector<8x8xf32>
      %204 = arith.mulf %202, %203 : vector<8x8xf32>
      %205 = arith.truncf %204 : vector<8x8xf32> to vector<8x8xbf16>
      %c0_127 = arith.constant 0 : index
      %c0_128 = arith.constant 0 : index
      %c16 = arith.constant 16 : index
      %206 = vector.load %arg6[%c0_127, %c0_128, %c16] : memref<1x8x32xbf16, #tpu.memory_space<vmem>>, vector<1x8x8xbf16>
      %207 = vector.shape_cast %206 : vector<1x8x8xbf16> to vector<8x8xbf16>
      %208 = vector.shape_cast %205 : vector<8x8xbf16> to vector<1x8x8xbf16>
      tpu.vector_store %arg6[%c0_127, %c0_128, %c16], %208 {strides = array<i32>} : memref<1x8x32xbf16, #tpu.memory_space<vmem>>, vector<1x8x8xbf16>,
      %c3_129 = arith.constant 3 : index
      %c0_130 = arith.constant 0 : index
      %c0_131 = arith.constant 0 : index
      %209 = vector.load %arg8[%c3_129, %c0_130, %c0_131] : memref<4x8x1xf32, #tpu.memory_space<vmem>>, vector<1x8x1xf32>
      %210 = vector.shape_cast %209 : vector<1x8x1xf32> to vector<8x1xf32>
      %211 = tpu.reciprocal %210 {approx = true} : vector<8x1xf32> -> vector<8x1xf32>
      %c3_132 = arith.constant 3 : index
      %c0_133 = arith.constant 0 : index
      %c0_134 = arith.constant 0 : index
      %212 = vector.load %arg9[%c3_132, %c0_133, %c0_134] : memref<4x8x8xf32, #tpu.memory_space<vmem>>, vector<1x8x8xf32>
      %213 = vector.shape_cast %212 : vector<1x8x8xf32> to vector<8x8xf32>
      %214 = vector.broadcast %211 : vector<8x1xf32> to vector<8x8xf32>
      %215 = arith.mulf %213, %214 : vector<8x8xf32>
      %216 = arith.truncf %215 : vector<8x8xf32> to vector<8x8xbf16>
      %c0_135 = arith.constant 0 : index
      %c0_136 = arith.constant 0 : index
      %c24 = arith.constant 24 : index
      %217 = vector.load %arg6[%c0_135, %c0_136, %c24] : memref<1x8x32xbf16, #tpu.memory_space<vmem>>, vector<1x8x8xbf16>
      %218 = vector.shape_cast %217 : vector<1x8x8xbf16> to vector<8x8xbf16>
      %219 = vector.shape_cast %216 : vector<8x8xbf16> to vector<1x8x8xbf16>
      tpu.vector_store %arg6[%c0_135, %c0_136, %c24], %219 {strides = array<i32>} : memref<1x8x32xbf16, #tpu.memory_space<vmem>>, vector<1x8x8xbf16>,
    } else {
    }
    return
  }
  func.func @transform_0(%arg0: i32, %arg1: i32, %arg2: i32) -> (i32, i32, i32) {
    %c0_i32 = arith.constant 0 : i32
    %c0_i32_0 = arith.constant 0 : i32
    return %arg0, %arg1, %c0_i32 : i32, i32, i32
  }
  func.func @transform_1(%arg0: i32, %arg1: i32, %arg2: i32) -> (i32, i32, i32) {
    %c0_i32 = arith.constant 0 : i32
    %c0_i32_0 = arith.constant 0 : i32
    return %arg0, %arg2, %c0_i32 : i32, i32, i32
  }
  func.func @transform_2(%arg0: i32, %arg1: i32, %arg2: i32) -> (i32, i32, i32) {
    %c0_i32 = arith.constant 0 : i32
    %c0_i32_0 = arith.constant 0 : i32
    return %arg0, %c0_i32, %arg2 : i32, i32, i32
  }
  func.func @transform_3(%arg0: i32, %arg1: i32, %arg2: i32) -> (i32, i32, i32) {
    %c0_i32 = arith.constant 0 : i32
    %c0_i32_0 = arith.constant 0 : i32
    return %arg0, %arg1, %c0_i32 : i32, i32, i32
  }
}

module attributes {stable_mosaic.version = 11 : i64} {
  func.func @_ffn_kernel(%arg0: i32, %arg1: i32, %arg2: memref<16x32xbf16, #tpu.memory_space<vmem>>, %arg3: memref<32x64xbf16, #tpu.memory_space<vmem>>, %arg4: memref<1x64xf32, #tpu.memory_space<vmem>>, %arg5: memref<64x32xbf16, #tpu.memory_space<vmem>>, %arg6: memref<1x32xf32, #tpu.memory_space<vmem>>, %arg7: memref<16x32xbf16, #tpu.memory_space<vmem>>, %arg8: memref<1x32xf32, #tpu.memory_space<vmem>>, %arg9: memref<1x32xf32, #tpu.memory_space<vmem>>, %arg10: memref<16x32xbf16, #tpu.memory_space<vmem>>, %arg11: memref<16x32xf32, #tpu.memory_space<vmem>>) attributes {dimension_semantics = [#tpu.dimension_semantics<parallel>, #tpu.dimension_semantics<arbitrary>], iteration_bounds = array<i64: 1, 1>, scalar_prefetch = 0 : i64, scratch_operands = 1 : i64, tpu.core_type = #tpu.core_type<tc>, window_params = [{transform_indices = @transform_0, window_bounds = array<i64: 16, 32>}, {transform_indices = @transform_1, window_bounds = array<i64: 32, 64>}, {transform_indices = @transform_2, window_bounds = array<i64: 1, 64>}, {transform_indices = @transform_3, window_bounds = array<i64: 64, 32>}, {pipeline_mode = #tpu.pipeline_mode<synchronous>, transform_indices = @transform_4, window_bounds = array<i64: 1, 32>}, {transform_indices = @transform_5, window_bounds = array<i64: 16, 32>}, {pipeline_mode = #tpu.pipeline_mode<synchronous>, transform_indices = @transform_6, window_bounds = array<i64: 1, 32>}, {pipeline_mode = #tpu.pipeline_mode<synchronous>, transform_indices = @transform_7, window_bounds = array<i64: 1, 32>}, {transform_indices = @transform_8, window_bounds = array<i64: 16, 32>}]} {
    %c0_i32 = arith.constant 0 : i32
    %0 = arith.cmpi eq, %arg1, %c0_i32 : i32
    %1 = arith.extui %0 : i1 to i32
    %c0_i32_0 = arith.constant 0 : i32
    %2 = arith.cmpi ne, %1, %c0_i32_0 : i32
    scf.if %2 {
      %cst_16 = arith.constant 0.000000e+00 : f32
      %20 = vector.broadcast %cst_16 : f32 to vector<16x32xf32>
      %c0_17 = arith.constant 0 : index
      %c0_18 = arith.constant 0 : index
      %21 = vector.load %arg11[%c0_17, %c0_18] : memref<16x32xf32, #tpu.memory_space<vmem>>, vector<16x32xf32>
      tpu.vector_store %arg11[%c0_17, %c0_18], %20 {strides = array<i32>} : memref<16x32xf32, #tpu.memory_space<vmem>>, vector<16x32xf32>,
    } else {
    }
    %c0 = arith.constant 0 : index
    %c0_1 = arith.constant 0 : index
    %3 = vector.load %arg2[%c0, %c0_1] : memref<16x32xbf16, #tpu.memory_space<vmem>>, vector<16x32xbf16>
    %c0_2 = arith.constant 0 : index
    %c0_3 = arith.constant 0 : index
    %4 = vector.load %arg3[%c0_2, %c0_3] : memref<32x64xbf16, #tpu.memory_space<vmem>>, vector<32x64xbf16>
    %cst = arith.constant dense<0.000000e+00> : vector<16x64xf32>
    %5 = tpu.matmul %3, %4, %cst {dimension_numbers = #tpu.dot_dimension_numbers<[1], [0], [0], [1], [0, 0, 1, 1], [], []>} : vector<16x32xbf16>, vector<32x64xbf16>, vector<16x64xf32> -> vector<16x64xf32>
    %c0_4 = arith.constant 0 : index
    %c0_5 = arith.constant 0 : index
    %6 = vector.load %arg4[%c0_4, %c0_5] : memref<1x64xf32, #tpu.memory_space<vmem>>, vector<1x64xf32>
    %7 = vector.broadcast %6 : vector<1x64xf32> to vector<16x64xf32>
    %8 = arith.addf %5, %7 : vector<16x64xf32>
    %cst_6 = arith.constant 0.000000e+00 : f32
    %9 = vector.broadcast %cst_6 : f32 to vector<16x64xf32>
    %10 = arith.maximumf %8, %9 : vector<16x64xf32>
    %c0_7 = arith.constant 0 : index
    %c0_8 = arith.constant 0 : index
    %11 = vector.load %arg11[%c0_7, %c0_8] : memref<16x32xf32, #tpu.memory_space<vmem>>, vector<16x32xf32>
    %12 = arith.truncf %10 : vector<16x64xf32> to vector<16x64xbf16>
    %c0_9 = arith.constant 0 : index
    %c0_10 = arith.constant 0 : index
    %13 = vector.load %arg5[%c0_9, %c0_10] : memref<64x32xbf16, #tpu.memory_space<vmem>>, vector<64x32xbf16>
    %cst_11 = arith.constant dense<0.000000e+00> : vector<16x32xf32>
    %14 = tpu.matmul %12, %13, %cst_11 {dimension_numbers = #tpu.dot_dimension_numbers<[1], [0], [0], [1], [0, 0, 1, 1], [], []>} : vector<16x64xbf16>, vector<64x32xbf16>, vector<16x32xf32> -> vector<16x32xf32>
    %15 = arith.addf %11, %14 : vector<16x32xf32>
    %c0_12 = arith.constant 0 : index
    %c0_13 = arith.constant 0 : index
    %16 = vector.load %arg11[%c0_12, %c0_13] : memref<16x32xf32, #tpu.memory_space<vmem>>, vector<16x32xf32>
    tpu.vector_store %arg11[%c0_12, %c0_13], %15 {strides = array<i32>} : memref<16x32xf32, #tpu.memory_space<vmem>>, vector<16x32xf32>,
    %c0_i32_14 = arith.constant 0 : i32
    %17 = arith.cmpi eq, %arg1, %c0_i32_14 : i32
    %18 = arith.extui %17 : i1 to i32
    %c0_i32_15 = arith.constant 0 : i32
    %19 = arith.cmpi ne, %18, %c0_i32_15 : i32
    scf.if %19 {
      %c0_16 = arith.constant 0 : index
      %c0_17 = arith.constant 0 : index
      %20 = vector.load %arg11[%c0_16, %c0_17] : memref<16x32xf32, #tpu.memory_space<vmem>>, vector<16x32xf32>
      %c0_18 = arith.constant 0 : index
      %c0_19 = arith.constant 0 : index
      %21 = vector.load %arg6[%c0_18, %c0_19] : memref<1x32xf32, #tpu.memory_space<vmem>>, vector<1x32xf32>
      %22 = vector.broadcast %21 : vector<1x32xf32> to vector<16x32xf32>
      %23 = arith.addf %20, %22 : vector<16x32xf32>
      %c0_20 = arith.constant 0 : index
      %c0_21 = arith.constant 0 : index
      %24 = vector.load %arg7[%c0_20, %c0_21] : memref<16x32xbf16, #tpu.memory_space<vmem>>, vector<16x32xbf16>
      %25 = arith.extf %24 : vector<16x32xbf16> to vector<16x32xf32>
      %26 = arith.addf %23, %25 : vector<16x32xf32>
      %cst_22 = arith.constant dense<0.000000e+00> : vector<16xf32>
      %27 = vector.multi_reduction <add>, %26, %cst_22 [1] : vector<16x32xf32> to vector<16xf32>
      %28 = vector.shape_cast %27 : vector<16xf32> to vector<16x1xf32>
      %cst_23 = arith.constant 3.200000e+01 : f32
      %29 = vector.broadcast %cst_23 : f32 to vector<16x1xf32>
      %30 = arith.divf %28, %29 : vector<16x1xf32>
      %31 = vector.broadcast %30 : vector<16x1xf32> to vector<16x32xf32>
      %32 = arith.subf %26, %31 : vector<16x32xf32>
      %33 = arith.mulf %32, %32 : vector<16x32xf32>
      %cst_24 = arith.constant dense<0.000000e+00> : vector<16xf32>
      %34 = vector.multi_reduction <add>, %33, %cst_24 [1] : vector<16x32xf32> to vector<16xf32>
      %35 = vector.shape_cast %34 : vector<16xf32> to vector<16x1xf32>
      %cst_25 = arith.constant 3.200000e+01 : f32
      %36 = vector.broadcast %cst_25 : f32 to vector<16x1xf32>
      %37 = arith.divf %35, %36 : vector<16x1xf32>
      %38 = vector.broadcast %30 : vector<16x1xf32> to vector<16x32xf32>
      %39 = arith.subf %26, %38 : vector<16x32xf32>
      %cst_26 = arith.constant 9.99999996E-13 : f32
      %40 = vector.broadcast %cst_26 : f32 to vector<16x1xf32>
      %41 = arith.addf %37, %40 : vector<16x1xf32>
      %42 = math.rsqrt %41 : vector<16x1xf32>
      %43 = vector.broadcast %42 : vector<16x1xf32> to vector<16x32xf32>
      %44 = arith.mulf %39, %43 : vector<16x32xf32>
      %c0_27 = arith.constant 0 : index
      %c0_28 = arith.constant 0 : index
      %45 = vector.load %arg8[%c0_27, %c0_28] : memref<1x32xf32, #tpu.memory_space<vmem>>, vector<1x32xf32>
      %46 = vector.broadcast %45 : vector<1x32xf32> to vector<16x32xf32>
      %47 = arith.mulf %46, %44 : vector<16x32xf32>
      %c0_29 = arith.constant 0 : index
      %c0_30 = arith.constant 0 : index
      %48 = vector.load %arg9[%c0_29, %c0_30] : memref<1x32xf32, #tpu.memory_space<vmem>>, vector<1x32xf32>
      %49 = vector.broadcast %48 : vector<1x32xf32> to vector<16x32xf32>
      %50 = arith.addf %47, %49 : vector<16x32xf32>
      %51 = arith.truncf %50 : vector<16x32xf32> to vector<16x32xbf16>
      %c0_31 = arith.constant 0 : index
      %c0_32 = arith.constant 0 : index
      %52 = vector.load %arg10[%c0_31, %c0_32] : memref<16x32xbf16, #tpu.memory_space<vmem>>, vector<16x32xbf16>
      tpu.vector_store %arg10[%c0_31, %c0_32], %51 {strides = array<i32>} : memref<16x32xbf16, #tpu.memory_space<vmem>>, vector<16x32xbf16>,
    } else {
    }
    return
  }
  func.func @transform_0(%arg0: i32, %arg1: i32) -> (i32, i32) {
    %c0_i32 = arith.constant 0 : i32
    %c0_i32_0 = arith.constant 0 : i32
    return %arg0, %c0_i32 : i32, i32
  }
  func.func @transform_1(%arg0: i32, %arg1: i32) -> (i32, i32) {
    %c0_i32 = arith.constant 0 : i32
    %c0_i32_0 = arith.constant 0 : i32
    return %c0_i32, %arg1 : i32, i32
  }
  func.func @transform_2(%arg0: i32, %arg1: i32) -> (i32, i32) {
    %c0_i32 = arith.constant 0 : i32
    %c0_i32_0 = arith.constant 0 : i32
    return %c0_i32, %arg1 : i32, i32
  }
  func.func @transform_3(%arg0: i32, %arg1: i32) -> (i32, i32) {
    %c0_i32 = arith.constant 0 : i32
    %c0_i32_0 = arith.constant 0 : i32
    return %arg1, %c0_i32 : i32, i32
  }
  func.func @transform_4(%arg0: i32, %arg1: i32) -> (i32, i32) {
    %c0_i32 = arith.constant 0 : i32
    %c0_i32_0 = arith.constant 0 : i32
    %c0_i32_1 = arith.constant 0 : i32
    return %c0_i32, %c0_i32_0 : i32, i32
  }
  func.func @transform_5(%arg0: i32, %arg1: i32) -> (i32, i32) {
    %c0_i32 = arith.constant 0 : i32
    %c0_i32_0 = arith.constant 0 : i32
    return %arg0, %c0_i32 : i32, i32
  }
  func.func @transform_6(%arg0: i32, %arg1: i32) -> (i32, i32) {
    %c0_i32 = arith.constant 0 : i32
    %c0_i32_0 = arith.constant 0 : i32
    %c0_i32_1 = arith.constant 0 : i32
    return %c0_i32, %c0_i32_0 : i32, i32
  }
  func.func @transform_7(%arg0: i32, %arg1: i32) -> (i32, i32) {
    %c0_i32 = arith.constant 0 : i32
    %c0_i32_0 = arith.constant 0 : i32
    %c0_i32_1 = arith.constant 0 : i32
    return %c0_i32, %c0_i32_0 : i32, i32
  }
  func.func @transform_8(%arg0: i32, %arg1: i32) -> (i32, i32) {
    %c0_i32 = arith.constant 0 : i32
    %c0_i32_0 = arith.constant 0 : i32
    return %arg0, %c0_i32 : i32, i32
  }
}

</mosaic_0001>

<bundles_post_ra>
// kernel: decoder_forward.28
= control target key start
LH: loop header
LB: loop body
LE: loop exit
PB: predicated region body
PF: predicated region fallthrough
CT: control target
= control target key end

     0   :  { %vm19_vm0 = vcmask 523264   ;;  %v151_v0 = vmov 0.0   ;;  %vm152_vm1 = vmmov 0   ;;  %vm47_vm2 = vcmask 261120   ;;  %s195_s1 = inlined_call_operand.vmem [shape: bf16[32,64], index: 1, kind: input, shape index: {}]   ;;  %s196_s0 = inlined_call_operand.vmem [shape: bf16[16,32], index: 0, kind: input, shape index: {}]   ;;  %s197_s2 = inlined_call_operand.vmem [shape: f32[1,64], index: 2, kind: input, shape index: {}]   ;;  %s198_s3 = inlined_call_operand.vmem [shape: bf16[16,64], index: 3, kind: output, shape index: {}]  }
   0x1   :  { %138 = vmatprep.subr.bf16.mxu0 %v151_v0  ;;  %v148_v1 = vld [vmem:[%s195_s1] sm:$0xff]   ;;  %142 = vmatprep.mubr.msk.bf16.mxu0 %vm152_vm1, %v151_v0  ;;  %20 = vst.msk [vmem:[#allocation2] sm:$0xff] %vm19_vm0, %v151_v0  ;;  %21 = vst.msk [vmem:[#allocation2 + $0x8] sm:$0xff] %vm19_vm0, %v151_v0  ;;  %v149_v2 = vld [vmem:[%s195_s1 + $0x8] sm:$0xff]   ;;  %vm119_vm3 = vcmask 519168  }
   0x2   :  { %139 = vmatpush3.bf16.msra.mxu0 %v148_v1  ;;  %v150_v3 = vld [vmem:[%s196_s0] sm:$0xff]  }
   0x3   :  { %140 = vmatprep.subr.bf16.mxu0 %v151_v0  ;;  %v130_v12 = vld [vmem:[%s197_s2] ss:$0 sm:$0xff] }
   0x6   :  { %141 = vmatpush3.bf16.msra.mxu0 %v149_v2 }
   0x8   :  { %v22_v4 = vld [vmem:[#allocation2] sm:$0xff]  ;;  %v23_v6 = vld [vmem:[#allocation2 + $0x8] sm:$0xff] }
   0x9   :  { %143 = vmatmul.mubr.msk.bf16.vlgmr.msra.gmra.mrb[0].mxu0 %vm47_vm2, %v150_v3 }
  0xdc   :  { %v85_v5 = vpop.f32.mrb[0].mxu0 }
  0xdd   :  { %v92_v7 = vadd.f32 %v85_v5, %v22_v4  ;;  %v144_v8 = vpop.f32.mrb[1].mxu0 }
  0xde   :  { %v88_v9 = vpop.f32.mrb[2].mxu0 }
  0xdf   :  { %95 = vst.msk [vmem:[#allocation2] sm:$0xff] %vm19_vm0, %v92_v7  ;;  %v93_v10 = vadd.f32 %v88_v9, %v23_v6  ;;  %v145_v11 = vpop.f32.mrb[3].mxu0 }
  0xe1   :  { %96 = vst.msk [vmem:[#allocation2 + $0x8] sm:$0xff] %vm19_vm0, %v93_v10 }
  0xe6   :  { %v100_v13 = vld [vmem:[#allocation2] sm:$0xff] }
  0xe7   :  { %v109_v14 = vadd.f32 %v130_v12, %v100_v13 }
  0xe8   :  { %v101_v15 = vld [vmem:[#allocation2 + $0x8] sm:$0xff] }
  0xe9   :  { %v133_v16 = vpack.c.bf16 %v109_v14, %v109_v14  ;;  %v110_v17 = vadd.f32 %v130_v12, %v101_v15 }
  0xeb   :  { %120 = vst.msk [vmem:[%s198_s3] sm:$0xf] %vm119_vm3, %v133_v16  ;;  %v134_v18 = vpack.c.bf16 %v110_v17, %v110_v17 }
  0xed   :  { %121 = vst.msk [vmem:[%s198_s3 + $0x4] sm:$0xf] %vm119_vm3, %v134_v18 }

// kernel: decoder_forward.16
= control target key start
LH: loop header
LB: loop body
LE: loop exit
PB: predicated region body
PF: predicated region fallthrough
CT: control target
= control target key end

     0   :  { %vm19_vm0 = vcmask 785408   ;;  %v151_v0 = vmov 0.0   ;;  %vm152_vm1 = vmmov 0   ;;  %vm47_vm2 = vcmask 261120   ;;  %s195_s1 = inlined_call_operand.vmem [shape: bf16[32,96], index: 1, kind: input, shape index: {}]   ;;  %s196_s0 = inlined_call_operand.vmem [shape: bf16[16,32], index: 0, kind: input, shape index: {}]   ;;  %s197_s2 = inlined_call_operand.vmem [shape: f32[1,96], index: 2, kind: input, shape index: {}]   ;;  %s198_s3 = inlined_call_operand.vmem [shape: bf16[16,96], index: 3, kind: output, shape index: {}]  }
   0x1   :  { %138 = vmatprep.subr.bf16.mxu0 %v151_v0  ;;  %v148_v1 = vld [vmem:[%s195_s1] sm:$0xff]   ;;  %142 = vmatprep.mubr.msk.bf16.mxu0 %vm152_vm1, %v151_v0  ;;  %20 = vst.msk [vmem:[#allocation2] sm:$0xff] %vm19_vm0, %v151_v0  ;;  %21 = vst.msk [vmem:[#allocation2 + $0x8] sm:$0xff] %vm19_vm0, %v151_v0  ;;  %v149_v2 = vld [vmem:[%s195_s1 + $0x8] sm:$0xff]   ;;  %vm119_vm3 = vcmask 781312  }
   0x2   :  { %139 = vmatpush3.bf16.msra.mxu0 %v148_v1  ;;  %v150_v3 = vld [vmem:[%s196_s0] sm:$0xff]  }
   0x3   :  { %140 = vmatprep.subr.bf16.mxu0 %v151_v0  ;;  %v130_v12 = vld [vmem:[%s197_s2] ss:$0 sm:$0xff] }
   0x6   :  { %141 = vmatpush3.bf16.msra.mxu0 %v149_v2 }
   0x8   :  { %v22_v4 = vld [vmem:[#allocation2] sm:$0xff]  ;;  %v23_v6 = vld [vmem:[#allocation2 + $0x8] sm:$0xff] }
   0x9   :  { %143 = vmatmul.mubr.msk.bf16.vlgmr.msra.gmra.mrb[0].mxu0 %vm47_vm2, %v150_v3 }
  0xdc   :  { %v85_v5 = vpop.f32.mrb[0].mxu0 }
  0xdd   :  { %v92_v7 = vadd.f32 %v85_v5, %v22_v4  ;;  %v144_v8 = vpop.f32.mrb[1].mxu0 }
  0xde   :  { %v88_v9 = vpop.f32.mrb[2].mxu0 }
  0xdf   :  { %95 = vst.msk [vmem:[#allocation2] sm:$0xff] %vm19_vm0, %v92_v7  ;;  %v93_v10 = vadd.f32 %v88_v9, %v23_v6  ;;  %v145_v11 = vpop.f32.mrb[3].mxu0 }
  0xe1   :  { %96 = vst.msk [vmem:[#allocation2 + $0x8] sm:$0xff] %vm19_vm0, %v93_v10 }
  0xe6   :  { %v100_v13 = vld [vmem:[#allocation2] sm:$0xff] }
  0xe7   :  { %v109_v14 = vadd.f32 %v130_v12, %v100_v13 }
  0xe8   :  { %v101_v15 = vld [vmem:[#allocation2 + $0x8] sm:$0xff] }
  0xe9   :  { %v133_v16 = vpack.c.bf16 %v109_v14, %v109_v14  ;;  %v110_v17 = vadd.f32 %v130_v12, %v101_v15 }
  0xeb   :  { %120 = vst.msk [vmem:[%s198_s3] sm:$0xf] %vm119_vm3, %v133_v16  ;;  %v134_v18 = vpack.c.bf16 %v110_v17, %v110_v17 }
  0xed   :  { %121 = vst.msk [vmem:[%s198_s3 + $0x4] sm:$0xf] %vm119_vm3, %v134_v18 }

// kernel: decoder_forward.18
= control target key start
LH: loop header
LB: loop body
LE: loop exit
PB: predicated region body
PF: predicated region fallthrough
CT: control target
= control target key end

     0   :  { %vm28_vm0 = vcmask 261120   ;;  %v220_v0 = vmov 0.0   ;;  %vm221_vm1 = vmmov 0   ;;  %vm178_vm2 = vcmask 257024   ;;  %s293_s1 = inlined_call_operand.vmem [shape: bf16[32,32], index: 1, kind: input, shape index: {}]   ;;  %s294_s0 = inlined_call_operand.vmem [shape: bf16[16,32], index: 0, kind: input, shape index: {}]   ;;  %s295_s3 = inlined_call_operand.vmem [shape: bf16[16,32], index: 3, kind: input, shape index: {}]   ;;  %s296_s2 = inlined_call_operand.vmem [shape: f32[1,32], index: 2, kind: input, shape index: {}]   ;;  %s297_s4 = inlined_call_operand.vmem [shape: f32[1,32], index: 4, kind: input, shape index: {}]   ;;  %s298_s5 = inlined_call_operand.vmem [shape: f32[1,32], index: 5, kind: input, shape index: {}]   ;;  %s299_s6 = inlined_call_operand.vmem [shape: bf16[16,32], index: 6, kind: output, shape index: {}]  }
   0x1   :  { %203 = vmatprep.subr.bf16.mxu0 %v220_v0  ;;  %v213_v1 = vld [vmem:[%s293_s1] sm:$0xff]   ;;  %207 = vmatprep.mubr.msk.bf16.mxu0 %vm221_vm1, %v220_v0  ;;  %29 = vst.msk [vmem:[#allocation2] sm:$0xff] %vm28_vm0, %v220_v0  ;;  %30 = vst.msk [vmem:[#allocation2 + $0x8] sm:$0xff] %vm28_vm0, %v220_v0  ;;  %v214_v2 = vld [vmem:[%s293_s1 + $0x8] sm:$0xff]  }
   0x2   :  { %204 = vmatpush3.bf16.msra.mxu0 %v213_v1  ;;  %v215_v3 = vld [vmem:[%s294_s0] sm:$0xff]  }
   0x3   :  { %205 = vmatprep.subr.bf16.mxu0 %v220_v0  ;;  %v197_v12 = vld [vmem:[%s295_s3] sm:$0xff]  }
   0x4   :  { %v189_v13 = vld [vmem:[%s296_s2] ss:$0 sm:$0xff]  ;;  %v198_v14 = vunpack.c.l.bf16 %v197_v12  ;;  %v199_v17 = vunpack.c.h.bf16 %v197_v12 }
   0x5   :  { %v190_v41 = vld [vmem:[%s297_s4] ss:$0 sm:$0xff] }
   0x6   :  { %206 = vmatpush3.bf16.msra.mxu0 %v214_v2  ;;  %v191_v43 = vld [vmem:[%s298_s5] ss:$0 sm:$0xff] }
   0x8   :  { %v31_v4 = vld [vmem:[#allocation2] sm:$0xff]  ;;  %v32_v6 = vld [vmem:[#allocation2 + $0x8] sm:$0xff] }
   0x9   :  { %208 = vmatmul.mubr.msk.bf16.vlgmr.msra.gmra.mrb[0].mxu0 %vm28_vm0, %v215_v3 }
  0xdc   :  { %v94_v5 = vpop.f32.mrb[0].mxu0 }
  0xdd   :  { %v101_v7 = vadd.f32 %v94_v5, %v31_v4  ;;  %v209_v8 = vpop.f32.mrb[1].mxu0 }
  0xde   :  { %v97_v9 = vpop.f32.mrb[2].mxu0 }
  0xdf   :  { %103 = vst.msk [vmem:[#allocation2] sm:$0xff] %vm28_vm0, %v101_v7  ;;  %v102_v10 = vadd.f32 %v97_v9, %v32_v6  ;;  %v210_v11 = vpop.f32.mrb[3].mxu0 }
  0xe1   :  { %104 = vst.msk [vmem:[#allocation2 + $0x8] sm:$0xff] %vm28_vm0, %v102_v10 }
  0xe6   :  { %v108_v15 = vld [vmem:[#allocation2] sm:$0xff] }
  0xe7   :  { %v117_v16 = vadd.f32 %v189_v13, %v108_v15 }
  0xe8   :  { %v109_v18 = vld [vmem:[#allocation2 + $0x8] sm:$0xff] }
  0xe9   :  { %v123_v19 = vadd.f32 %v198_v14, %v117_v16  ;;  %v118_v20 = vadd.f32 %v189_v13, %v109_v18 }
  0xeb   :  { %v125_v21 = vsel %vm28_vm0, %v123_v19, 0.0  ;;  %v124_v22 = vadd.f32 %v199_v17, %v118_v20 }
  0xec   :  { %126 = vadd.xlane.f32.xlu0 %v125_v21 }
  0xed   :  { %v128_v23 = vsel %vm28_vm0, %v124_v22, 0.0 }
  0xf0   :  { %129 = vadd.xlane.f32.xlu0 %v128_v23 }
 0x179   :  { %v127_v24 = vpop.xlane.xlu0 %126 }
 0x17a   :  { %v132_v25 = vmul.f32 0.03125, %v127_v24 }
 0x17c   :  { %v134_v26 = vsub.f32 %v123_v19, %v132_v25 }
 0x17d   :  { %v130_v27 = vpop.xlane.xlu0 %129 }
 0x17e   :  { %v133_v28 = vmul.f32 0.03125, %v130_v27  ;;  %v136_v29 = vmul.f32 %v134_v26, %v134_v26 }
 0x180   :  { %v135_v30 = vsub.f32 %v124_v22, %v133_v28  ;;  %v138_v31 = vsel %vm28_vm0, %v136_v29, 0.0 }
 0x181   :  { %139 = vadd.xlane.f32.xlu1 %v138_v31 }
 0x182   :  { %v137_v32 = vmul.f32 %v135_v30, %v135_v30 }
 0x184   :  { %v141_v33 = vsel %vm28_vm0, %v137_v32, 0.0 }
 0x185   :  { %142 = vadd.xlane.f32.xlu1 %v141_v33 }
 0x20e   :  { %v140_v34 = vpop.xlane.xlu1 %139 }
 0x20f   :  { %v144_v35 = vmul.f32 0.03125, %v140_v34 }
 0x211   :  { %v146_v36 = vadd.f32 1e-12, %v144_v35 }
 0x212   :  { %v143_v37 = vpop.xlane.xlu1 %142 }
 0x213   :  { %216 = vrsqrt.f32 %v146_v36  ;;  %v145_v38 = vmul.f32 0.03125, %v143_v37 }
 0x215   :  { %v147_v39 = vadd.f32 1e-12, %v145_v38 }
 0x217   :  { %218 = vrsqrt.f32 %v147_v39 }
 0x21d   :  { %v217_v40 = vpop.eup %216 }
 0x21e   :  { %v150_v42 = vmul.f32 %v217_v40, %v134_v26 }
 0x220   :  { %v159_v44 = vmul.f32 %v190_v41, %v150_v42 }
 0x221   :  { %v219_v45 = vpop.eup %218 }
 0x222   :  { %v168_v46 = vadd.f32 %v191_v43, %v159_v44  ;;  %v151_v47 = vmul.f32 %v219_v45, %v135_v30 }
 0x224   :  { %v194_v48 = vpack.c.bf16 %v168_v46, %v168_v46  ;;  %v160_v49 = vmul.f32 %v190_v41, %v151_v47 }
 0x226   :  { %179 = vst.msk [vmem:[%s299_s6] sm:$0xf] %vm178_vm2, %v194_v48  ;;  %v169_v50 = vadd.f32 %v191_v43, %v160_v49 }
 0x228   :  { %v195_v51 = vpack.c.bf16 %v169_v50, %v169_v50 }
 0x22a   :  { %180 = vst.msk [vmem:[%s299_s6 + $0x4] sm:$0xf] %vm178_vm2, %v195_v51 }

// kernel: decoder_forward.19
= control target key start
LH: loop header
LB: loop body
LE: loop exit
PB: predicated region body
PF: predicated region fallthrough
CT: control target
= control target key end

     0   :  { %vm19_vm0 = vcmask 261120   ;;  %v150_v0 = vmov 0.0   ;;  %vm151_vm1 = vmmov 0   ;;  %vm118_vm2 = vcmask 257024   ;;  %s195_s1 = inlined_call_operand.vmem [shape: bf16[32,32], index: 1, kind: input, shape index: {}]   ;;  %s196_s0 = inlined_call_operand.vmem [shape: bf16[16,32], index: 0, kind: input, shape index: {}]   ;;  %s197_s2 = inlined_call_operand.vmem [shape: f32[1,32], index: 2, kind: input, shape index: {}]   ;;  %s198_s3 = inlined_call_operand.vmem [shape: bf16[16,32], index: 3, kind: output, shape index: {}]  }
   0x1   :  { %137 = vmatprep.subr.bf16.mxu0 %v150_v0  ;;  %v147_v1 = vld [vmem:[%s195_s1] sm:$0xff]   ;;  %141 = vmatprep.mubr.msk.bf16.mxu0 %vm151_vm1, %v150_v0  ;;  %20 = vst.msk [vmem:[#allocation2] sm:$0xff] %vm19_vm0, %v150_v0  ;;  %21 = vst.msk [vmem:[#allocation2 + $0x8] sm:$0xff] %vm19_vm0, %v150_v0  ;;  %v148_v2 = vld [vmem:[%s195_s1 + $0x8] sm:$0xff]  }
   0x2   :  { %138 = vmatpush3.bf16.msra.mxu0 %v147_v1  ;;  %v149_v3 = vld [vmem:[%s196_s0] sm:$0xff]  }
   0x3   :  { %139 = vmatprep.subr.bf16.mxu0 %v150_v0  ;;  %v129_v12 = vld [vmem:[%s197_s2] ss:$0 sm:$0xff] }
   0x6   :  { %140 = vmatpush3.bf16.msra.mxu0 %v148_v2 }
   0x8   :  { %v22_v4 = vld [vmem:[#allocation2] sm:$0xff]  ;;  %v23_v6 = vld [vmem:[#allocation2 + $0x8] sm:$0xff] }
   0x9   :  { %142 = vmatmul.mubr.msk.bf16.vlgmr.msra.gmra.mrb[0].mxu0 %vm19_vm0, %v149_v3 }
  0xdc   :  { %v85_v5 = vpop.f32.mrb[0].mxu0 }
  0xdd   :  { %v92_v7 = vadd.f32 %v85_v5, %v22_v4  ;;  %v143_v8 = vpop.f32.mrb[1].mxu0 }
  0xde   :  { %v88_v9 = vpop.f32.mrb[2].mxu0 }
  0xdf   :  { %94 = vst.msk [vmem:[#allocation2] sm:$0xff] %vm19_vm0, %v92_v7  ;;  %v93_v10 = vadd.f32 %v88_v9, %v23_v6  ;;  %v144_v11 = vpop.f32.mrb[3].mxu0 }
  0xe1   :  { %95 = vst.msk [vmem:[#allocation2 + $0x8] sm:$0xff] %vm19_vm0, %v93_v10 }
  0xe6   :  { %v99_v13 = vld [vmem:[#allocation2] sm:$0xff] }
  0xe7   :  { %v108_v14 = vadd.f32 %v129_v12, %v99_v13 }
  0xe8   :  { %v100_v15 = vld [vmem:[#allocation2 + $0x8] sm:$0xff] }
  0xe9   :  { %v132_v16 = vpack.c.bf16 %v108_v14, %v108_v14  ;;  %v109_v17 = vadd.f32 %v129_v12, %v100_v15 }
  0xeb   :  { %119 = vst.msk [vmem:[%s198_s3] sm:$0xf] %vm118_vm2, %v132_v16  ;;  %v133_v18 = vpack.c.bf16 %v109_v17, %v109_v17 }
  0xed   :  { %120 = vst.msk [vmem:[%s198_s3 + $0x4] sm:$0xf] %vm118_vm2, %v133_v18 }

// kernel: decoder_forward.17
= control target key start
LH: loop header
LB: loop body
LE: loop exit
PB: predicated region body
PF: predicated region fallthrough
CT: control target
= control target key end

     0   :  { %s1227_s12 = smov 0   ;;  %s1229_s13 = smov 0   ;;  %s1409_s0 = inlined_call_operand.vmem [shape: bf16[2,8,32], index: 0, kind: input, shape index: {}]   ;;  %s1410_s1 = inlined_call_operand.vmem [shape: bf16[2,8,64], index: 1, kind: input, shape index: {}]   ;;  %s1411_s2 = inlined_call_operand.vmem [shape: f32[1,8,8], index: 2, kind: input, shape index: {}]   ;;  %s1412_s3 = inlined_call_operand.vmem [shape: bf16[2,8,32], index: 3, kind: output, shape index: {}]  }
   0x1   :  { %s1231_s14 = smov 0  }
   0x2 LB: > { %s32_s15 = sadd.s32 1, %s1187_s13  ;;  %p1018_p0 = scmp.ge.s32.totalorder %s1191_s14, 1  ;;  %s1191_s14 = sphi %s1231_s14, %s13_s14   ;;  %s1187_s13 = sphi %s1229_s13, %s1414_s13   ;;  %s1183_s12 = sphi %s1227_s12, %s1413_s12  }
   0x3   : > { %p34_p1 = scmp.ge.s32.totalorder %s32_s15, 2  ;;  %p190_p2 = scmp.lt.s32.totalorder %s1191_s14, 3 }
   0x5   : > { %s1416_s15 = smov (%p34_p1, %s32_s15), 0  ;;  %p191_p3 = pnand %p1018_p0, %p190_p2 }
   0x6   : > { %p232_p4 = scmp.lt.s32.totalorder (!%p191_p3), %s1183_s12, 1  ;;  %vm274_vm0 = vcmask (!%p191_p3), 64512   ;;  %v1193_v0 = vmov (!%p191_p3), 0.0   ;;  %vm1194_vm1 = vmmov (!%p191_p3), 0   ;;  %vm265_vm2 = vcmask (!%p191_p3), 7168   ;;  %v1289_v5 = vld [vmem:[%s1411_s2] sm:$0xff] (!%p191_p3) }
   0x7   : > { %194 = sbr.rel (%p191_p3) target bundleno = 1470 (0x5be), region = 32  ;;  %1056 = vmatprep.subr.bf16.mxu0 (!%p191_p3), %v1193_v0  ;;  %275 = vst.msk [vmem:[#allocation4] sm:$0xff] (!%p191_p3), %vm274_vm0, %v1193_v0  ;;  %276 = vst.msk [vmem:[#allocation4 + $0x8] sm:$0xff] (!%p191_p3), %vm274_vm0, %v1193_v0  ;;  %1058 = vmatprep.mubr.msk.bf16.mxu0 (!%p191_p3), %vm1194_vm1, %v1193_v0  ;;  %v1195_v4 = vmov (!%p191_p3), -1e+30   ;;  %vm282_vm3 = vcmp.eq.f32.partialorder (!%p191_p3), %v1289_v5, 0.0 }
   0x8   : > { %277 = vst.msk [vmem:[#allocation4 + $0x10] sm:$0xff] (!%p191_p3), %vm274_vm0, %v1193_v0  ;;  %278 = vst.msk [vmem:[#allocation4 + $0x18] sm:$0xff] (!%p191_p3), %vm274_vm0, %v1193_v0  ;;  %1062 = vmatprep.subr.bf16.mxu1 (!%p191_p3), %v1193_v0  ;;  %1064 = vmatprep.mubr.msk.bf16.mxu1 (!%p191_p3), %vm1194_vm1, %v1193_v0  ;;  %v1196_v13 = vmov (!%p191_p3), 0   ;;  %s1197_s25 = smov (!%p191_p3), 96   ;;  %s1198_s26 = smov (!%p191_p3), 120   ;;  %vm372_vm4 = vcmask (!%p191_p3), 1043456  }
   0x9   : > { %266 = vst.msk [vmem:[#allocation2] sm:$0xff] (!%p191_p3), %vm265_vm2, %v1195_v4  ;;  %267 = vst.msk [vmem:[#allocation2 + $0x8] sm:$0xff] (!%p191_p3), %vm265_vm2, %v1195_v4  ;;  %1142 = vset.pattern.permute.xlu0 (!%p191_p3), %v1196_v13  ;;  %1143 = vset.pattern.permute.xlu1 (!%p191_p3), %v1196_v13  ;;  %s1199_s27 = smov (!%p191_p3), 112   ;;  %s1200_s28 = smov (!%p191_p3), 104   ;;  %vm846_vm5 = vcmask (!%p191_p3), 60416   ;;  %vm864_vm6 = vcmask (!%p191_p3), 126016  }
   0xa   : > { %268 = vst.msk [vmem:[#allocation2 + $0x10] sm:$0xff] (!%p191_p3), %vm265_vm2, %v1195_v4  ;;  %269 = vst.msk [vmem:[#allocation2 + $0x18] sm:$0xff] (!%p191_p3), %vm265_vm2, %v1195_v4  ;;  %s1201_s29 = smov (!%p191_p3), 88   ;;  %s1202_s30 = smov (!%p191_p3), 80   ;;  %vm882_vm7 = vcmask (!%p191_p3), 191616   ;;  %vm900_vm8 = vcmask (!%p191_p3), 257216  }
   0xb   : > { %270 = vst.msk [vmem:[#allocation3] sm:$0xff] (!%p191_p3), %vm265_vm2, %v1193_v0  ;;  %271 = vst.msk [vmem:[#allocation3 + $0x8] sm:$0xff] (!%p191_p3), %vm265_vm2, %v1193_v0  ;;  %s1203_s4 = smov (!%p191_p3), 72   ;;  %s1204_s8 = smov (!%p191_p3), 8  }
   0xc   : > { %272 = vst.msk [vmem:[#allocation3 + $0x10] sm:$0xff] (!%p191_p3), %vm265_vm2, %v1193_v0  ;;  %273 = vst.msk [vmem:[#allocation3 + $0x18] sm:$0xff] (!%p191_p3), %vm265_vm2, %v1193_v0  ;;  %s1205_s9 = smov (!%p191_p3), 16   ;;  %s1206_s10 = smov (!%p191_p3), 24  }
   0xe   : > { %s1418_s12 = smov (!%p232_p4, %s1183_s12), 1 }
   0xf   : > { %s1259_s16 = sshll.u32 %s1418_s12, 2 }
  0x10   : > { %s245_s19 = scalar_lea.vmem %s1410_s1, %s1259_s16  ;;  %s238_s22 = scalar_lea.vmem %s1409_s0, %s1259_s16  ;;  %v1301_v16 = vld [vmem:[#allocation2] sm:$0xff]  ;;  %v1343_v61 = vld [vmem:[#allocation2 + $0x8] sm:$0xff] }
  0x11   : > { %v280_v1 = vld [vmem:[%s245_s19] sm:$0xf]  ;;  %s1391_s7 = scalar_lea.vmem %s1412_s3, %s1259_s16 }
  0x12   : > { %v288_v2 = vsel %vm274_vm0, %v280_v1, 0  ;;  %v279_v3 = vld [vmem:[%s238_s22] sm:$0xf]  ;;  %v1295_v14 = vcombine.low %v280_v1, %v280_v1 }
  0x13   : > { %1057 = vmatpush3.bf16.xpose.msra.mxu0 %v288_v2  ;;  %v1025_v15 = vcombine.low %v279_v3, %v279_v3  ;;  %v612_v2 = vld [vmem:[#allocation2 + $0x10] sm:$0xff] }
  0x14   : > { %1074 = vmatprep.subr.bf16.mxu0 %v1193_v0  ;;  %367 = vrot.lane.b32.xlu1 %v1295_v14, %s1197_s25 }
  0x18   : > { %424 = vrot.lane.b32.xlu1 %v1295_v14, %s1198_s26 }
  0x1a   : > { %1059 = vmatmul.mubr.msk.bf16.vlgmr.msra.gmra.mrb[0].mxu0 %vm274_vm0, %v279_v3 }
  0x1b   : > { %1076 = vmatprep.mubr.msk.bf16.mxu0 %vm1194_vm1, %v1193_v0 }
  0x1c   : > { %422 = vrot.lane.b32.xlu1 %v1025_v15, %s1198_s26 }
  0x20   : > { %561 = vrot.lane.b32.xlu1 %v1295_v14, %s1199_s27 }
  0x24   : > { %559 = vrot.lane.b32.xlu1 %v1025_v15, %s1199_s27 }
  0x28   : > { %698 = vrot.lane.b32.xlu1 %v1295_v14, %s1200_s28 }
  0x2c   : > { %696 = vrot.lane.b32.xlu1 %v1025_v15, %s1200_s28 }
  0x86   : > { %v368_v20 = vpop.permute.xlu1 %367 }
  0x87   : > { %v374_v21 = vsel %vm372_vm4, %v368_v20, 0 }
  0x88   : > { %1063 = vmatpush3.bf16.msra.mxu1 %v374_v21 }
  0x89   : > { %1068 = vmatprep.subr.bf16.mxu1 %v1193_v0 }
  0x8a   : > { %v425_v25 = vpop.permute.xlu1 %424 }
  0x8b   : > { %v430_v28 = vsel %vm274_vm0, %v425_v25, 0 }
  0x8e   : > { %v423_v26 = vpop.permute.xlu1 %422 }
  0x92   : > { %v562_v30 = vpop.permute.xlu1 %561 }
  0x93   : > { %v567_v32 = vsel %vm274_vm0, %v562_v30, 0 }
  0x96   : > { %v560_v31 = vpop.permute.xlu1 %559 }
  0x9a   : > { %v699_v33 = vpop.permute.xlu1 %698 }
  0x9b   : > { %v704_v34 = vsel %vm274_vm0, %v699_v33, 0 }
  0x9e   : > { %v697_v35 = vpop.permute.xlu1 %696 }
  0xed   : > { %v324_v6 = vpop.f32.mrb[0].mxu0 }
  0xee   : > { %v330_v7 = vmul.f32 0.35355338, %v324_v6  ;;  %v1060_v8 = vpop.f32.mrb[1].mxu0  ;;  %v749_v6 = vld [vmem:[#allocation2 + $0x18] sm:$0xff] }
  0xef   : > { %v327_v9 = vpop.f32.mrb[2].mxu0 }
  0xf0   : > { %v1061_v10 = vpop.f32.mrb[3].mxu0  ;;  %v331_v11 = vsel %vm282_vm3, -1e+09, %v330_v7 }
  0xf1   : > { %v333_v12 = vsel %vm274_vm0, %v331_v11, -inf }
  0xf2   : > { %334 = vmax.xlane.f32.xlu0 %v333_v12 }
 0x17f   : > { %v335_v17 = vpop.xlane.xlu0 %334 }
 0x180   : > { %v1304_v18 = vmax.f32 %v1301_v16, %v335_v17 }
 0x182   : > { %v337_v19 = vsub.f32 %v1301_v16, %v1304_v18  ;;  %418 = vst.msk [vmem:[#allocation2] sm:$0xff] %vm265_vm2, %v1304_v18  ;;  %342 = vperm.xlu0 %1142, %v1304_v18  }
 0x201   : > { %v343_v22 = vpop.permute.xlu0 %342 }
 0x202   : > { %v345_v23 = vsub.f32 %v331_v11, %v343_v22 }
 0x204   : > { %v346_v24 = vmul.f32 1.442695, %v345_v23 }
 0x206   : > { %1145 = vpow2.f32 %v346_v24 }
 0x210   : > { %v1313_v27 = vpop.eup %1145 }
 0x211   : > { %v363_v29 = vpack.c.bf16 %v1313_v27, %v1313_v27  ;;  %v350_v10 = vsel %vm274_vm0, %v1313_v27, 0.0 }
 0x213   : > { %1065 = vmatmul.mubr.msk.bf16.vlgmr.msra.gmra.mrb[0].mxu1 %vm274_vm0, %v363_v29 }
 0x214   : > { %1069 = vmatpush3.bf16.xpose.msra.mxu1 %v430_v28  ;;  %1070 = vmatprep.mubr.msk.bf16.mxu1 %vm1194_vm1, %v1193_v0 }
 0x215   : > { %1080 = vmatprep.subr.bf16.mxu1 %v1193_v0 }
 0x21b   : > { %1071 = vmatmul.mubr.msk.bf16.vlgmr.msra.gmra.mrb[4].mxu1 %vm274_vm0, %v423_v26 }
 0x21c   : > { %1081 = vmatpush3.bf16.xpose.msra.mxu1 %v567_v32  ;;  %1082 = vmatprep.mubr.msk.bf16.mxu1 %vm1194_vm1, %v1193_v0 }
 0x21d   : > { %1092 = vmatprep.subr.bf16.mxu1 %v1193_v0 }
 0x223   : > { %1083 = vmatmul.mubr.msk.bf16.vlgmr.msra.gmra.mrb[8].mxu1 %vm274_vm0, %v560_v31 }
 0x224   : > { %1093 = vmatpush3.bf16.xpose.msra.mxu1 %v704_v34  ;;  %1094 = vmatprep.mubr.msk.bf16.mxu1 %vm1194_vm1, %v1193_v0 }
 0x22b   : > { %1095 = vmatmul.mubr.msk.bf16.vlgmr.msra.gmra.mrb[12].mxu1 %vm274_vm0, %v697_v35 }
 0x2e6   : > { %v1332_v36 = vpop.f32.mrb[0].mxu1 }
 0x2e7   : > { %v1066_v37 = vpop.f32.mrb[1].mxu1 }
 0x2e8   : > { %v413_v38 = vpop.f32.mrb[2].mxu1 }
 0x2e9   : > { %v1067_v39 = vpop.f32.mrb[3].mxu1 }
 0x2ee   : > { %v466_v40 = vpop.f32.mrb[4].mxu1 }
 0x2ef   : > { %v472_v41 = vmul.f32 0.35355338, %v466_v40  ;;  %v1072_v42 = vpop.f32.mrb[5].mxu1 }
 0x2f0   : > { %v469_v43 = vpop.f32.mrb[6].mxu1 }
 0x2f1   : > { %v1073_v44 = vpop.f32.mrb[7].mxu1  ;;  %v473_v45 = vsel %vm282_vm3, -1e+09, %v472_v41  ;;  %v348_v43 = vld [vmem:[#allocation3] sm:$0xff] }
 0x2f2   : > { %v476_v46 = vsel %vm274_vm0, %v473_v45, -inf }
 0x2f3   : > { %477 = vmax.xlane.f32.xlu1 %v476_v46 }
 0x2f6   : > { %v603_v47 = vpop.f32.mrb[8].mxu1 }
 0x2f7   : > { %v609_v48 = vmul.f32 0.35355338, %v603_v47  ;;  %v1084_v49 = vpop.f32.mrb[9].mxu1 }
 0x2f8   : > { %v606_v50 = vpop.f32.mrb[10].mxu1  ;;  %v492_v49 = vld [vmem:[#allocation3 + $0x8] sm:$0xff] }
 0x2f9   : > { %v1085_v51 = vpop.f32.mrb[11].mxu1  ;;  %v610_v52 = vsel %vm282_vm3, -1e+09, %v609_v48 }
 0x2fa   : > { %v613_v53 = vsel %vm274_vm0, %v610_v52, -inf }
 0x2fb   : > { %614 = vmax.xlane.f32.xlu0 %v613_v53  ;;  %v356_v53 = vld [vmem:[#allocation4] sm:$0xff] }
 0x2fe   : > { %v740_v54 = vpop.f32.mrb[12].mxu1 }
 0x2ff   : > { %v746_v55 = vmul.f32 0.35355338, %v740_v54  ;;  %v1096_v56 = vpop.f32.mrb[13].mxu1 }
 0x300   : > { %v743_v57 = vpop.f32.mrb[14].mxu1 }
 0x301   : > { %v1097_v58 = vpop.f32.mrb[15].mxu1  ;;  %v747_v59 = vsel %vm282_vm3, -1e+09, %v746_v55  ;;  %v629_v55 = vld [vmem:[#allocation3 + $0x10] sm:$0xff] }
 0x302   : > { %v750_v60 = vsel %vm274_vm0, %v747_v59, -inf }
 0x303   : > { %751 = vmax.xlane.f32.xlu1 %v750_v60 }
 0x380   : > { %v478_v62 = vpop.xlane.xlu1 %477 }
 0x381   : > { %v1346_v63 = vmax.f32 %v1343_v61, %v478_v62  ;;  %v766_v62 = vld [vmem:[#allocation3 + $0x18] sm:$0xff] }
 0x383   : > { %v480_v1 = vsub.f32 %v1343_v61, %v1346_v63  ;;  %558 = vst.msk [vmem:[#allocation2 + $0x8] sm:$0xff] %vm265_vm2, %v1346_v63  ;;  %485 = vperm.xlu1 %1143, %v1346_v63  }
 0x385   : > { %v481_v41 = vmul.f32 1.442695, %v480_v1 }
 0x388   : > { %v615_v3 = vpop.xlane.xlu0 %614 }
 0x389   : > { %v616_v4 = vmax.f32 %v612_v2, %v615_v3 }
 0x38b   : > { %v617_v5 = vsub.f32 %v612_v2, %v616_v4  ;;  %695 = vst.msk [vmem:[#allocation2 + $0x10] sm:$0xff] %vm265_vm2, %v616_v4  ;;  %622 = vperm.xlu0 %1142, %v616_v4  }
 0x38d   : > { %v618_v29 = vmul.f32 1.442695, %v617_v5 }
 0x390   : > { %v752_v7 = vpop.xlane.xlu1 %751 }
 0x391   : > { %v753_v8 = vmax.f32 %v749_v6, %v752_v7 }
 0x393   : > { %v754_v9 = vsub.f32 %v749_v6, %v753_v8  ;;  %832 = vst.msk [vmem:[#allocation2 + $0x18] sm:$0xff] %vm265_vm2, %v753_v8  ;;  %759 = vperm.xlu1 %1143, %v753_v8  }
 0x395   : > { %v755_v18 = vmul.f32 1.442695, %v754_v9 }
 0x397   : > { %508 = vrot.lane.b32.xlu1 %v1295_v14, %s1201_s29 }
 0x39b   : > { %645 = vrot.lane.b32.xlu1 %v1295_v14, %s1202_s30 }
 0x39f   : > { %782 = vrot.lane.b32.xlu1 %v1295_v14, %s1203_s4  ;;  %v338_v14 = vmul.f32 1.442695, %v337_v19 }
 0x3aa   : > { %351 = vadd.xlane.f32.xlu0 %v350_v10 }
 0x402   : > { %v486_v11 = vpop.permute.xlu1 %485 }
 0x403   : > { %v488_v12 = vsub.f32 %v473_v45, %v486_v11 }
 0x405   : > { %v489_v13 = vmul.f32 1.442695, %v488_v12  ;;  %v500_v12 = vld [vmem:[#allocation4 + $0x8] sm:$0xff] }
 0x407   : > { %1147 = vpow2.f32 %v489_v13 }
 0x40a   : > { %v623_v15 = vpop.permute.xlu0 %622 }
 0x40b   : > { %v625_v17 = vsub.f32 %v610_v52, %v623_v15 }
 0x40d   : > { %v626_v20 = vmul.f32 1.442695, %v625_v17 }
 0x40f   : > { %1149 = vpow2.f32 %v626_v20 }
 0x411   : > { %v1148_v21 = vpop.eup %1147 }
 0x412   : > { %v760_v22 = vpop.permute.xlu1 %759  ;;  %v494_v23 = vsel %vm274_vm0, %v1148_v21, 0.0  ;;  %v507_v30 = vpack.c.bf16 %v1148_v21, %v1148_v21 }
 0x413   : > { %v762_v24 = vsub.f32 %v747_v59, %v760_v22  ;;  %495 = vadd.xlane.f32.xlu1 %v494_v23  ;;  %v637_v23 = vld [vmem:[#allocation4 + $0x10] sm:$0xff] }
 0x415   : > { %v763_v25 = vmul.f32 1.442695, %v762_v24 }
 0x416   : > { %v509_v26 = vpop.permute.xlu1 %508 }
 0x417   : > { %1151 = vpow2.f32 %v763_v25  ;;  %v514_v27 = vsel %vm372_vm4, %v509_v26, 0 }
 0x418   : > { %1075 = vmatpush3.bf16.msra.mxu0 %v514_v27  ;;  %1153 = vpow2.f32 %v338_v14 }
 0x419   : > { %v1150_v28 = vpop.eup %1149  ;;  %1086 = vmatprep.subr.bf16.mxu0 %v1193_v0  ;;  %1155 = vpow2.f32 %v618_v29 }
 0x41a   : > { %v631_v31 = vsel %vm274_vm0, %v1150_v28, 0.0  ;;  %v646_v32 = vpop.permute.xlu1 %645  ;;  %1157 = vpow2.f32 %v755_v18  ;;  %v644_v34 = vpack.c.bf16 %v1150_v28, %v1150_v28 }
 0x41b   : > { %1077 = vmatmul.mubr.msk.bf16.vlgmr.msra.gmra.mrb[4].mxu0 %vm274_vm0, %v507_v30  ;;  %632 = vadd.xlane.f32.xlu0 %v631_v31  ;;  %v651_v16 = vsel %vm372_vm4, %v646_v32, 0  ;;  %1159 = vpow2.f32 %v481_v41  ;;  %v774_v30 = vld [vmem:[#allocation4 + $0x18] sm:$0xff] }
 0x41c   : > { %1087 = vmatpush3.bf16.msra.mxu0 %v651_v16  ;;  %1088 = vmatprep.mubr.msk.bf16.mxu0 %vm1194_vm1, %v1193_v0 }
 0x41d   : > { %1098 = vmatprep.subr.bf16.mxu0 %v1193_v0 }
 0x41e   : > { %v783_v19 = vpop.permute.xlu1 %782 }
 0x41f   : > { %v788_v35 = vsel %vm372_vm4, %v783_v19, 0 }
 0x421   : > { %v1152_v33 = vpop.eup %1151 }
 0x422   : > { %v768_v37 = vsel %vm274_vm0, %v1152_v33, 0.0  ;;  %v1154_v38 = vpop.eup %1153  ;;  %v781_v40 = vpack.c.bf16 %v1152_v33, %v1152_v33 }
 0x423   : > { %1089 = vmatmul.mubr.msk.bf16.vlgmr.msra.gmra.mrb[8].mxu0 %vm274_vm0, %v644_v34  ;;  %769 = vadd.xlane.f32.xlu0 %v768_v37  ;;  %v1156_v39 = vpop.eup %1155  ;;  %v349_v44 = vmul.f32 %v1154_v38, %v348_v43 }
 0x424   : > { %359 = vperm.xlu1 %1143, %v1154_v38   ;;  %1099 = vmatpush3.bf16.msra.mxu0 %v788_v35  ;;  %v1158_v42 = vpop.eup %1157  ;;  %v630_v58 = vmul.f32 %v1156_v39, %v629_v55 }
 0x425   : > { %1100 = vmatprep.mubr.msk.bf16.mxu0 %vm1194_vm1, %v1193_v0  ;;  %v1160_v46 = vpop.eup %1159  ;;  %v767_v63 = vmul.f32 %v1158_v42, %v766_v62 }
 0x426   : > { %v493_v50 = vmul.f32 %v1160_v46, %v492_v49 }
 0x428   : > { %640 = vperm.xlu1 %1143, %v1156_v39  }
 0x42b   : > { %1101 = vmatmul.mubr.msk.bf16.vlgmr.msra.gmra.mrb[12].mxu0 %vm274_vm0, %v781_v40 }
 0x42c   : > { %777 = vperm.xlu1 %1143, %v1158_v42  }
 0x437   : > { %v352_v45 = vpop.xlane.xlu0 %351 }
 0x438   : > { %v353_v47 = vadd.f32 %v352_v45, %v349_v44 }
 0x439   : > { %503 = vperm.xlu0 %1142, %v1160_v46  }
 0x43a   : > { %355 = vst.msk [vmem:[#allocation3] sm:$0xff] %vm265_vm2, %v353_v47 }
 0x441   : > { %v836_v0 = vld [vmem:[#allocation3] sm:$0xff] }
 0x442   : > { %1161 = vrcp.f32 %v836_v0 }
 0x44c   : > { %v1162_v48 = vpop.eup %1161 }
 0x44d   : > { %841 = vperm.xlu0 %1142, %v1162_v48  }
 0x4a0   : > { %v496_v51 = vpop.xlane.xlu1 %495 }
 0x4a1   : > { %v497_v52 = vadd.f32 %v496_v51, %v493_v50 }
 0x4a3   : > { %498 = vst.msk [vmem:[#allocation3 + $0x8] sm:$0xff] %vm265_vm2, %v497_v52 }
 0x4a4   : > { %v360_v54 = vpop.permute.xlu1 %359 }
 0x4a5   : > { %v362_v56 = vmul.f32 %v360_v54, %v356_v53 }
 0x4a7   : > { %v416_v57 = vadd.f32 %v1332_v36, %v362_v56 }
 0x4a8   : > { %v633_v59 = vpop.xlane.xlu0 %632  ;;  %v641_v24 = vpop.permute.xlu1 %640 }
 0x4a9   : > { %417 = vst.msk [vmem:[#allocation4] sm:$0xff] %vm274_vm0, %v416_v57  ;;  %v634_v60 = vadd.f32 %v633_v59, %v630_v58  ;;  %v643_v14 = vmul.f32 %v641_v24, %v637_v23 }
 0x4aa   : > { %v848_v61 = vld [vmem:[#allocation3 + $0x8] sm:$0xff] }
 0x4ab   : > { %635 = vst.msk [vmem:[#allocation3 + $0x10] sm:$0xff] %vm265_vm2, %v634_v60  ;;  %1163 = vrcp.f32 %v848_v61 }
 0x4ac   : > { %v778_v31 = vpop.permute.xlu1 %777 }
 0x4ad   : > { %v780_v32 = vmul.f32 %v778_v31, %v774_v30 }
 0x4b0   : > { %v770_v1 = vpop.xlane.xlu0 %769  ;;  %v838_v8 = vld [vmem:[#allocation4] sm:$0xff] }
 0x4b1   : > { %v771_v2 = vadd.f32 %v770_v1, %v767_v63 }
 0x4b2   : > { %v866_v3 = vld [vmem:[#allocation3 + $0x10] sm:$0xff] }
 0x4b3   : > { %772 = vst.msk [vmem:[#allocation3 + $0x18] sm:$0xff] %vm265_vm2, %v771_v2  ;;  %1165 = vrcp.f32 %v866_v3 }
 0x4b5   : > { %v1164_v4 = vpop.eup %1163 }
 0x4b6   : > { %853 = vperm.xlu1 %1143, %v1164_v4  }
 0x4b8   : > { %v504_v7 = vpop.permute.xlu0 %503 }
 0x4b9   : > { %v506_v13 = vmul.f32 %v504_v7, %v500_v12 }
 0x4ba   : > { %v884_v36 = vld [vmem:[#allocation3 + $0x18] sm:$0xff] }
 0x4bb   : > { %1167 = vrcp.f32 %v884_v36 }
 0x4bd   : > { %v1166_v5 = vpop.eup %1165 }
 0x4be   : > { %871 = vperm.xlu1 %1143, %v1166_v5  }
 0x4c5   : > { %v1168_v6 = vpop.eup %1167 }
 0x4c6   : > { %889 = vperm.xlu1 %1143, %v1168_v6  }
 0x4cc   : > { %v842_v9 = vpop.permute.xlu0 %841 }
 0x4cd   : > { %v844_v10 = vmul.f32 %v842_v9, %v838_v8 }
 0x4cf   : > { %v845_v11 = vpack.c.bf16 %v844_v10, %v844_v10 }
 0x4d1   : > { %847 = vst.msk [vmem:[%s1391_s7] sm:$0xf] %vm846_vm5, %v845_v11 }
 0x4ee   : > { %v550_v15 = vpop.f32.mrb[4].mxu0 }
 0x4ef   : > { %v556_v17 = vadd.f32 %v550_v15, %v506_v13  ;;  %v1078_v20 = vpop.f32.mrb[5].mxu0 }
 0x4f0   : > { %v553_v21 = vpop.f32.mrb[6].mxu0 }
 0x4f1   : > { %557 = vst.msk [vmem:[#allocation4 + $0x8] sm:$0xff] %vm274_vm0, %v556_v17  ;;  %v1079_v22 = vpop.f32.mrb[7].mxu0 }
 0x4f6   : > { %v687_v25 = vpop.f32.mrb[8].mxu0 }
 0x4f7   : > { %v693_v26 = vadd.f32 %v687_v25, %v643_v14  ;;  %v1090_v27 = vpop.f32.mrb[9].mxu0 }
 0x4f8   : > { %v690_v28 = vpop.f32.mrb[10].mxu0  ;;  %v850_v37 = vld [vmem:[#allocation4 + $0x8] sm:$0xff] }
 0x4f9   : > { %694 = vst.msk [vmem:[#allocation4 + $0x10] sm:$0xff] %vm274_vm0, %v693_v26  ;;  %v1091_v29 = vpop.f32.mrb[11].mxu0 }
 0x4fe   : > { %v824_v16 = vpop.f32.mrb[12].mxu0 }
 0x4ff   : > { %v830_v18 = vadd.f32 %v824_v16, %v780_v32  ;;  %v1102_v19 = vpop.f32.mrb[13].mxu0 }
 0x500   : > { %v827_v33 = vpop.f32.mrb[14].mxu0  ;;  %v868_v41 = vld [vmem:[#allocation4 + $0x10] sm:$0xff] }
 0x501   : > { %831 = vst.msk [vmem:[#allocation4 + $0x18] sm:$0xff] %vm274_vm0, %v830_v18  ;;  %v1103_v34 = vpop.f32.mrb[15].mxu0 }
 0x508   : > { %v886_v45 = vld [vmem:[#allocation4 + $0x18] sm:$0xff] }
 0x535   : > { %v854_v35 = vpop.permute.xlu1 %853 }
 0x536   : > { %v856_v38 = vmul.f32 %v854_v35, %v850_v37 }
 0x538   : > { %v1037_v39 = vpack.c.bf16 %v856_v38, %v856_v38 }
 0x53a   : > { %861 = vrot.lane.b32.xlu0 %v1037_v39, %s1204_s8 }
 0x53d   : > { %v872_v40 = vpop.permute.xlu1 %871 }
 0x53e   : > { %v874_v42 = vmul.f32 %v872_v40, %v868_v41 }
 0x540   : > { %v1038_v43 = vpack.c.bf16 %v874_v42, %v874_v42 }
 0x542   : > { %879 = vrot.lane.b32.xlu0 %v1038_v43, %s1205_s9 }
 0x545   : > { %v890_v44 = vpop.permute.xlu1 %889 }
 0x546   : > { %v892_v46 = vmul.f32 %v890_v44, %v886_v45 }
 0x548   : > { %v1039_v47 = vpack.c.bf16 %v892_v46, %v892_v46 }
 0x54a   : > { %897 = vrot.lane.b32.xlu0 %v1039_v47, %s1206_s10 }
 0x5ac   : > { %v862_v0 = vpop.permute.xlu0 %861 }
 0x5ad   : > { %865 = vst.msk [vmem:[%s1391_s7] sm:$0xf] %vm864_vm6, %v862_v0 }
 0x5b4   : > { %v880_v48 = vpop.permute.xlu0 %879 }
 0x5b5   : > { %883 = vst.msk [vmem:[%s1391_s7] sm:$0xf] %vm882_vm7, %v880_v48 }
 0x5bc   : > { %v898_v49 = vpop.permute.xlu0 %897 }
 0x5bd   : > { %901 = vst.msk [vmem:[%s1391_s7] sm:$0xf] %vm900_vm8, %v898_v49 }
 0x5be PF: > { %s13_s14 = sadd.s32 1, %s1191_s14   ;;  %s1413_s12 = smov %s1187_s13 }
 0x5bf   : > { %p10_p5 = scmp.ge.s32.totalorder %s13_s14, 4   ;;  %s1414_s13 = smov %s1416_s15 }
 0x5c1   :  { %12 = sbr.rel (!%p10_p5) target bundleno = 2 (0x2), region = 85 }

// kernel: decoder_forward.21
= control target key start
LH: loop header
LB: loop body
LE: loop exit
PB: predicated region body
PF: predicated region fallthrough
CT: control target
= control target key end

     0   :  { %s1222_s12 = smov 0   ;;  %s1224_s13 = smov 0   ;;  %s1404_s0 = inlined_call_operand.vmem [shape: bf16[2,8,32], index: 0, kind: input, shape index: {}]   ;;  %s1405_s1 = inlined_call_operand.vmem [shape: bf16[2,8,64], index: 1, kind: input, shape index: {}]   ;;  %s1406_s2 = inlined_call_operand.vmem [shape: f32[2,1,8], index: 2, kind: input, shape index: {}]   ;;  %s1407_s3 = inlined_call_operand.vmem [shape: bf16[2,8,32], index: 3, kind: output, shape index: {}]  }
   0x1   :  { %s1226_s14 = smov 0  }
   0x2 LB: > { %s32_s15 = sadd.s32 1, %s1182_s13  ;;  %p1013_p0 = scmp.ge.s32.totalorder %s1186_s14, 1  ;;  %s1186_s14 = sphi %s1226_s14, %s13_s14   ;;  %s1182_s13 = sphi %s1224_s13, %s1409_s13   ;;  %s1178_s12 = sphi %s1222_s12, %s1408_s12  }
   0x3   : > { %p34_p1 = scmp.ge.s32.totalorder %s32_s15, 2  ;;  %p189_p2 = scmp.lt.s32.totalorder %s1186_s14, 3 }
   0x5   : > { %s1411_s15 = smov (%p34_p1, %s32_s15), 0  ;;  %p190_p3 = pnand %p1013_p0, %p189_p2 }
   0x6   : > { %p230_p4 = scmp.lt.s32.totalorder (!%p190_p3), %s1178_s12, 1  ;;  %vm271_vm0 = vcmask (!%p190_p3), 64512   ;;  %v1188_v0 = vmov (!%p190_p3), 0.0   ;;  %vm1189_vm1 = vmmov (!%p190_p3), 0   ;;  %v1190_v4 = vmov (!%p190_p3), 0   ;;  %s1192_s26 = smov (!%p190_p3), 96  }
   0x7   : > { %193 = sbr.rel (%p190_p3) target bundleno = 1470 (0x5be), region = 32  ;;  %1051 = vmatprep.subr.bf16.mxu0 (!%p190_p3), %v1188_v0  ;;  %272 = vst.msk [vmem:[#allocation4] sm:$0xff] (!%p190_p3), %vm271_vm0, %v1188_v0  ;;  %273 = vst.msk [vmem:[#allocation4 + $0x8] sm:$0xff] (!%p190_p3), %vm271_vm0, %v1188_v0  ;;  %1053 = vmatprep.mubr.msk.bf16.mxu0 (!%p190_p3), %vm1189_vm1, %v1188_v0  ;;  %vm262_vm2 = vcmask (!%p190_p3), 7168   ;;  %v1191_v5 = vmov (!%p190_p3), -1e+30   ;;  %v281_v6 = vlaneseq (!%p190_p3) }
   0x8   : > { %274 = vst.msk [vmem:[#allocation4 + $0x10] sm:$0xff] (!%p190_p3), %vm271_vm0, %v1188_v0  ;;  %275 = vst.msk [vmem:[#allocation4 + $0x18] sm:$0xff] (!%p190_p3), %vm271_vm0, %v1188_v0  ;;  %1057 = vmatprep.subr.bf16.mxu1 (!%p190_p3), %v1188_v0  ;;  %1059 = vmatprep.mubr.msk.bf16.mxu1 (!%p190_p3), %vm1189_vm1, %v1188_v0  ;;  %s1193_s27 = smov (!%p190_p3), 120   ;;  %s1194_s28 = smov (!%p190_p3), 112   ;;  %vm375_vm5 = vcmask (!%p190_p3), 1043456   ;;  %vm849_vm6 = vcmask (!%p190_p3), 60416  }
   0x9   : > { %1137 = vset.pattern.permute.xlu0 (!%p190_p3), %v1190_v4  ;;  %1138 = vset.pattern.permute.xlu1 (!%p190_p3), %v1190_v4  ;;  %263 = vst.msk [vmem:[#allocation2] sm:$0xff] (!%p190_p3), %vm262_vm2, %v1191_v5  ;;  %264 = vst.msk [vmem:[#allocation2 + $0x8] sm:$0xff] (!%p190_p3), %vm262_vm2, %v1191_v5  ;;  %v282_v8 = vshrl.u32 (!%p190_p3), %v281_v6, 7  ;;  %s1195_s29 = smov (!%p190_p3), 104   ;;  %s1196_s30 = smov (!%p190_p3), 88   ;;  %vm867_vm7 = vcmask (!%p190_p3), 126016  }
   0xa   : > { %265 = vst.msk [vmem:[#allocation2 + $0x10] sm:$0xff] (!%p190_p3), %vm262_vm2, %v1191_v5  ;;  %266 = vst.msk [vmem:[#allocation2 + $0x18] sm:$0xff] (!%p190_p3), %vm262_vm2, %v1191_v5  ;;  %s1197_s4 = smov (!%p190_p3), 80   ;;  %s1198_s5 = smov (!%p190_p3), 72   ;;  %vm885_vm8 = vcmask (!%p190_p3), 191616   ;;  %vm903_vm9 = vcmask (!%p190_p3), 257216  }
   0xb   : > { %267 = vst.msk [vmem:[#allocation3] sm:$0xff] (!%p190_p3), %vm262_vm2, %v1188_v0  ;;  %268 = vst.msk [vmem:[#allocation3 + $0x8] sm:$0xff] (!%p190_p3), %vm262_vm2, %v1188_v0  ;;  %v283_v9 = vsub.s32 (!%p190_p3), 0, %v282_v8  ;;  %s1199_s9 = smov (!%p190_p3), 8   ;;  %s1200_s10 = smov (!%p190_p3), 16  }
   0xc   : > { %269 = vst.msk [vmem:[#allocation3 + $0x10] sm:$0xff] (!%p190_p3), %vm262_vm2, %v1188_v0  ;;  %270 = vst.msk [vmem:[#allocation3 + $0x18] sm:$0xff] (!%p190_p3), %vm262_vm2, %v1188_v0  ;;  %s1201_s11 = smov (!%p190_p3), 24  }
   0xe   : > { %s1413_s12 = smov (!%p230_p4, %s1178_s12), 1 }
   0xf   : > { %s1254_s16 = sshll.u32 %s1413_s12, 2  ;;  %s249_s25 = scalar_lea.vmem %s1406_s2, %s1413_s12 }
  0x10   : > { %s243_s19 = scalar_lea.vmem %s1405_s1, %s1254_s16  ;;  %s236_s22 = scalar_lea.vmem %s1404_s0, %s1254_s16  ;;  %v278_v7 = vld [vmem:[%s249_s25] sm:$0x1] }
  0x11   : > { %v277_v1 = vld [vmem:[%s243_s19] sm:$0xf]  ;;  %vm279_vm3 = vcmp.eq.f32.partialorder %v278_v7, 0.0  ;;  %v615_v7 = vld [vmem:[#allocation2 + $0x10] sm:$0xff]  ;;  %s1386_s8 = scalar_lea.vmem %s1407_s3, %s1254_s16 }
  0x12   : > { %v291_v2 = vsel %vm271_vm0, %v277_v1, 0  ;;  %v276_v3 = vld [vmem:[%s236_s22] sm:$0xf]  ;;  %v280_v10 = vsel %vm279_vm3, 1, %v1190_v4  ;;  %v1290_v19 = vcombine.low %v277_v1, %v277_v1 }
  0x13   : > { %1052 = vmatpush3.bf16.xpose.msra.mxu0 %v291_v2  ;;  %v1284_v11 = vrot.slane %v280_v10, %v283_v9  ;;  %v1020_v20 = vcombine.low %v276_v3, %v276_v3  ;;  %v1296_v21 = vld [vmem:[#allocation2] sm:$0xff] }
  0x14   : > { %1069 = vmatprep.subr.bf16.mxu0 %v1188_v0  ;;  %370 = vrot.lane.b32.xlu1 %v1290_v19, %s1192_s26 }
  0x15   : > { %vm285_vm4 = vcmp.eq.s32.totalorder %v1284_v11, 1  ;;  %v752_v11 = vld [vmem:[#allocation2 + $0x18] sm:$0xff] }
  0x18   : > { %427 = vrot.lane.b32.xlu1 %v1290_v19, %s1193_s27 }
  0x1a   : > { %1054 = vmatmul.mubr.msk.bf16.vlgmr.msra.gmra.mrb[0].mxu0 %vm271_vm0, %v276_v3  ;;  %v1338_v3 = vld [vmem:[#allocation2 + $0x8] sm:$0xff] }
  0x1b   : > { %1071 = vmatprep.mubr.msk.bf16.mxu0 %vm1189_vm1, %v1188_v0 }
  0x1c   : > { %425 = vrot.lane.b32.xlu1 %v1020_v20, %s1193_s27 }
  0x20   : > { %564 = vrot.lane.b32.xlu1 %v1290_v19, %s1194_s28 }
  0x24   : > { %562 = vrot.lane.b32.xlu1 %v1020_v20, %s1194_s28 }
  0x28   : > { %701 = vrot.lane.b32.xlu1 %v1290_v19, %s1195_s29 }
  0x2c   : > { %699 = vrot.lane.b32.xlu1 %v1020_v20, %s1195_s29 }
  0x86   : > { %v371_v25 = vpop.permute.xlu1 %370 }
  0x87   : > { %v377_v26 = vsel %vm375_vm5, %v371_v25, 0 }
  0x88   : > { %1058 = vmatpush3.bf16.msra.mxu1 %v377_v26 }
  0x89   : > { %1063 = vmatprep.subr.bf16.mxu1 %v1188_v0 }
  0x8a   : > { %v428_v30 = vpop.permute.xlu1 %427 }
  0x8b   : > { %v433_v33 = vsel %vm271_vm0, %v428_v30, 0 }
  0x8e   : > { %v426_v31 = vpop.permute.xlu1 %425 }
  0x92   : > { %v565_v35 = vpop.permute.xlu1 %564 }
  0x93   : > { %v570_v37 = vsel %vm271_vm0, %v565_v35, 0 }
  0x96   : > { %v563_v36 = vpop.permute.xlu1 %562 }
  0x9a   : > { %v702_v38 = vpop.permute.xlu1 %701 }
  0x9b   : > { %v707_v39 = vsel %vm271_vm0, %v702_v38, 0 }
  0x9e   : > { %v700_v40 = vpop.permute.xlu1 %699 }
  0xed   : > { %v327_v12 = vpop.f32.mrb[0].mxu0 }
  0xee   : > { %v333_v13 = vmul.f32 0.35355338, %v327_v12  ;;  %v1055_v14 = vpop.f32.mrb[1].mxu0 }
  0xef   : > { %v330_v15 = vpop.f32.mrb[2].mxu0 }
  0xf0   : > { %v1056_v16 = vpop.f32.mrb[3].mxu0  ;;  %v334_v17 = vsel %vm285_vm4, -1e+09, %v333_v13 }
  0xf1   : > { %v336_v18 = vsel %vm271_vm0, %v334_v17, -inf }
  0xf2   : > { %337 = vmax.xlane.f32.xlu0 %v336_v18 }
 0x17f   : > { %v338_v22 = vpop.xlane.xlu0 %337 }
 0x180   : > { %v1299_v23 = vmax.f32 %v1296_v21, %v338_v22 }
 0x182   : > { %v340_v24 = vsub.f32 %v1296_v21, %v1299_v23  ;;  %421 = vst.msk [vmem:[#allocation2] sm:$0xff] %vm262_vm2, %v1299_v23  ;;  %345 = vperm.xlu0 %1137, %v1299_v23  }
 0x201   : > { %v346_v27 = vpop.permute.xlu0 %345 }
 0x202   : > { %v348_v28 = vsub.f32 %v334_v17, %v346_v27 }
 0x204   : > { %v349_v29 = vmul.f32 1.442695, %v348_v28 }
 0x206   : > { %1140 = vpow2.f32 %v349_v29 }
 0x210   : > { %v1308_v32 = vpop.eup %1140 }
 0x211   : > { %v366_v34 = vpack.c.bf16 %v1308_v32, %v1308_v32  ;;  %v353_v15 = vsel %vm271_vm0, %v1308_v32, 0.0 }
 0x213   : > { %1060 = vmatmul.mubr.msk.bf16.vlgmr.msra.gmra.mrb[0].mxu1 %vm271_vm0, %v366_v34 }
 0x214   : > { %1064 = vmatpush3.bf16.xpose.msra.mxu1 %v433_v33  ;;  %1065 = vmatprep.mubr.msk.bf16.mxu1 %vm1189_vm1, %v1188_v0 }
 0x215   : > { %1075 = vmatprep.subr.bf16.mxu1 %v1188_v0 }
 0x21b   : > { %1066 = vmatmul.mubr.msk.bf16.vlgmr.msra.gmra.mrb[4].mxu1 %vm271_vm0, %v426_v31 }
 0x21c   : > { %1076 = vmatpush3.bf16.xpose.msra.mxu1 %v570_v37  ;;  %1077 = vmatprep.mubr.msk.bf16.mxu1 %vm1189_vm1, %v1188_v0 }
 0x21d   : > { %1087 = vmatprep.subr.bf16.mxu1 %v1188_v0 }
 0x223   : > { %1078 = vmatmul.mubr.msk.bf16.vlgmr.msra.gmra.mrb[8].mxu1 %vm271_vm0, %v563_v36 }
 0x224   : > { %1088 = vmatpush3.bf16.xpose.msra.mxu1 %v707_v39  ;;  %1089 = vmatprep.mubr.msk.bf16.mxu1 %vm1189_vm1, %v1188_v0 }
 0x22b   : > { %1090 = vmatmul.mubr.msk.bf16.vlgmr.msra.gmra.mrb[12].mxu1 %vm271_vm0, %v700_v40 }
 0x2e6   : > { %v1327_v41 = vpop.f32.mrb[0].mxu1 }
 0x2e7   : > { %v1061_v42 = vpop.f32.mrb[1].mxu1 }
 0x2e8   : > { %v416_v43 = vpop.f32.mrb[2].mxu1 }
 0x2e9   : > { %v1062_v44 = vpop.f32.mrb[3].mxu1 }
 0x2ee   : > { %v469_v45 = vpop.f32.mrb[4].mxu1 }
 0x2ef   : > { %v475_v46 = vmul.f32 0.35355338, %v469_v45  ;;  %v1067_v47 = vpop.f32.mrb[5].mxu1 }
 0x2f0   : > { %v472_v48 = vpop.f32.mrb[6].mxu1 }
 0x2f1   : > { %v1068_v49 = vpop.f32.mrb[7].mxu1  ;;  %v476_v50 = vsel %vm285_vm4, -1e+09, %v475_v46  ;;  %v351_v48 = vld [vmem:[#allocation3] sm:$0xff] }
 0x2f2   : > { %v479_v51 = vsel %vm271_vm0, %v476_v50, -inf }
 0x2f3   : > { %480 = vmax.xlane.f32.xlu1 %v479_v51 }
 0x2f6   : > { %v606_v52 = vpop.f32.mrb[8].mxu1 }
 0x2f7   : > { %v612_v53 = vmul.f32 0.35355338, %v606_v52  ;;  %v1079_v54 = vpop.f32.mrb[9].mxu1 }
 0x2f8   : > { %v609_v55 = vpop.f32.mrb[10].mxu1  ;;  %v495_v54 = vld [vmem:[#allocation3 + $0x8] sm:$0xff] }
 0x2f9   : > { %v1080_v56 = vpop.f32.mrb[11].mxu1  ;;  %v613_v57 = vsel %vm285_vm4, -1e+09, %v612_v53 }
 0x2fa   : > { %v616_v58 = vsel %vm271_vm0, %v613_v57, -inf }
 0x2fb   : > { %617 = vmax.xlane.f32.xlu0 %v616_v58  ;;  %v359_v58 = vld [vmem:[#allocation4] sm:$0xff] }
 0x2fe   : > { %v743_v59 = vpop.f32.mrb[12].mxu1 }
 0x2ff   : > { %v749_v60 = vmul.f32 0.35355338, %v743_v59  ;;  %v1091_v61 = vpop.f32.mrb[13].mxu1 }
 0x300   : > { %v746_v62 = vpop.f32.mrb[14].mxu1 }
 0x301   : > { %v1092_v63 = vpop.f32.mrb[15].mxu1  ;;  %v750_v1 = vsel %vm285_vm4, -1e+09, %v749_v60  ;;  %v632_v60 = vld [vmem:[#allocation3 + $0x10] sm:$0xff] }
 0x302   : > { %v753_v2 = vsel %vm271_vm0, %v750_v1, -inf }
 0x303   : > { %754 = vmax.xlane.f32.xlu1 %v753_v2 }
 0x380   : > { %v481_v4 = vpop.xlane.xlu1 %480 }
 0x381   : > { %v1341_v5 = vmax.f32 %v1338_v3, %v481_v4  ;;  %v769_v4 = vld [vmem:[#allocation3 + $0x18] sm:$0xff] }
 0x383   : > { %v483_v6 = vsub.f32 %v1338_v3, %v1341_v5  ;;  %561 = vst.msk [vmem:[#allocation2 + $0x8] sm:$0xff] %vm262_vm2, %v1341_v5  ;;  %488 = vperm.xlu1 %1138, %v1341_v5  }
 0x385   : > { %v484_v46 = vmul.f32 1.442695, %v483_v6 }
 0x388   : > { %v618_v8 = vpop.xlane.xlu0 %617 }
 0x389   : > { %v619_v9 = vmax.f32 %v615_v7, %v618_v8 }
 0x38b   : > { %v620_v10 = vsub.f32 %v615_v7, %v619_v9  ;;  %698 = vst.msk [vmem:[#allocation2 + $0x10] sm:$0xff] %vm262_vm2, %v619_v9  ;;  %625 = vperm.xlu0 %1137, %v619_v9  }
 0x38d   : > { %v621_v34 = vmul.f32 1.442695, %v620_v10 }
 0x390   : > { %v755_v12 = vpop.xlane.xlu1 %754 }
 0x391   : > { %v756_v13 = vmax.f32 %v752_v11, %v755_v12 }
 0x393   : > { %v757_v14 = vsub.f32 %v752_v11, %v756_v13  ;;  %835 = vst.msk [vmem:[#allocation2 + $0x18] sm:$0xff] %vm262_vm2, %v756_v13  ;;  %762 = vperm.xlu1 %1138, %v756_v13  }
 0x395   : > { %v758_v23 = vmul.f32 1.442695, %v757_v14 }
 0x397   : > { %511 = vrot.lane.b32.xlu1 %v1290_v19, %s1196_s30 }
 0x39b   : > { %648 = vrot.lane.b32.xlu1 %v1290_v19, %s1197_s4 }
 0x39f   : > { %785 = vrot.lane.b32.xlu1 %v1290_v19, %s1198_s5  ;;  %v341_v19 = vmul.f32 1.442695, %v340_v24 }
 0x3aa   : > { %354 = vadd.xlane.f32.xlu0 %v353_v15 }
 0x402   : > { %v489_v16 = vpop.permute.xlu1 %488 }
 0x403   : > { %v491_v17 = vsub.f32 %v476_v50, %v489_v16 }
 0x405   : > { %v492_v18 = vmul.f32 1.442695, %v491_v17  ;;  %v503_v17 = vld [vmem:[#allocation4 + $0x8] sm:$0xff] }
 0x407   : > { %1142 = vpow2.f32 %v492_v18 }
 0x40a   : > { %v626_v20 = vpop.permute.xlu0 %625 }
 0x40b   : > { %v628_v22 = vsub.f32 %v613_v57, %v626_v20 }
 0x40d   : > { %v629_v25 = vmul.f32 1.442695, %v628_v22 }
 0x40f   : > { %1144 = vpow2.f32 %v629_v25 }
 0x411   : > { %v1143_v26 = vpop.eup %1142 }
 0x412   : > { %v763_v27 = vpop.permute.xlu1 %762  ;;  %v497_v28 = vsel %vm271_vm0, %v1143_v26, 0.0  ;;  %v510_v35 = vpack.c.bf16 %v1143_v26, %v1143_v26 }
 0x413   : > { %v765_v29 = vsub.f32 %v750_v1, %v763_v27  ;;  %498 = vadd.xlane.f32.xlu1 %v497_v28  ;;  %v640_v28 = vld [vmem:[#allocation4 + $0x10] sm:$0xff] }
 0x415   : > { %v766_v30 = vmul.f32 1.442695, %v765_v29 }
 0x416   : > { %v512_v31 = vpop.permute.xlu1 %511 }
 0x417   : > { %1146 = vpow2.f32 %v766_v30  ;;  %v517_v32 = vsel %vm375_vm5, %v512_v31, 0 }
 0x418   : > { %1070 = vmatpush3.bf16.msra.mxu0 %v517_v32  ;;  %1148 = vpow2.f32 %v341_v19 }
 0x419   : > { %v1145_v33 = vpop.eup %1144  ;;  %1081 = vmatprep.subr.bf16.mxu0 %v1188_v0  ;;  %1150 = vpow2.f32 %v621_v34 }
 0x41a   : > { %v634_v36 = vsel %vm271_vm0, %v1145_v33, 0.0  ;;  %v649_v37 = vpop.permute.xlu1 %648  ;;  %1152 = vpow2.f32 %v758_v23  ;;  %v647_v39 = vpack.c.bf16 %v1145_v33, %v1145_v33 }
 0x41b   : > { %1072 = vmatmul.mubr.msk.bf16.vlgmr.msra.gmra.mrb[4].mxu0 %vm271_vm0, %v510_v35  ;;  %635 = vadd.xlane.f32.xlu0 %v634_v36  ;;  %v654_v21 = vsel %vm375_vm5, %v649_v37, 0  ;;  %1154 = vpow2.f32 %v484_v46  ;;  %v777_v35 = vld [vmem:[#allocation4 + $0x18] sm:$0xff] }
 0x41c   : > { %1082 = vmatpush3.bf16.msra.mxu0 %v654_v21  ;;  %1083 = vmatprep.mubr.msk.bf16.mxu0 %vm1189_vm1, %v1188_v0 }
 0x41d   : > { %1093 = vmatprep.subr.bf16.mxu0 %v1188_v0 }
 0x41e   : > { %v786_v24 = vpop.permute.xlu1 %785 }
 0x41f   : > { %v791_v40 = vsel %vm375_vm5, %v786_v24, 0 }
 0x421   : > { %v1147_v38 = vpop.eup %1146 }
 0x422   : > { %v771_v42 = vsel %vm271_vm0, %v1147_v38, 0.0  ;;  %v1149_v43 = vpop.eup %1148  ;;  %v784_v45 = vpack.c.bf16 %v1147_v38, %v1147_v38 }
 0x423   : > { %1084 = vmatmul.mubr.msk.bf16.vlgmr.msra.gmra.mrb[8].mxu0 %vm271_vm0, %v647_v39  ;;  %772 = vadd.xlane.f32.xlu0 %v771_v42  ;;  %v1151_v44 = vpop.eup %1150  ;;  %v352_v49 = vmul.f32 %v1149_v43, %v351_v48 }
 0x424   : > { %362 = vperm.xlu1 %1138, %v1149_v43   ;;  %1094 = vmatpush3.bf16.msra.mxu0 %v791_v40  ;;  %v1153_v47 = vpop.eup %1152  ;;  %v633_v63 = vmul.f32 %v1151_v44, %v632_v60 }
 0x425   : > { %1095 = vmatprep.mubr.msk.bf16.mxu0 %vm1189_vm1, %v1188_v0  ;;  %v1155_v51 = vpop.eup %1154  ;;  %v770_v5 = vmul.f32 %v1153_v47, %v769_v4 }
 0x426   : > { %v496_v55 = vmul.f32 %v1155_v51, %v495_v54 }
 0x428   : > { %643 = vperm.xlu1 %1138, %v1151_v44  }
 0x42b   : > { %1096 = vmatmul.mubr.msk.bf16.vlgmr.msra.gmra.mrb[12].mxu0 %vm271_vm0, %v784_v45 }
 0x42c   : > { %780 = vperm.xlu1 %1138, %v1153_v47  }
 0x437   : > { %v355_v50 = vpop.xlane.xlu0 %354 }
 0x438   : > { %v356_v52 = vadd.f32 %v355_v50, %v352_v49 }
 0x439   : > { %506 = vperm.xlu0 %1137, %v1155_v51  }
 0x43a   : > { %358 = vst.msk [vmem:[#allocation3] sm:$0xff] %vm262_vm2, %v356_v52 }
 0x441   : > { %v839_v0 = vld [vmem:[#allocation3] sm:$0xff] }
 0x442   : > { %1156 = vrcp.f32 %v839_v0 }
 0x44c   : > { %v1157_v53 = vpop.eup %1156 }
 0x44d   : > { %844 = vperm.xlu0 %1137, %v1157_v53  }
 0x4a0   : > { %v499_v56 = vpop.xlane.xlu1 %498 }
 0x4a1   : > { %v500_v57 = vadd.f32 %v499_v56, %v496_v55 }
 0x4a3   : > { %501 = vst.msk [vmem:[#allocation3 + $0x8] sm:$0xff] %vm262_vm2, %v500_v57 }
 0x4a4   : > { %v363_v59 = vpop.permute.xlu1 %362 }
 0x4a5   : > { %v365_v61 = vmul.f32 %v363_v59, %v359_v58 }
 0x4a7   : > { %v419_v62 = vadd.f32 %v1327_v41, %v365_v61 }
 0x4a8   : > { %v636_v1 = vpop.xlane.xlu0 %635  ;;  %v644_v29 = vpop.permute.xlu1 %643 }
 0x4a9   : > { %420 = vst.msk [vmem:[#allocation4] sm:$0xff] %vm271_vm0, %v419_v62  ;;  %v637_v2 = vadd.f32 %v636_v1, %v633_v63  ;;  %v646_v19 = vmul.f32 %v644_v29, %v640_v28 }
 0x4aa   : > { %v851_v3 = vld [vmem:[#allocation3 + $0x8] sm:$0xff] }
 0x4ab   : > { %638 = vst.msk [vmem:[#allocation3 + $0x10] sm:$0xff] %vm262_vm2, %v637_v2  ;;  %1158 = vrcp.f32 %v851_v3 }
 0x4ac   : > { %v781_v36 = vpop.permute.xlu1 %780 }
 0x4ad   : > { %v783_v37 = vmul.f32 %v781_v36, %v777_v35 }
 0x4b0   : > { %v773_v6 = vpop.xlane.xlu0 %772  ;;  %v841_v13 = vld [vmem:[#allocation4] sm:$0xff] }
 0x4b1   : > { %v774_v7 = vadd.f32 %v773_v6, %v770_v5 }
 0x4b2   : > { %v869_v8 = vld [vmem:[#allocation3 + $0x10] sm:$0xff] }
 0x4b3   : > { %775 = vst.msk [vmem:[#allocation3 + $0x18] sm:$0xff] %vm262_vm2, %v774_v7  ;;  %1160 = vrcp.f32 %v869_v8 }
 0x4b5   : > { %v1159_v9 = vpop.eup %1158 }
 0x4b6   : > { %856 = vperm.xlu1 %1138, %v1159_v9  }
 0x4b8   : > { %v507_v12 = vpop.permute.xlu0 %506 }
 0x4b9   : > { %v509_v18 = vmul.f32 %v507_v12, %v503_v17 }
 0x4ba   : > { %v887_v41 = vld [vmem:[#allocation3 + $0x18] sm:$0xff] }
 0x4bb   : > { %1162 = vrcp.f32 %v887_v41 }
 0x4bd   : > { %v1161_v10 = vpop.eup %1160 }
 0x4be   : > { %874 = vperm.xlu1 %1138, %v1161_v10  }
 0x4c5   : > { %v1163_v11 = vpop.eup %1162 }
 0x4c6   : > { %892 = vperm.xlu1 %1138, %v1163_v11  }
 0x4cc   : > { %v845_v14 = vpop.permute.xlu0 %844 }
 0x4cd   : > { %v847_v15 = vmul.f32 %v845_v14, %v841_v13 }
 0x4cf   : > { %v848_v16 = vpack.c.bf16 %v847_v15, %v847_v15 }
 0x4d1   : > { %850 = vst.msk [vmem:[%s1386_s8] sm:$0xf] %vm849_vm6, %v848_v16 }
 0x4ee   : > { %v553_v20 = vpop.f32.mrb[4].mxu0 }
 0x4ef   : > { %v559_v22 = vadd.f32 %v553_v20, %v509_v18  ;;  %v1073_v25 = vpop.f32.mrb[5].mxu0 }
 0x4f0   : > { %v556_v26 = vpop.f32.mrb[6].mxu0 }
 0x4f1   : > { %560 = vst.msk [vmem:[#allocation4 + $0x8] sm:$0xff] %vm271_vm0, %v559_v22  ;;  %v1074_v27 = vpop.f32.mrb[7].mxu0 }
 0x4f6   : > { %v690_v30 = vpop.f32.mrb[8].mxu0 }
 0x4f7   : > { %v696_v31 = vadd.f32 %v690_v30, %v646_v19  ;;  %v1085_v32 = vpop.f32.mrb[9].mxu0 }
 0x4f8   : > { %v693_v33 = vpop.f32.mrb[10].mxu0  ;;  %v853_v42 = vld [vmem:[#allocation4 + $0x8] sm:$0xff] }
 0x4f9   : > { %697 = vst.msk [vmem:[#allocation4 + $0x10] sm:$0xff] %vm271_vm0, %v696_v31  ;;  %v1086_v34 = vpop.f32.mrb[11].mxu0 }
 0x4fe   : > { %v827_v21 = vpop.f32.mrb[12].mxu0 }
 0x4ff   : > { %v833_v23 = vadd.f32 %v827_v21, %v783_v37  ;;  %v1097_v24 = vpop.f32.mrb[13].mxu0 }
 0x500   : > { %v830_v38 = vpop.f32.mrb[14].mxu0  ;;  %v871_v46 = vld [vmem:[#allocation4 + $0x10] sm:$0xff] }
 0x501   : > { %834 = vst.msk [vmem:[#allocation4 + $0x18] sm:$0xff] %vm271_vm0, %v833_v23  ;;  %v1098_v39 = vpop.f32.mrb[15].mxu0 }
 0x508   : > { %v889_v50 = vld [vmem:[#allocation4 + $0x18] sm:$0xff] }
 0x535   : > { %v857_v40 = vpop.permute.xlu1 %856 }
 0x536   : > { %v859_v43 = vmul.f32 %v857_v40, %v853_v42 }
 0x538   : > { %v1032_v44 = vpack.c.bf16 %v859_v43, %v859_v43 }
 0x53a   : > { %864 = vrot.lane.b32.xlu0 %v1032_v44, %s1199_s9 }
 0x53d   : > { %v875_v45 = vpop.permute.xlu1 %874 }
 0x53e   : > { %v877_v47 = vmul.f32 %v875_v45, %v871_v46 }
 0x540   : > { %v1033_v48 = vpack.c.bf16 %v877_v47, %v877_v47 }
 0x542   : > { %882 = vrot.lane.b32.xlu0 %v1033_v48, %s1200_s10 }
 0x545   : > { %v893_v49 = vpop.permute.xlu1 %892 }
 0x546   : > { %v895_v51 = vmul.f32 %v893_v49, %v889_v50 }
 0x548   : > { %v1034_v52 = vpack.c.bf16 %v895_v51, %v895_v51 }
 0x54a   : > { %900 = vrot.lane.b32.xlu0 %v1034_v52, %s1201_s11 }
 0x5ac   : > { %v865_v0 = vpop.permute.xlu0 %864 }
 0x5ad   : > { %868 = vst.msk [vmem:[%s1386_s8] sm:$0xf] %vm867_vm7, %v865_v0 }
 0x5b4   : > { %v883_v53 = vpop.permute.xlu0 %882 }
 0x5b5   : > { %886 = vst.msk [vmem:[%s1386_s8] sm:$0xf] %vm885_vm8, %v883_v53 }
 0x5bc   : > { %v901_v54 = vpop.permute.xlu0 %900 }
 0x5bd   : > { %904 = vst.msk [vmem:[%s1386_s8] sm:$0xf] %vm903_vm9, %v901_v54 }
 0x5be PF: > { %s13_s14 = sadd.s32 1, %s1186_s14   ;;  %s1408_s12 = smov %s1182_s13 }
 0x5bf   : > { %p10_p5 = scmp.ge.s32.totalorder %s13_s14, 4   ;;  %s1409_s13 = smov %s1411_s15 }
 0x5c1   :  { %12 = sbr.rel (!%p10_p5) target bundleno = 2 (0x2), region = 85 }

// kernel: decoder_forward.23
= control target key start
LH: loop header
LB: loop body
LE: loop exit
PB: predicated region body
PF: predicated region fallthrough
CT: control target
= control target key end

     0   :  { %vm34_vm0 = vcmask 261120   ;;  %v340_v0 = vmov 0.0   ;;  %vm341_vm1 = vmmov 0   ;;  %vm149_vm2 = vcmask 523264   ;;  %s438_s1 = inlined_call_operand.vmem [shape: bf16[32,64], index: 1, kind: input, shape index: {}]   ;;  %s439_s3 = inlined_call_operand.vmem [shape: bf16[64,32], index: 3, kind: input, shape index: {}]   ;;  %s440_s0 = inlined_call_operand.vmem [shape: bf16[16,32], index: 0, kind: input, shape index: {}, may-alias: {0,5}]   ;;  %s441_s2 = inlined_call_operand.vmem [shape: f32[1,64], index: 2, kind: input, shape index: {}]   ;;  %s442_s5 = inlined_call_operand.vmem [shape: bf16[16,32], index: 5, kind: input, shape index: {}, may-alias: {0,5}]   ;;  %s443_s4 = inlined_call_operand.vmem [shape: f32[1,32], index: 4, kind: input, shape index: {}]   ;;  %s444_s6 = inlined_call_operand.vmem [shape: f32[1,32], index: 6, kind: input, shape index: {}]   ;;  %s445_s7 = inlined_call_operand.vmem [shape: f32[1,32], index: 7, kind: input, shape index: {}]   ;;  %s446_s8 = inlined_call_operand.vmem [shape: bf16[16,32], index: 8, kind: output, shape index: {}]  }
   0x1   :  { %307 = vmatprep.subr.bf16.mxu0 %v340_v0  ;;  %v329_v1 = vld [vmem:[%s438_s1] sm:$0xff]   ;;  %311 = vmatprep.mubr.msk.bf16.mxu0 %vm341_vm1, %v340_v0  ;;  %35 = vst.msk [vmem:[#allocation2] sm:$0xff] %vm34_vm0, %v340_v0  ;;  %36 = vst.msk [vmem:[#allocation2 + $0x8] sm:$0xff] %vm34_vm0, %v340_v0  ;;  %v330_v2 = vld [vmem:[%s438_s1 + $0x8] sm:$0xff]   ;;  %vm271_vm3 = vcmask 257024  }
   0x2   :  { %315 = vmatprep.subr.bf16.mxu1 %v340_v0  ;;  %323 = vmatprep.mubr.msk.bf16.mxu1 %vm341_vm1, %v340_v0  ;;  %v332_v3 = vld [vmem:[%s439_s3] sm:$0xff]   ;;  %v333_v5 = vld [vmem:[%s439_s3 + $0x8] sm:$0xff]   ;;  %v334_v6 = vld [vmem:[%s439_s3 + $0x10] sm:$0xff]  }
   0x3   :  { %308 = vmatpush3.bf16.msra.mxu0 %v329_v1  ;;  %v331_v4 = vld [vmem:[%s440_s0] sm:$0xff]   ;;  %316 = vmatpush3.bf16.msra.mxu1 %v332_v3  ;;  %v335_v7 = vld [vmem:[%s439_s3 + $0x18] sm:$0xff]  }
   0x4   :  { %309 = vmatprep.subr.bf16.mxu0 %v340_v0  ;;  %317 = vmatprep.subr.bf16.mxu1 %v340_v0  ;;  %v278_v8 = vld [vmem:[%s441_s2] ss:$0 sm:$0xff] }
   0x5   :  { %v296_v26 = vld [vmem:[%s442_s5] sm:$0xff]  }
   0x6   :  { %v288_v27 = vld [vmem:[%s443_s4] ss:$0 sm:$0xff]  ;;  %v297_v28 = vunpack.c.l.bf16 %v296_v26  ;;  %v298_v31 = vunpack.c.h.bf16 %v296_v26 }
   0x7   :  { %310 = vmatpush3.bf16.msra.mxu0 %v330_v2  ;;  %318 = vmatpush3.bf16.msra.mxu1 %v333_v5  ;;  %v289_v55 = vld [vmem:[%s444_s6] ss:$0 sm:$0xff] }
   0x8   :  { %319 = vmatprep.subr.bf16.mxu1 %v340_v0  ;;  %v114_v18 = vld [vmem:[#allocation2] sm:$0xff]  ;;  %v115_v20 = vld [vmem:[#allocation2 + $0x8] sm:$0xff] }
   0x9   :  { %v290_v57 = vld [vmem:[%s445_s7] ss:$0 sm:$0xff] }
   0xa   :  { %312 = vmatmul.mubr.msk.bf16.vlgmr.msra.gmra.mrb[0].mxu0 %vm34_vm0, %v331_v4 }
   0xb   :  { %320 = vmatpush3.bf16.msra.mxu1 %v334_v6 }
   0xc   :  { %321 = vmatprep.subr.bf16.mxu1 %v340_v0 }
   0xf   :  { %322 = vmatpush3.bf16.msra.mxu1 %v335_v7 }
  0xdd   :  { %v105_v9 = vpop.f32.mrb[0].mxu0 }
  0xde   :  { %v106_v10 = vadd.f32 %v278_v8, %v105_v9  ;;  %v313_v11 = vpop.f32.mrb[1].mxu0 }
  0xdf   :  { %v108_v12 = vpop.f32.mrb[2].mxu0 }
  0xe0   :  { %v109_v13 = vadd.f32 %v278_v8, %v108_v12  ;;  %v314_v14 = vpop.f32.mrb[3].mxu0  ;;  %v112_v15 = vmax.f32 %v106_v10, 0.0 }
  0xe2   :  { %v113_v16 = vmax.f32 %v109_v13, 0.0 }
  0xe4   :  { %v116_v17 = vpack.c.bf16 %v113_v16, %v112_v15 }
  0xe6   :  { %324 = vmatmul.mubr.msk.bf16.vlgmr.msra.gmra.mrb[0].mxu1 %vm149_vm2, %v116_v17 }
 0x1b9   :  { %v187_v19 = vpop.f32.mrb[0].mxu1 }
 0x1ba   :  { %v194_v21 = vadd.f32 %v187_v19, %v114_v18  ;;  %v325_v22 = vpop.f32.mrb[1].mxu1 }
 0x1bb   :  { %v190_v23 = vpop.f32.mrb[2].mxu1 }
 0x1bc   :  { %196 = vst.msk [vmem:[#allocation2] sm:$0xff] %vm34_vm0, %v194_v21  ;;  %v195_v24 = vadd.f32 %v190_v23, %v115_v20  ;;  %v326_v25 = vpop.f32.mrb[3].mxu1 }
 0x1be   :  { %197 = vst.msk [vmem:[#allocation2 + $0x8] sm:$0xff] %vm34_vm0, %v195_v24 }
 0x1c3   :  { %v201_v29 = vld [vmem:[#allocation2] sm:$0xff] }
 0x1c4   :  { %v210_v30 = vadd.f32 %v288_v27, %v201_v29 }
 0x1c5   :  { %v202_v32 = vld [vmem:[#allocation2 + $0x8] sm:$0xff] }
 0x1c6   :  { %v216_v33 = vadd.f32 %v297_v28, %v210_v30  ;;  %v211_v34 = vadd.f32 %v288_v27, %v202_v32 }
 0x1c8   :  { %v218_v35 = vsel %vm34_vm0, %v216_v33, 0.0  ;;  %v217_v36 = vadd.f32 %v298_v31, %v211_v34 }
 0x1c9   :  { %219 = vadd.xlane.f32.xlu0 %v218_v35 }
 0x1ca   :  { %v221_v37 = vsel %vm34_vm0, %v217_v36, 0.0 }
 0x1cd   :  { %222 = vadd.xlane.f32.xlu0 %v221_v37 }
 0x256   :  { %v220_v38 = vpop.xlane.xlu0 %219 }
 0x257   :  { %v225_v39 = vmul.f32 0.03125, %v220_v38 }
 0x259   :  { %v227_v40 = vsub.f32 %v216_v33, %v225_v39 }
 0x25a   :  { %v223_v41 = vpop.xlane.xlu0 %222 }
 0x25b   :  { %v226_v42 = vmul.f32 0.03125, %v223_v41  ;;  %v229_v43 = vmul.f32 %v227_v40, %v227_v40 }
 0x25d   :  { %v228_v44 = vsub.f32 %v217_v36, %v226_v42  ;;  %v231_v45 = vsel %vm34_vm0, %v229_v43, 0.0 }
 0x25e   :  { %232 = vadd.xlane.f32.xlu1 %v231_v45 }
 0x25f   :  { %v230_v46 = vmul.f32 %v228_v44, %v228_v44 }
 0x261   :  { %v234_v47 = vsel %vm34_vm0, %v230_v46, 0.0 }
 0x262   :  { %235 = vadd.xlane.f32.xlu1 %v234_v47 }
 0x2eb   :  { %v233_v48 = vpop.xlane.xlu1 %232 }
 0x2ec   :  { %v237_v49 = vmul.f32 0.03125, %v233_v48 }
 0x2ee   :  { %v239_v50 = vadd.f32 1e-12, %v237_v49 }
 0x2ef   :  { %v236_v51 = vpop.xlane.xlu1 %235 }
 0x2f0   :  { %336 = vrsqrt.f32 %v239_v50  ;;  %v238_v52 = vmul.f32 0.03125, %v236_v51 }
 0x2f2   :  { %v240_v53 = vadd.f32 1e-12, %v238_v52 }
 0x2f4   :  { %338 = vrsqrt.f32 %v240_v53 }
 0x2fa   :  { %v337_v54 = vpop.eup %336 }
 0x2fb   :  { %v243_v56 = vmul.f32 %v337_v54, %v227_v40 }
 0x2fd   :  { %v252_v58 = vmul.f32 %v289_v55, %v243_v56 }
 0x2fe   :  { %v339_v59 = vpop.eup %338 }
 0x2ff   :  { %v261_v60 = vadd.f32 %v290_v57, %v252_v58  ;;  %v244_v61 = vmul.f32 %v339_v59, %v228_v44 }
 0x301   :  { %v293_v62 = vpack.c.bf16 %v261_v60, %v261_v60  ;;  %v253_v63 = vmul.f32 %v289_v55, %v244_v61 }
 0x303   :  { %272 = vst.msk [vmem:[%s446_s8] sm:$0xf] %vm271_vm3, %v293_v62  ;;  %v262_v0 = vadd.f32 %v290_v57, %v253_v63 }
 0x305   :  { %v294_v1 = vpack.c.bf16 %v262_v0, %v262_v0 }
 0x307   :  { %273 = vst.msk [vmem:[%s446_s8 + $0x4] sm:$0xf] %vm271_vm3, %v294_v1 }

</bundles_post_ra>
